<compile_context>
chip_gen: v5e
topology: v5e:2x2
jax: 0.10.0
libtpu: 0.0.40
codegen_flags: <defaults>
</compile_context>

<pallas_src>
import functools

import jax
import jax.numpy as jnp
from jax.experimental import pallas as pl
from jax.experimental.pallas import tpu as pltpu

# ---------------- config (small, MXU/vreg friendly) ----------------
HIDDEN = 256
NUM_HEADS = 4
NUM_KV_HEADS = 2
HEAD_DIM = HIDDEN // NUM_HEADS            # 64
INTERMEDIATE = 512
NUM_LAYERS = 2
VOCAB = 1000
VOCAB_PAD = (VOCAB + 63) // 64 * 64       # 1024 (vLLM pads vocab to /64)
RMS_EPS = 1e-6
ROPE_BASE = 10000.0
SEQ = 8

Q_SIZE = NUM_HEADS * HEAD_DIM             # 256
KV_SIZE = NUM_KV_HEADS * HEAD_DIM         # 128
GQA_GROUP = NUM_HEADS // NUM_KV_HEADS     # 2
SCALING = HEAD_DIM ** -0.5

VMEM_LIMIT = 32 * 1024 * 1024             # explicit budget, safe on v5e/v6e/v7x


# ---------------- Pallas kernel: fused decoder layer ----------------
def _decoder_layer_kernel(h_ref, cos_ref, sin_ref, in_ln_ref, post_ln_ref,
                          qkv_w_ref, o_w_ref, gate_up_w_ref, down_w_ref,
                          h_out_ref, k_out_ref, v_out_ref,
                          *, eps, scale):
    f32 = jnp.float32
    bf16 = jnp.bfloat16

    h = h_ref[...].astype(f32)                               # (T, H)
    T = h.shape[0]
    half = HEAD_DIM // 2

    # ---- input RMSNorm (f32) ----
    var = jnp.mean(h * h, axis=-1, keepdims=True)
    hn = h * jax.lax.rsqrt(var + eps) * in_ln_ref[...].astype(f32)

    # ---- fused QKV projection: bf16 x bf16 -> f32 accumulate ----
    qkv = jnp.dot(hn.astype(bf16), qkv_w_ref[...],
                  preferred_element_type=f32)                # (T, Q+2*KV)

    cos = cos_ref[...].astype(f32)                           # (T, D/2)
    sin = sin_ref[...].astype(f32)

    def rope(x):                                             # x: (T, HEAD_DIM), NeoX style
        x1 = x[:, :half]
        x2 = x[:, half:]
        return jnp.concatenate([x1 * cos - x2 * sin,
                                x2 * cos + x1 * sin], axis=-1)

    # causal mask for one head, tiled for the GQA group stacked along rows
    row = jax.lax.broadcasted_iota(jnp.int32, (T, T), 0)
    col = jax.lax.broadcasted_iota(jnp.int32, (T, T), 1)
    causal = col <= row
    causal_g = jnp.concatenate([causal] * GQA_GROUP, axis=0)  # (GROUP*T, T)

    attn_heads = []
    k_heads = []
    v_heads = []
    # ---- grouped GQA attention: one pass per KV head, GQA_GROUP q-heads stacked ----
    for j in range(NUM_KV_HEADS):
        k_j = rope(qkv[:, Q_SIZE + j * HEAD_DIM:
                          Q_SIZE + (j + 1) * HEAD_DIM])       # (T, D)
        v_j = qkv[:, Q_SIZE + KV_SIZE + j * HEAD_DIM:
                     Q_SIZE + KV_SIZE + (j + 1) * HEAD_DIM]   # (T, D)
        k_heads.append(k_j)
        v_heads.append(v_j)

        q_g = jnp.concatenate(
            [rope(qkv[:, (j * GQA_GROUP + g) * HEAD_DIM:
                         (j * GQA_GROUP + g + 1) * HEAD_DIM])
             for g in range(GQA_GROUP)], axis=0)              # (GROUP*T, D)

        s = jax.lax.dot_general(q_g, k_j, (((1,), (1,)), ((), ())),
                                preferred_element_type=f32) * scale  # (G*T, T)
        s = jnp.where(causal_g, s, -1e30)
        m = jnp.max(s, axis=-1, keepdims=True)
        p = jnp.exp(s - m)                                    # exp stays f32 (v5e-safe)
        p = p * pl.reciprocal(jnp.sum(p, axis=-1, keepdims=True), approx=True)
        o_g = jnp.dot(p, v_j, preferred_element_type=f32)     # (G*T, D)
        for g in range(GQA_GROUP):
            attn_heads.append(o_g[g * T:(g + 1) * T, :])

    attn = jnp.concatenate(attn_heads, axis=-1)               # (T, Q_SIZE)
    # lane-dense KV cache writeback, straight from VMEM (no transposes / scatter)
    k_out_ref[...] = jnp.concatenate(k_heads, axis=-1).astype(k_out_ref.dtype)
    v_out_ref[...] = jnp.concatenate(v_heads, axis=-1).astype(v_out_ref.dtype)

    # ---- o_proj + residual ----
    h = h + jnp.dot(attn.astype(bf16), o_w_ref[...],
                    preferred_element_type=f32)

    # ---- post-attention RMSNorm ----
    var = jnp.mean(h * h, axis=-1, keepdims=True)
    hn = h * jax.lax.rsqrt(var + eps) * post_ln_ref[...].astype(f32)

    # ---- gate_up projection + SiluAndMul (fused epilogue) ----
    gate_up = jnp.dot(hn.astype(bf16), gate_up_w_ref[...],
                      preferred_element_type=f32)             # (T, 2*I)
    gate = gate_up[:, :INTERMEDIATE]
    up = gate_up[:, INTERMEDIATE:]
    act = gate * jax.nn.sigmoid(gate) * up

    # ---- down projection + residual ----
    h = h + jnp.dot(act.astype(bf16), down_w_ref[...],
                    preferred_element_type=f32)

    h_out_ref[...] = h.astype(h_out_ref.dtype)


def decoder_layer(h, cos, sin, lp):
    T, H = h.shape
    return pl.pallas_call(
        functools.partial(_decoder_layer_kernel, eps=RMS_EPS, scale=SCALING),
        out_shape=(jax.ShapeDtypeStruct((T, H), jnp.float32),
                   jax.ShapeDtypeStruct((T, KV_SIZE), jnp.bfloat16),
                   jax.ShapeDtypeStruct((T, KV_SIZE), jnp.bfloat16)),
        compiler_params=pltpu.CompilerParams(vmem_limit_bytes=VMEM_LIMIT),
    )(h, cos, sin,
      lp["input_ln"].reshape(1, H), lp["post_ln"].reshape(1, H),
      lp["qkv_w"], lp["o_w"], lp["gate_up_w"], lp["down_w"])


# ---------------- Pallas kernel: final RMSNorm + lm_head (last token only) ----------------
def _final_norm_lm_head_kernel(h_ref, ln_ref, lm_ref, o_ref, *, eps):
    h = h_ref[...].astype(jnp.float32)                        # (1, H)
    var = jnp.mean(h * h, axis=-1, keepdims=True)
    hn = h * jax.lax.rsqrt(var + eps) * ln_ref[...].astype(jnp.float32)
    o_ref[...] = jnp.dot(hn.astype(jnp.bfloat16), lm_ref[...],
                         preferred_element_type=jnp.float32)


def final_norm_lm_head(h_last, ln_w, lm_w):
    rows = h_last.shape[0]
    return pl.pallas_call(
        functools.partial(_final_norm_lm_head_kernel, eps=RMS_EPS),
        out_shape=jax.ShapeDtypeStruct((rows, lm_w.shape[1]), jnp.float32),
        compiler_params=pltpu.CompilerParams(vmem_limit_bytes=VMEM_LIMIT),
    )(h_last, ln_w.reshape(1, -1), lm_w)


# ---------------- parameters (deterministic, synthetic) ----------------
def _w(key, shape, scale=0.02, dtype=jnp.bfloat16):
    return (scale * jax.random.normal(key, shape, dtype=jnp.float32)).astype(dtype)


def init_params(key):
    keys = jax.random.split(key, 3 + 6 * NUM_LAYERS)
    params = {
        "embed": _w(keys[0], (VOCAB_PAD, HIDDEN), dtype=jnp.float32),
        "final_ln": jnp.ones((HIDDEN,), jnp.float32),
        "lm_head_t": _w(keys[1], (HIDDEN, VOCAB_PAD)),        # lm_head.weight.T, bf16
        "layers": [],
    }
    for li in range(NUM_LAYERS):
        k = keys[3 + 6 * li: 3 + 6 * (li + 1)]
        params["layers"].append({
            "input_ln": jnp.ones((HIDDEN,), jnp.float32),
            "post_ln": jnp.ones((HIDDEN,), jnp.float32),
            "qkv_w": _w(k[0], (HIDDEN, Q_SIZE + 2 * KV_SIZE)),     # bf16
            "o_w": _w(k[1], (Q_SIZE, HIDDEN)),                     # bf16
            "gate_up_w": _w(k[2], (HIDDEN, 2 * INTERMEDIATE)),     # bf16
            "down_w": _w(k[3], (INTERMEDIATE, HIDDEN)),            # bf16
        })
    return params


# ---------------- full forward pass ----------------
def llama_forward(params, input_ids, positions, kv_caches):
    T = input_ids.shape[0]
    h = jnp.take(params["embed"], input_ids, axis=0).astype(jnp.float32)  # [T, H]

    # RoPE trig tables (shared by all layers), [T, HEAD_DIM/2]
    inv_freq = 1.0 / (ROPE_BASE ** (jnp.arange(0, HEAD_DIM, 2, dtype=jnp.float32)
                                    / HEAD_DIM))
    freqs = positions.astype(jnp.float32)[:, None] * inv_freq[None, :]
    cos = jnp.cos(freqs)
    sin = jnp.sin(freqs)

    new_caches = []
    for li in range(NUM_LAYERS):
        lp = params["layers"][li]
        h, k_new, v_new = decoder_layer(h, cos, sin, lp)
        # Dense prefill cache in lane-dense layout [T, NUM_KV_HEADS*HEAD_DIM],
        # written directly from the fused layer kernel (no .at[].set / transposes).
        # TODO(synk): vLLM's paged KV cache (block tables / slot mapping) and
        #             decode-time cache reads are not modeled.
        new_caches.append((k_new, v_new))

    # Greedy next-token for the last position only: final RMSNorm + lm_head fused,
    # computing a single row of logits instead of T rows.
    # TODO(synk): vLLM Sampler (temperature/top-p/top-k) replaced by greedy argmax
    #             over the real (unpadded) vocab.
    logits_last = final_norm_lm_head(h[T - 1:T], params["final_ln"],
                                     params["lm_head_t"])     # [1, VOCAB_PAD]
    next_token = jnp.argmax(logits_last[0, :VOCAB])
    return next_token, logits_last, new_caches


if __name__ == "__main__":
    key = jax.random.PRNGKey(0)
    params = init_params(key)

    input_ids = jax.random.randint(jax.random.PRNGKey(1), (SEQ,), 0, VOCAB,
                                   dtype=jnp.int32)
    positions = jnp.arange(SEQ, dtype=jnp.int32)
    kv_caches = [(jnp.zeros((SEQ, KV_SIZE), jnp.bfloat16),
                  jnp.zeros((SEQ, KV_SIZE), jnp.bfloat16))
                 for _ in range(NUM_LAYERS)]

    fwd = jax.jit(llama_forward)
    next_token, logits_last, new_caches = fwd(params, input_ids, positions, kv_caches)
    jax.block_until_ready(next_token)
    jax.block_until_ready(logits_last)

    assert logits_last.shape == (1, VOCAB_PAD)
    assert new_caches[0][0].shape == (SEQ, KV_SIZE)
    assert 0 <= int(next_token) < VOCAB
    print("KERNEL_OK")
</pallas_src>

<mosaic_0001>
module attributes {stable_mosaic.version = 11 : i64} {
  func.func @_decoder_layer_kernel(%arg0: memref<8x256xf32, #tpu.memory_space<vmem>>, %arg1: memref<8x32xf32, #tpu.memory_space<vmem>>, %arg2: memref<8x32xf32, #tpu.memory_space<vmem>>, %arg3: memref<1x256xf32, #tpu.memory_space<vmem>>, %arg4: memref<1x256xf32, #tpu.memory_space<vmem>>, %arg5: memref<256x512xbf16, #tpu.memory_space<vmem>>, %arg6: memref<256x256xbf16, #tpu.memory_space<vmem>>, %arg7: memref<256x1024xbf16, #tpu.memory_space<vmem>>, %arg8: memref<512x256xbf16, #tpu.memory_space<vmem>>, %arg9: memref<8x256xf32, #tpu.memory_space<vmem>>, %arg10: memref<8x128xbf16, #tpu.memory_space<vmem>>, %arg11: memref<8x128xbf16, #tpu.memory_space<vmem>>) attributes {dimension_semantics = [], scalar_prefetch = 0 : i64, scratch_operands = 0 : i64, tpu.core_type = #tpu.core_type<tc>} {
    %c0 = arith.constant 0 : index
    %c0_0 = arith.constant 0 : index
    %0 = vector.load %arg0[%c0, %c0_0] : memref<8x256xf32, #tpu.memory_space<vmem>>, vector<8x256xf32>
    %1 = arith.mulf %0, %0 : vector<8x256xf32>
    %cst = arith.constant dense<0.000000e+00> : vector<8xf32>
    %2 = vector.multi_reduction <add>, %1, %cst [1] : vector<8x256xf32> to vector<8xf32>
    %3 = vector.shape_cast %2 : vector<8xf32> to vector<8x1xf32>
    %cst_1 = arith.constant 2.560000e+02 : f32
    %4 = vector.broadcast %cst_1 : f32 to vector<8x1xf32>
    %5 = arith.divf %3, %4 : vector<8x1xf32>
    %cst_2 = arith.constant 9.99999997E-7 : f32
    %6 = vector.broadcast %cst_2 : f32 to vector<8x1xf32>
    %7 = arith.addf %5, %6 : vector<8x1xf32>
    %8 = math.rsqrt %7 : vector<8x1xf32>
    %9 = vector.broadcast %8 : vector<8x1xf32> to vector<8x256xf32>
    %10 = arith.mulf %0, %9 : vector<8x256xf32>
    %c0_3 = arith.constant 0 : index
    %c0_4 = arith.constant 0 : index
    %11 = vector.load %arg3[%c0_3, %c0_4] : memref<1x256xf32, #tpu.memory_space<vmem>>, vector<1x256xf32>
    %12 = vector.broadcast %11 : vector<1x256xf32> to vector<8x256xf32>
    %13 = arith.mulf %10, %12 : vector<8x256xf32>
    %14 = arith.truncf %13 : vector<8x256xf32> to vector<8x256xbf16>
    %c0_5 = arith.constant 0 : index
    %c0_6 = arith.constant 0 : index
    %15 = vector.load %arg5[%c0_5, %c0_6] : memref<256x512xbf16, #tpu.memory_space<vmem>>, vector<256x512xbf16>
    %cst_7 = arith.constant dense<0.000000e+00> : vector<8x512xf32>
    %16 = tpu.matmul %14, %15, %cst_7 {dimension_numbers = #tpu.dot_dimension_numbers<[1], [0], [0], [1], [0, 0, 1, 1], [], []>} : vector<8x256xbf16>, vector<256x512xbf16>, vector<8x512xf32> -> vector<8x512xf32>
    %c0_8 = arith.constant 0 : index
    %c0_9 = arith.constant 0 : index
    %17 = vector.load %arg1[%c0_8, %c0_9] : memref<8x32xf32, #tpu.memory_space<vmem>>, vector<8x32xf32>
    %c0_10 = arith.constant 0 : index
    %c0_11 = arith.constant 0 : index
    %18 = vector.load %arg2[%c0_10, %c0_11] : memref<8x32xf32, #tpu.memory_space<vmem>>, vector<8x32xf32>
    %19 = tpu.iota {dimensions = array<i32: 0>} : vector<8x8xi32>
    %20 = tpu.iota {dimensions = array<i32: 1>} : vector<8x8xi32>
    %21 = arith.cmpi sle, %20, %19 : vector<8x8xi32>
    %22 = tpu.concatenate %21, %21 in 0 : vector<8x8xi1>, vector<8x8xi1> -> vector<16x8xi1>
    %23 = vector.extract_strided_slice %16 {offsets = [0, 256], sizes = [8, 64], strides = [1, 1]} : vector<8x512xf32> to vector<8x64xf32>
    %24 = vector.extract_strided_slice %23 {offsets = [0, 0], sizes = [8, 32], strides = [1, 1]} : vector<8x64xf32> to vector<8x32xf32>
    %25 = vector.extract_strided_slice %23 {offsets = [0, 32], sizes = [8, 32], strides = [1, 1]} : vector<8x64xf32> to vector<8x32xf32>
    %26 = arith.mulf %24, %17 : vector<8x32xf32>
    %27 = arith.mulf %25, %18 : vector<8x32xf32>
    %28 = arith.subf %26, %27 : vector<8x32xf32>
    %29 = arith.mulf %25, %17 : vector<8x32xf32>
    %30 = arith.mulf %24, %18 : vector<8x32xf32>
    %31 = arith.addf %29, %30 : vector<8x32xf32>
    %32 = tpu.concatenate %28, %31 in 1 : vector<8x32xf32>, vector<8x32xf32> -> vector<8x64xf32>
    %33 = vector.extract_strided_slice %16 {offsets = [0, 384], sizes = [8, 64], strides = [1, 1]} : vector<8x512xf32> to vector<8x64xf32>
    %34 = vector.extract_strided_slice %16 {offsets = [0, 0], sizes = [8, 64], strides = [1, 1]} : vector<8x512xf32> to vector<8x64xf32>
    %35 = vector.extract_strided_slice %34 {offsets = [0, 0], sizes = [8, 32], strides = [1, 1]} : vector<8x64xf32> to vector<8x32xf32>
    %36 = vector.extract_strided_slice %34 {offsets = [0, 32], sizes = [8, 32], strides = [1, 1]} : vector<8x64xf32> to vector<8x32xf32>
    %37 = arith.mulf %35, %17 : vector<8x32xf32>
    %38 = arith.mulf %36, %18 : vector<8x32xf32>
    %39 = arith.subf %37, %38 : vector<8x32xf32>
    %40 = arith.mulf %36, %17 : vector<8x32xf32>
    %41 = arith.mulf %35, %18 : vector<8x32xf32>
    %42 = arith.addf %40, %41 : vector<8x32xf32>
    %43 = tpu.concatenate %39, %42 in 1 : vector<8x32xf32>, vector<8x32xf32> -> vector<8x64xf32>
    %44 = vector.extract_strided_slice %16 {offsets = [0, 64], sizes = [8, 64], strides = [1, 1]} : vector<8x512xf32> to vector<8x64xf32>
    %45 = vector.extract_strided_slice %44 {offsets = [0, 0], sizes = [8, 32], strides = [1, 1]} : vector<8x64xf32> to vector<8x32xf32>
    %46 = vector.extract_strided_slice %44 {offsets = [0, 32], sizes = [8, 32], strides = [1, 1]} : vector<8x64xf32> to vector<8x32xf32>
    %47 = arith.mulf %45, %17 : vector<8x32xf32>
    %48 = arith.mulf %46, %18 : vector<8x32xf32>
    %49 = arith.subf %47, %48 : vector<8x32xf32>
    %50 = arith.mulf %46, %17 : vector<8x32xf32>
    %51 = arith.mulf %45, %18 : vector<8x32xf32>
    %52 = arith.addf %50, %51 : vector<8x32xf32>
    %53 = tpu.concatenate %49, %52 in 1 : vector<8x32xf32>, vector<8x32xf32> -> vector<8x64xf32>
    %54 = tpu.concatenate %43, %53 in 0 : vector<8x64xf32>, vector<8x64xf32> -> vector<16x64xf32>
    %cst_12 = arith.constant dense<0.000000e+00> : vector<16x8xf32>
    %55 = tpu.matmul %54, %32, %cst_12 {dimension_numbers = #tpu.dot_dimension_numbers<[1], [1], [0], [0], [0, 0, 1, 0], [], []>} : vector<16x64xf32>, vector<8x64xf32>, vector<16x8xf32> -> vector<16x8xf32>
    %cst_13 = arith.constant 1.250000e-01 : f32
    %56 = vector.broadcast %cst_13 : f32 to vector<16x8xf32>
    %57 = arith.mulf %55, %56 : vector<16x8xf32>
    %cst_14 = arith.constant -1.000000e+30 : f32
    %58 = vector.broadcast %cst_14 : f32 to vector<16x8xf32>
    %59 = arith.select %22, %57, %58 : vector<16x8xi1>, vector<16x8xf32>
    %cst_15 = arith.constant dense<0xFF800000> : vector<16xf32>
    %60 = vector.multi_reduction <maximumf>, %59, %cst_15 [1] : vector<16x8xf32> to vector<16xf32>
    %61 = vector.shape_cast %60 : vector<16xf32> to vector<16x1xf32>
    %62 = vector.broadcast %61 : vector<16x1xf32> to vector<16x8xf32>
    %63 = arith.subf %59, %62 : vector<16x8xf32>
    %64 = math.exp %63 : vector<16x8xf32>
    %cst_16 = arith.constant dense<0.000000e+00> : vector<16xf32>
    %65 = vector.multi_reduction <add>, %64, %cst_16 [1] : vector<16x8xf32> to vector<16xf32>
    %66 = vector.shape_cast %65 : vector<16xf32> to vector<16x1xf32>
    %67 = tpu.reciprocal %66 {approx = true} : vector<16x1xf32> -> vector<16x1xf32>
    %68 = vector.broadcast %67 : vector<16x1xf32> to vector<16x8xf32>
    %69 = arith.mulf %64, %68 : vector<16x8xf32>
    %cst_17 = arith.constant dense<0.000000e+00> : vector<16x64xf32>
    %70 = tpu.matmul %69, %33, %cst_17 {dimension_numbers = #tpu.dot_dimension_numbers<[1], [0], [0], [1], [0, 0, 1, 1], [], []>} : vector<16x8xf32>, vector<8x64xf32>, vector<16x64xf32> -> vector<16x64xf32>
    %71 = vector.extract_strided_slice %70 {offsets = [0, 0], sizes = [8, 64], strides = [1, 1]} : vector<16x64xf32> to vector<8x64xf32>
    %72 = vector.extract_strided_slice %70 {offsets = [8, 0], sizes = [8, 64], strides = [1, 1]} : vector<16x64xf32> to vector<8x64xf32>
    %73 = vector.extract_strided_slice %16 {offsets = [0, 320], sizes = [8, 64], strides = [1, 1]} : vector<8x512xf32> to vector<8x64xf32>
    %74 = vector.extract_strided_slice %73 {offsets = [0, 0], sizes = [8, 32], strides = [1, 1]} : vector<8x64xf32> to vector<8x32xf32>
    %75 = vector.extract_strided_slice %73 {offsets = [0, 32], sizes = [8, 32], strides = [1, 1]} : vector<8x64xf32> to vector<8x32xf32>
    %76 = arith.mulf %74, %17 : vector<8x32xf32>
    %77 = arith.mulf %75, %18 : vector<8x32xf32>
    %78 = arith.subf %76, %77 : vector<8x32xf32>
    %79 = arith.mulf %75, %17 : vector<8x32xf32>
    %80 = arith.mulf %74, %18 : vector<8x32xf32>
    %81 = arith.addf %79, %80 : vector<8x32xf32>
    %82 = tpu.concatenate %78, %81 in 1 : vector<8x32xf32>, vector<8x32xf32> -> vector<8x64xf32>
    %83 = vector.extract_strided_slice %16 {offsets = [0, 448], sizes = [8, 64], strides = [1, 1]} : vector<8x512xf32> to vector<8x64xf32>
    %84 = vector.extract_strided_slice %16 {offsets = [0, 128], sizes = [8, 64], strides = [1, 1]} : vector<8x512xf32> to vector<8x64xf32>
    %85 = vector.extract_strided_slice %84 {offsets = [0, 0], sizes = [8, 32], strides = [1, 1]} : vector<8x64xf32> to vector<8x32xf32>
    %86 = vector.extract_strided_slice %84 {offsets = [0, 32], sizes = [8, 32], strides = [1, 1]} : vector<8x64xf32> to vector<8x32xf32>
    %87 = arith.mulf %85, %17 : vector<8x32xf32>
    %88 = arith.mulf %86, %18 : vector<8x32xf32>
    %89 = arith.subf %87, %88 : vector<8x32xf32>
    %90 = arith.mulf %86, %17 : vector<8x32xf32>
    %91 = arith.mulf %85, %18 : vector<8x32xf32>
    %92 = arith.addf %90, %91 : vector<8x32xf32>
    %93 = tpu.concatenate %89, %92 in 1 : vector<8x32xf32>, vector<8x32xf32> -> vector<8x64xf32>
    %94 = vector.extract_strided_slice %16 {offsets = [0, 192], sizes = [8, 64], strides = [1, 1]} : vector<8x512xf32> to vector<8x64xf32>
    %95 = vector.extract_strided_slice %94 {offsets = [0, 0], sizes = [8, 32], strides = [1, 1]} : vector<8x64xf32> to vector<8x32xf32>
    %96 = vector.extract_strided_slice %94 {offsets = [0, 32], sizes = [8, 32], strides = [1, 1]} : vector<8x64xf32> to vector<8x32xf32>
    %97 = arith.mulf %95, %17 : vector<8x32xf32>
    %98 = arith.mulf %96, %18 : vector<8x32xf32>
    %99 = arith.subf %97, %98 : vector<8x32xf32>
    %100 = arith.mulf %96, %17 : vector<8x32xf32>
    %101 = arith.mulf %95, %18 : vector<8x32xf32>
    %102 = arith.addf %100, %101 : vector<8x32xf32>
    %103 = tpu.concatenate %99, %102 in 1 : vector<8x32xf32>, vector<8x32xf32> -> vector<8x64xf32>
    %104 = tpu.concatenate %93, %103 in 0 : vector<8x64xf32>, vector<8x64xf32> -> vector<16x64xf32>
    %cst_18 = arith.constant dense<0.000000e+00> : vector<16x8xf32>
    %105 = tpu.matmul %104, %82, %cst_18 {dimension_numbers = #tpu.dot_dimension_numbers<[1], [1], [0], [0], [0, 0, 1, 0], [], []>} : vector<16x64xf32>, vector<8x64xf32>, vector<16x8xf32> -> vector<16x8xf32>
    %cst_19 = arith.constant 1.250000e-01 : f32
    %106 = vector.broadcast %cst_19 : f32 to vector<16x8xf32>
    %107 = arith.mulf %105, %106 : vector<16x8xf32>
    %cst_20 = arith.constant -1.000000e+30 : f32
    %108 = vector.broadcast %cst_20 : f32 to vector<16x8xf32>
    %109 = arith.select %22, %107, %108 : vector<16x8xi1>, vector<16x8xf32>
    %cst_21 = arith.constant dense<0xFF800000> : vector<16xf32>
    %110 = vector.multi_reduction <maximumf>, %109, %cst_21 [1] : vector<16x8xf32> to vector<16xf32>
    %111 = vector.shape_cast %110 : vector<16xf32> to vector<16x1xf32>
    %112 = vector.broadcast %111 : vector<16x1xf32> to vector<16x8xf32>
    %113 = arith.subf %109, %112 : vector<16x8xf32>
    %114 = math.exp %113 : vector<16x8xf32>
    %cst_22 = arith.constant dense<0.000000e+00> : vector<16xf32>
    %115 = vector.multi_reduction <add>, %114, %cst_22 [1] : vector<16x8xf32> to vector<16xf32>
    %116 = vector.shape_cast %115 : vector<16xf32> to vector<16x1xf32>
    %117 = tpu.reciprocal %116 {approx = true} : vector<16x1xf32> -> vector<16x1xf32>
    %118 = vector.broadcast %117 : vector<16x1xf32> to vector<16x8xf32>
    %119 = arith.mulf %114, %118 : vector<16x8xf32>
    %cst_23 = arith.constant dense<0.000000e+00> : vector<16x64xf32>
    %120 = tpu.matmul %119, %83, %cst_23 {dimension_numbers = #tpu.dot_dimension_numbers<[1], [0], [0], [1], [0, 0, 1, 1], [], []>} : vector<16x8xf32>, vector<8x64xf32>, vector<16x64xf32> -> vector<16x64xf32>
    %121 = vector.extract_strided_slice %120 {offsets = [0, 0], sizes = [8, 64], strides = [1, 1]} : vector<16x64xf32> to vector<8x64xf32>
    %122 = vector.extract_strided_slice %120 {offsets = [8, 0], sizes = [8, 64], strides = [1, 1]} : vector<16x64xf32> to vector<8x64xf32>
    %123 = tpu.concatenate %71, %72, %121, %122 in 1 : vector<8x64xf32>, vector<8x64xf32>, vector<8x64xf32>, vector<8x64xf32> -> vector<8x256xf32>
    %124 = tpu.concatenate %32, %82 in 1 : vector<8x64xf32>, vector<8x64xf32> -> vector<8x128xf32>
    %125 = arith.truncf %124 : vector<8x128xf32> to vector<8x128xbf16>
    %c0_24 = arith.constant 0 : index
    %c0_25 = arith.constant 0 : index
    %126 = vector.load %arg10[%c0_24, %c0_25] : memref<8x128xbf16, #tpu.memory_space<vmem>>, vector<8x128xbf16>
    tpu.vector_store %arg10[%c0_24, %c0_25], %125 {strides = array<i32>} : memref<8x128xbf16, #tpu.memory_space<vmem>>, vector<8x128xbf16>,
    %127 = tpu.concatenate %33, %83 in 1 : vector<8x64xf32>, vector<8x64xf32> -> vector<8x128xf32>
    %128 = arith.truncf %127 : vector<8x128xf32> to vector<8x128xbf16>
    %c0_26 = arith.constant 0 : index
    %c0_27 = arith.constant 0 : index
    %129 = vector.load %arg11[%c0_26, %c0_27] : memref<8x128xbf16, #tpu.memory_space<vmem>>, vector<8x128xbf16>
    tpu.vector_store %arg11[%c0_26, %c0_27], %128 {strides = array<i32>} : memref<8x128xbf16, #tpu.memory_space<vmem>>, vector<8x128xbf16>,
    %130 = arith.truncf %123 : vector<8x256xf32> to vector<8x256xbf16>
    %c0_28 = arith.constant 0 : index
    %c0_29 = arith.constant 0 : index
    %131 = vector.load %arg6[%c0_28, %c0_29] : memref<256x256xbf16, #tpu.memory_space<vmem>>, vector<256x256xbf16>
    %cst_30 = arith.constant dense<0.000000e+00> : vector<8x256xf32>
    %132 = tpu.matmul %130, %131, %cst_30 {dimension_numbers = #tpu.dot_dimension_numbers<[1], [0], [0], [1], [0, 0, 1, 1], [], []>} : vector<8x256xbf16>, vector<256x256xbf16>, vector<8x256xf32> -> vector<8x256xf32>
    %133 = arith.addf %0, %132 : vector<8x256xf32>
    %134 = arith.mulf %133, %133 : vector<8x256xf32>
    %cst_31 = arith.constant dense<0.000000e+00> : vector<8xf32>
    %135 = vector.multi_reduction <add>, %134, %cst_31 [1] : vector<8x256xf32> to vector<8xf32>
    %136 = vector.shape_cast %135 : vector<8xf32> to vector<8x1xf32>
    %cst_32 = arith.constant 2.560000e+02 : f32
    %137 = vector.broadcast %cst_32 : f32 to vector<8x1xf32>
    %138 = arith.divf %136, %137 : vector<8x1xf32>
    %cst_33 = arith.constant 9.99999997E-7 : f32
    %139 = vector.broadcast %cst_33 : f32 to vector<8x1xf32>
    %140 = arith.addf %138, %139 : vector<8x1xf32>
    %141 = math.rsqrt %140 : vector<8x1xf32>
    %142 = vector.broadcast %141 : vector<8x1xf32> to vector<8x256xf32>
    %143 = arith.mulf %133, %142 : vector<8x256xf32>
    %c0_34 = arith.constant 0 : index
    %c0_35 = arith.constant 0 : index
    %144 = vector.load %arg4[%c0_34, %c0_35] : memref<1x256xf32, #tpu.memory_space<vmem>>, vector<1x256xf32>
    %145 = vector.broadcast %144 : vector<1x256xf32> to vector<8x256xf32>
    %146 = arith.mulf %143, %145 : vector<8x256xf32>
    %147 = arith.truncf %146 : vector<8x256xf32> to vector<8x256xbf16>
    %c0_36 = arith.constant 0 : index
    %c0_37 = arith.constant 0 : index
    %148 = vector.load %arg7[%c0_36, %c0_37] : memref<256x1024xbf16, #tpu.memory_space<vmem>>, vector<256x1024xbf16>
    %cst_38 = arith.constant dense<0.000000e+00> : vector<8x1024xf32>
    %149 = tpu.matmul %147, %148, %cst_38 {dimension_numbers = #tpu.dot_dimension_numbers<[1], [0], [0], [1], [0, 0, 1, 1], [], []>} : vector<8x256xbf16>, vector<256x1024xbf16>, vector<8x1024xf32> -> vector<8x1024xf32>
    %150 = vector.extract_strided_slice %149 {offsets = [0, 0], sizes = [8, 512], strides = [1, 1]} : vector<8x1024xf32> to vector<8x512xf32>
    %151 = vector.extract_strided_slice %149 {offsets = [0, 512], sizes = [8, 512], strides = [1, 1]} : vector<8x1024xf32> to vector<8x512xf32>
    %152 = arith.negf %150 : vector<8x512xf32>
    %153 = math.exp %152 : vector<8x512xf32>
    %cst_39 = arith.constant 1.000000e+00 : f32
    %154 = vector.broadcast %cst_39 : f32 to vector<8x512xf32>
    %155 = arith.addf %154, %153 : vector<8x512xf32>
    %156 = arith.divf %154, %155 : vector<8x512xf32>
    %157 = arith.mulf %150, %156 : vector<8x512xf32>
    %158 = arith.mulf %157, %151 : vector<8x512xf32>
    %159 = arith.truncf %158 : vector<8x512xf32> to vector<8x512xbf16>
    %c0_40 = arith.constant 0 : index
    %c0_41 = arith.constant 0 : index
    %160 = vector.load %arg8[%c0_40, %c0_41] : memref<512x256xbf16, #tpu.memory_space<vmem>>, vector<512x256xbf16>
    %cst_42 = arith.constant dense<0.000000e+00> : vector<8x256xf32>
    %161 = tpu.matmul %159, %160, %cst_42 {dimension_numbers = #tpu.dot_dimension_numbers<[1], [0], [0], [1], [0, 0, 1, 1], [], []>} : vector<8x512xbf16>, vector<512x256xbf16>, vector<8x256xf32> -> vector<8x256xf32>
    %162 = arith.addf %133, %161 : vector<8x256xf32>
    %c0_43 = arith.constant 0 : index
    %c0_44 = arith.constant 0 : index
    %163 = vector.load %arg9[%c0_43, %c0_44] : memref<8x256xf32, #tpu.memory_space<vmem>>, vector<8x256xf32>
    tpu.vector_store %arg9[%c0_43, %c0_44], %162 {strides = array<i32>} : memref<8x256xf32, #tpu.memory_space<vmem>>, vector<8x256xf32>,
    return
  }
}

module attributes {stable_mosaic.version = 11 : i64} {
  func.func @_final_norm_lm_head_kernel(%arg0: memref<1x256xf32, #tpu.memory_space<vmem>>, %arg1: memref<1x256xf32, #tpu.memory_space<vmem>>, %arg2: memref<256x1024xbf16, #tpu.memory_space<vmem>>, %arg3: memref<1x1024xf32, #tpu.memory_space<vmem>>) attributes {dimension_semantics = [], scalar_prefetch = 0 : i64, scratch_operands = 0 : i64, tpu.core_type = #tpu.core_type<tc>} {
    %c0 = arith.constant 0 : index
    %c0_0 = arith.constant 0 : index
    %0 = vector.load %arg0[%c0, %c0_0] : memref<1x256xf32, #tpu.memory_space<vmem>>, vector<1x256xf32>
    %1 = arith.mulf %0, %0 : vector<1x256xf32>
    %cst = arith.constant dense<0.000000e+00> : vector<1xf32>
    %2 = vector.multi_reduction <add>, %1, %cst [1] : vector<1x256xf32> to vector<1xf32>
    %3 = vector.shape_cast %2 : vector<1xf32> to vector<1x1xf32>
    %cst_1 = arith.constant 2.560000e+02 : f32
    %4 = vector.broadcast %cst_1 : f32 to vector<1x1xf32>
    %5 = arith.divf %3, %4 : vector<1x1xf32>
    %cst_2 = arith.constant 9.99999997E-7 : f32
    %6 = vector.broadcast %cst_2 : f32 to vector<1x1xf32>
    %7 = arith.addf %5, %6 : vector<1x1xf32>
    %8 = math.rsqrt %7 : vector<1x1xf32>
    %9 = vector.broadcast %8 : vector<1x1xf32> to vector<1x256xf32>
    %10 = arith.mulf %0, %9 : vector<1x256xf32>
    %c0_3 = arith.constant 0 : index
    %c0_4 = arith.constant 0 : index
    %11 = vector.load %arg1[%c0_3, %c0_4] : memref<1x256xf32, #tpu.memory_space<vmem>>, vector<1x256xf32>
    %12 = arith.mulf %10, %11 : vector<1x256xf32>
    %13 = arith.truncf %12 : vector<1x256xf32> to vector<1x256xbf16>
    %c0_5 = arith.constant 0 : index
    %c0_6 = arith.constant 0 : index
    %14 = vector.load %arg2[%c0_5, %c0_6] : memref<256x1024xbf16, #tpu.memory_space<vmem>>, vector<256x1024xbf16>
    %cst_7 = arith.constant dense<0.000000e+00> : vector<1x1024xf32>
    %15 = tpu.matmul %13, %14, %cst_7 {dimension_numbers = #tpu.dot_dimension_numbers<[1], [0], [0], [1], [0, 0, 1, 1], [], []>} : vector<1x256xbf16>, vector<256x1024xbf16>, vector<1x1024xf32> -> vector<1x1024xf32>
    %c0_8 = arith.constant 0 : index
    %c0_9 = arith.constant 0 : index
    %16 = vector.load %arg3[%c0_8, %c0_9] : memref<1x1024xf32, #tpu.memory_space<vmem>>, vector<1x1024xf32>
    tpu.vector_store %arg3[%c0_8, %c0_9], %15 {strides = array<i32>} : memref<1x1024xf32, #tpu.memory_space<vmem>>, vector<1x1024xf32>,
    return
  }
}

</mosaic_0001>

<bundles_post_ra>
// kernel: llama_forward.5
= control target key start
LH: loop header
LB: loop body
LE: loop exit
PB: predicated region body
PF: predicated region fallthrough
CT: control target
= control target key end

     0   :  { %8 = vsyncpa [#allocation3], 0  ;;  %s1760_s15 = smov [#allocation2]   ;;  %s1761_s17 = smov 512   ;;  %s1831_s0 = inlined_call_operand.vmem [shape: f32[1,256], index: 0, kind: input, shape index: {}]   ;;  %s1832_s1 = inlined_call_operand.vmem [shape: f32[1,256], index: 1, kind: input, shape index: {}]   ;;  %s1833_s2 = inlined_call_operand.hbm [shape: bf16[256,1024], index: 2, kind: input, shape index: {}]   ;;  %s1834_s3 = inlined_call_operand.vmem [shape: f32[1,1024], index: 3, kind: output, shape index: {}]  }
   0x1   :  { %s17_s14 = sshll.u32 %s1833_s2, 4  ;;  %s19_s16 = sshll.u32 %s1760_s15, 4  ;;  %s18_s14 = int_to_ptr.hbm [resolvable:$true] %s17_s14  ;;  %s20_s16 = int_to_ptr.vmem [resolvable:$true] %s19_s16 }
   0x2   :  { %s1762_s18 = smov 32  }
   0x3   :  { %25 = dma.hbm_to_vmem [thread:$0]  %s18_s14, 16384, %s20_s16, [#allocation3], %s1761_s17, %s1761_s17, %s1762_s18  }
   0x4   :  { %1758 = dma.done.wait [#allocation3], 16384  }
   0x5   :  { %1759 = vsyncadd [#allocation3], 4294950912  ;;  %vm37_vm0 = vcmask 1040384   ;;  %v1790_v0 = vld [vmem:[%s1831_s0] sm:$0x3]  ;;  %vm1067_vm5 = vcmask 1042434  }
   0x6   :  { %v1312_v1 = vld [vmem:[#allocation2 + $0x1c0] sm:$0xf]  ;;  %v31_v3 = vmul.f32 %v1790_v0, %v1790_v0  ;;  %v1654_v7 = vld [vmem:[#allocation2 + $0x1c4] sm:$0xf]  ;;  %vm1069_vm6 = vcmask 1041408   ;;  %vm1071_vm7 = vcmask 1044484  }
   0x7   :  { %v1658_v2 = vld [vmem:[#allocation2 + $0x1dc] sm:$0xf0]  ;;  %v1314_v9 = vld [vmem:[#allocation2 + $0x1e0] sm:$0xf0]  ;;  %vm1073_vm8 = vcmask 1046534   ;;  %vm1075_vm9 = vcmask 1045508  }
   0x8   :  { %v1313_v4 = vor.u32 %v1658_v2, %v1312_v1  ;;  %v1568_v5 = vld [vmem:[#allocation2 + $0x3c0] sm:$0xf]  ;;  %v1718_v10 = vld [vmem:[#allocation2 + $0x3c4] sm:$0xf]  ;;  %v33_v12 = vperm.slane %v31_v3, 0  ;;  %v34_v13 = vperm.slane %v31_v3, 1  ;;  %v1317_v14 = vor.u32 %v1654_v7, %v1314_v9 }
   0x9   :  { %v1722_v6 = vld [vmem:[#allocation2 + $0x3dc] sm:$0xf0]  ;;  %v1570_v11 = vld [vmem:[#allocation2 + $0x3e0] sm:$0xf0]  ;;  %vm1077_vm10 = vcmask 1043456  }
   0xa   :  { %v1569_v8 = vor.u32 %v1722_v6, %v1568_v5  ;;  %843 = vmatpush.bf16.msra.mxu0 %v1313_v4  ;;  %v1573_v15 = vor.u32 %v1718_v10, %v1570_v11  ;;  %v1280_v16 = vld [vmem:[#allocation2 + $0x180] sm:$0xf]  ;;  %v1646_v21 = vld [vmem:[#allocation2 + $0x184] sm:$0xf]  ;;  %v38_v22 = vsel %vm37_vm0, %v33_v12, 0.0  ;;  %v39_v23 = vsel %vm37_vm0, %v34_v13, 0.0  ;;  %869 = vmatpush.bf16.msra.mxu2 %v1317_v14 }
   0xb   :  { %v1650_v17 = vld [vmem:[#allocation2 + $0x19c] sm:$0xf0]  ;;  %v1282_v25 = vld [vmem:[#allocation2 + $0x1a0] sm:$0xf0]  ;;  %v40_v27 = vadd.f32 %v39_v23, %v38_v22 }
   0xc   :  { %856 = vmatpush.bf16.msra.mxu1 %v1569_v8  ;;  %v1281_v18 = vor.u32 %v1650_v17, %v1280_v16  ;;  %v1536_v19 = vld [vmem:[#allocation2 + $0x380] sm:$0xf]  ;;  %882 = vmatpush.bf16.msra.mxu3 %v1573_v15  ;;  %v1710_v26 = vld [vmem:[#allocation2 + $0x384] sm:$0xf]  ;;  %v1285_v28 = vor.u32 %v1646_v21, %v1282_v25 }
   0xd   :  { %v1714_v20 = vld [vmem:[#allocation2 + $0x39c] sm:$0xf0]  ;;  %v1538_v29 = vld [vmem:[#allocation2 + $0x3a0] sm:$0xf0]  ;;  %41 = vadd.xlane.f32.xlu0 %v40_v27 }
   0xe   :  { %v1537_v24 = vor.u32 %v1714_v20, %v1536_v19  ;;  %v1248_v30 = vld [vmem:[#allocation2 + $0x140] sm:$0xf]  ;;  %844 = vmatpush.bf16.msra.mxu0 %v1281_v18  ;;  %v1541_v32 = vor.u32 %v1710_v26, %v1538_v29  ;;  %v1638_v36 = vld [vmem:[#allocation2 + $0x144] sm:$0xf]  ;;  %870 = vmatpush.bf16.msra.mxu2 %v1285_v28 }
   0xf   :  { %v1642_v31 = vld [vmem:[#allocation2 + $0x15c] sm:$0xf0]  ;;  %v1250_v38 = vld [vmem:[#allocation2 + $0x160] sm:$0xf0] }
  0x10   :  { %v1249_v33 = vor.u32 %v1642_v31, %v1248_v30  ;;  %v1504_v34 = vld [vmem:[#allocation2 + $0x340] sm:$0xf]  ;;  %857 = vmatpush.bf16.msra.mxu1 %v1537_v24  ;;  %v1702_v39 = vld [vmem:[#allocation2 + $0x344] sm:$0xf]  ;;  %883 = vmatpush.bf16.msra.mxu3 %v1541_v32  ;;  %v1253_v41 = vor.u32 %v1638_v36, %v1250_v38 }
  0x11   :  { %v1706_v35 = vld [vmem:[#allocation2 + $0x35c] sm:$0xf0]  ;;  %v1506_v40 = vld [vmem:[#allocation2 + $0x360] sm:$0xf0] }
  0x12   :  { %v1505_v37 = vor.u32 %v1706_v35, %v1504_v34  ;;  %v1509_v42 = vor.u32 %v1702_v39, %v1506_v40  ;;  %v1216_v43 = vld [vmem:[#allocation2 + $0x100] sm:$0xf]  ;;  %v1630_v47 = vld [vmem:[#allocation2 + $0x104] sm:$0xf]  ;;  %845 = vmatpush.bf16.msra.mxu0 %v1249_v33  ;;  %871 = vmatpush.bf16.msra.mxu2 %v1253_v41  ;;  %v1320_v39 = vld [vmem:[#allocation2 + $0x1c8] sm:$0xf] }
  0x13   :  { %v1634_v44 = vld [vmem:[#allocation2 + $0x11c] sm:$0xf0]  ;;  %v1218_v48 = vld [vmem:[#allocation2 + $0x120] sm:$0xf0]  ;;  %v1763_v40 = vmov 256.0  }
  0x14   :  { %v1472_v45 = vld [vmem:[#allocation2 + $0x300] sm:$0xf]  ;;  %v1217_v49 = vor.u32 %v1634_v44, %v1216_v43  ;;  %v1694_v50 = vld [vmem:[#allocation2 + $0x304] sm:$0xf]  ;;  %858 = vmatpush.bf16.msra.mxu1 %v1505_v37  ;;  %884 = vmatpush.bf16.msra.mxu3 %v1509_v42  ;;  %v1221_v55 = vor.u32 %v1630_v47, %v1218_v48  ;;  %1730 = vrcp.f32 %v1763_v40  ;;  %v1659_v42 = vld [vmem:[#allocation2 + $0x1e4] sm:$0xf0] }
  0x15   :  { %v1698_v46 = vld [vmem:[#allocation2 + $0x31c] sm:$0xf0]  ;;  %v1474_v51 = vld [vmem:[#allocation2 + $0x320] sm:$0xf0]  ;;  %v1576_v43 = vld [vmem:[#allocation2 + $0x3c8] sm:$0xf] }
  0x16   :  { %v1473_v52 = vor.u32 %v1698_v46, %v1472_v45  ;;  %v1184_v53 = vld [vmem:[#allocation2 + $0xc0] sm:$0xf]  ;;  %v1477_v56 = vor.u32 %v1694_v50, %v1474_v51  ;;  %v1622_v59 = vld [vmem:[#allocation2 + $0xc4] sm:$0xf]  ;;  %846 = vmatpush.bf16.msra.mxu0 %v1217_v49  ;;  %872 = vmatpush.bf16.msra.mxu2 %v1221_v55  ;;  %v1723_v44 = vld [vmem:[#allocation2 + $0x3e4] sm:$0xf0]  ;;  %v1321_v45 = vor.u32 %v1659_v42, %v1320_v39 }
  0x17   :  { %v1626_v54 = vld [vmem:[#allocation2 + $0xdc] sm:$0xf0]  ;;  %v1186_v60 = vld [vmem:[#allocation2 + $0xe0] sm:$0xf0]  ;;  %v1577_v46 = vor.u32 %v1723_v44, %v1576_v43  ;;  %v1655_v47 = vld [vmem:[#allocation2 + $0x1cc] sm:$0xf] }
  0x18   :  { %v1440_v57 = vld [vmem:[#allocation2 + $0x2c0] sm:$0xf]  ;;  %v1686_v61 = vld [vmem:[#allocation2 + $0x2c4] sm:$0xf]  ;;  %v1185_v63 = vor.u32 %v1626_v54, %v1184_v53  ;;  %859 = vmatpush.bf16.msra.mxu1 %v1473_v52  ;;  %885 = vmatpush.bf16.msra.mxu3 %v1477_v56  ;;  %v1189_v4 = vor.u32 %v1622_v59, %v1186_v60  ;;  %v1322_v48 = vld [vmem:[#allocation2 + $0x1e8] sm:$0xf0] }
  0x19   :  { %v1690_v58 = vld [vmem:[#allocation2 + $0x2dc] sm:$0xf0]  ;;  %v1442_v62 = vld [vmem:[#allocation2 + $0x2e0] sm:$0xf0]  ;;  %v1719_v49 = vld [vmem:[#allocation2 + $0x3cc] sm:$0xf]  ;;  %v1325_v50 = vor.u32 %v1655_v47, %v1322_v48 }
  0x1a   :  { %v1441_v1 = vor.u32 %v1690_v58, %v1440_v57  ;;  %v1152_v2 = vld [vmem:[#allocation2 + $0x80] sm:$0xf]  ;;  %v1445_v5 = vor.u32 %v1686_v61, %v1442_v62  ;;  %v1614_v8 = vld [vmem:[#allocation2 + $0x84] sm:$0xf]  ;;  %847 = vmatpush.bf16.msra.mxu0 %v1185_v63  ;;  %873 = vmatpush.bf16.msra.mxu2 %v1189_v4  ;;  %v1578_v51 = vld [vmem:[#allocation2 + $0x3e8] sm:$0xf0] }
  0x1b   :  { %v1618_v3 = vld [vmem:[#allocation2 + $0x9c] sm:$0xf0]  ;;  %v1154_v9 = vld [vmem:[#allocation2 + $0xa0] sm:$0xf0]  ;;  %v1288_v52 = vld [vmem:[#allocation2 + $0x188] sm:$0xf]  ;;  %v1581_v54 = vor.u32 %v1719_v49, %v1578_v51 }
  0x1c   :  { %v1408_v6 = vld [vmem:[#allocation2 + $0x280] sm:$0xf]  ;;  %v1678_v10 = vld [vmem:[#allocation2 + $0x284] sm:$0xf]  ;;  %v1153_v12 = vor.u32 %v1618_v3, %v1152_v2  ;;  %860 = vmatpush.bf16.msra.mxu1 %v1441_v1  ;;  %886 = vmatpush.bf16.msra.mxu3 %v1445_v5  ;;  %v1157_v16 = vor.u32 %v1614_v8, %v1154_v9  ;;  %v1651_v53 = vld [vmem:[#allocation2 + $0x1a4] sm:$0xf0]  ;;  %v1796_v2 = vpop.eup %1730 }
  0x1d   :  { %v1682_v7 = vld [vmem:[#allocation2 + $0x29c] sm:$0xf0]  ;;  %v1410_v11 = vld [vmem:[#allocation2 + $0x2a0] sm:$0xf0]  ;;  %v1289_v55 = vor.u32 %v1651_v53, %v1288_v52  ;;  %v1544_v56 = vld [vmem:[#allocation2 + $0x388] sm:$0xf]  ;;  %vm48_vm1 = vweird.f32 %v1796_v2 }
  0x1e   :  { %v1409_v13 = vor.u32 %v1682_v7, %v1408_v6  ;;  %v1120_v14 = vld [vmem:[#allocation2 + $0x40] sm:$0xf]  ;;  %v1413_v17 = vor.u32 %v1678_v10, %v1410_v11  ;;  %v1606_v20 = vld [vmem:[#allocation2 + $0x44] sm:$0xf]  ;;  %848 = vmatpush.bf16.msra.mxu0 %v1153_v12  ;;  %874 = vmatpush.bf16.msra.mxu2 %v1157_v16  ;;  %v1715_v57 = vld [vmem:[#allocation2 + $0x3a4] sm:$0xf0] }
  0x1f   :  { %v1610_v15 = vld [vmem:[#allocation2 + $0x5c] sm:$0xf0]  ;;  %v1122_v21 = vld [vmem:[#allocation2 + $0x60] sm:$0xf0]  ;;  %v1647_v58 = vld [vmem:[#allocation2 + $0x18c] sm:$0xf]  ;;  %v1545_v59 = vor.u32 %v1715_v57, %v1544_v56 }
  0x20   :  { %v1376_v18 = vld [vmem:[#allocation2 + $0x240] sm:$0xf]  ;;  %v1670_v22 = vld [vmem:[#allocation2 + $0x244] sm:$0xf]  ;;  %v1121_v24 = vor.u32 %v1610_v15, %v1120_v14  ;;  %861 = vmatpush.bf16.msra.mxu1 %v1409_v13  ;;  %887 = vmatpush.bf16.msra.mxu3 %v1413_v17  ;;  %v1125_v26 = vor.u32 %v1606_v20, %v1122_v21  ;;  %v1290_v60 = vld [vmem:[#allocation2 + $0x1a8] sm:$0xf0] }
  0x21   :  { %v1674_v19 = vld [vmem:[#allocation2 + $0x25c] sm:$0xf0]  ;;  %v1378_v23 = vld [vmem:[#allocation2 + $0x260] sm:$0xf0]  ;;  %v1711_v61 = vld [vmem:[#allocation2 + $0x38c] sm:$0xf]  ;;  %v1293_v63 = vor.u32 %v1647_v58, %v1290_v60 }
  0x22   :  { %v1377_v25 = vor.u32 %v1674_v19, %v1376_v18  ;;  %v1381_v27 = vor.u32 %v1670_v22, %v1378_v23  ;;  %849 = vmatpush.bf16.msra.mxu0 %v1121_v24  ;;  %875 = vmatpush.bf16.msra.mxu2 %v1125_v26  ;;  %v1088_v28 = vld [vmem:[#allocation2] sm:$0xf]  ;;  %v1598_v33 = vld [vmem:[#allocation2 + $0x4] sm:$0xf]  ;;  %v1546_v62 = vld [vmem:[#allocation2 + $0x3a8] sm:$0xf0] }
  0x23   :  { %v1602_v29 = vld [vmem:[#allocation2 + $0x1c] sm:$0xf0]  ;;  %v1090_v34 = vld [vmem:[#allocation2 + $0x20] sm:$0xf0]  ;;  %v1549_v1 = vor.u32 %v1711_v61, %v1546_v62  ;;  %v1256_v3 = vld [vmem:[#allocation2 + $0x148] sm:$0xf] }
  0x24   :  { %862 = vmatpush.bf16.msra.mxu1 %v1377_v25  ;;  %888 = vmatpush.bf16.msra.mxu3 %v1381_v27  ;;  %v1344_v30 = vld [vmem:[#allocation2 + $0x200] sm:$0xf]  ;;  %v1089_v31 = vor.u32 %v1602_v29, %v1088_v28  ;;  %v1093_v36 = vor.u32 %v1598_v33, %v1090_v34  ;;  %v1662_v37 = vld [vmem:[#allocation2 + $0x204] sm:$0xf]  ;;  %v1643_v4 = vld [vmem:[#allocation2 + $0x164] sm:$0xf0] }
  0x25   :  { %v1666_v32 = vld [vmem:[#allocation2 + $0x21c] sm:$0xf0]  ;;  %v1346_v38 = vld [vmem:[#allocation2 + $0x220] sm:$0xf0]  ;;  %v1512_v5 = vld [vmem:[#allocation2 + $0x348] sm:$0xf]  ;;  %v1257_v6 = vor.u32 %v1643_v4, %v1256_v3 }
  0x26   :  { %v1345_v35 = vor.u32 %v1666_v32, %v1344_v30  ;;  %850 = vmatpush.bf16.msra.mxu0 %v1089_v31  ;;  %v1349_v41 = vor.u32 %v1662_v37, %v1346_v38  ;;  %876 = vmatpush.bf16.msra.mxu2 %v1093_v36  ;;  %v1707_v7 = vld [vmem:[#allocation2 + $0x364] sm:$0xf0]  ;;  %v1639_v8 = vld [vmem:[#allocation2 + $0x14c] sm:$0xf]  ;;  %v44_v14 = vmul.f32 256.0, %v1796_v2 }
  0x27   :  { %v1258_v9 = vld [vmem:[#allocation2 + $0x168] sm:$0xf0]  ;;  %v1513_v10 = vor.u32 %v1707_v7, %v1512_v5  ;;  %v1224_v16 = vld [vmem:[#allocation2 + $0x108] sm:$0xf] }
  0x28   :  { %863 = vmatpush.bf16.msra.mxu1 %v1345_v35  ;;  %889 = vmatpush.bf16.msra.mxu3 %v1349_v41  ;;  %v1261_v11 = vor.u32 %v1639_v8, %v1258_v9  ;;  %v1703_v12 = vld [vmem:[#allocation2 + $0x34c] sm:$0xf]  ;;  %v1635_v17 = vld [vmem:[#allocation2 + $0x124] sm:$0xf0]  ;;  %v45_v27 = vsub.f32 1.0, %v44_v14 }
  0x29   :  { %v1514_v13 = vld [vmem:[#allocation2 + $0x368] sm:$0xf0]  ;;  %v1480_v18 = vld [vmem:[#allocation2 + $0x308] sm:$0xf]  ;;  %v1225_v19 = vor.u32 %v1635_v17, %v1224_v16 }
  0x2a   :  { %895 = vmatpush.bf16.msrb.mxu0 %v1321_v45  ;;  %921 = vmatpush.bf16.msrb.mxu2 %v1325_v50  ;;  %v1517_v15 = vor.u32 %v1703_v12, %v1514_v13  ;;  %v1699_v20 = vld [vmem:[#allocation2 + $0x324] sm:$0xf0]  ;;  %v1631_v21 = vld [vmem:[#allocation2 + $0x10c] sm:$0xf]  ;;  %v46_v44 = vmul.f32 %v1796_v2, %v45_v27 }
  0x2b   :  { %v1226_v22 = vld [vmem:[#allocation2 + $0x128] sm:$0xf0]  ;;  %v1481_v23 = vor.u32 %v1699_v20, %v1480_v18  ;;  %v1192_v29 = vld [vmem:[#allocation2 + $0xc8] sm:$0xf] }
  0x2c   :  { %908 = vmatpush.bf16.msrb.mxu1 %v1577_v46  ;;  %934 = vmatpush.bf16.msrb.mxu3 %v1581_v54  ;;  %v1229_v24 = vor.u32 %v1631_v21, %v1226_v22  ;;  %v1695_v25 = vld [vmem:[#allocation2 + $0x30c] sm:$0xf]  ;;  %v1627_v30 = vld [vmem:[#allocation2 + $0xe4] sm:$0xf0]  ;;  %v47_v56 = vadd.f32 %v1796_v2, %v46_v44 }
  0x2d   :  { %v1482_v26 = vld [vmem:[#allocation2 + $0x328] sm:$0xf0]  ;;  %v1448_v31 = vld [vmem:[#allocation2 + $0x2c8] sm:$0xf]  ;;  %v1193_v32 = vor.u32 %v1627_v30, %v1192_v29 }
  0x2e   :  { %896 = vmatpush.bf16.msrb.mxu0 %v1289_v55  ;;  %922 = vmatpush.bf16.msrb.mxu2 %v1293_v63  ;;  %v1485_v28 = vor.u32 %v1695_v25, %v1482_v26  ;;  %v1691_v33 = vld [vmem:[#allocation2 + $0x2e4] sm:$0xf0]  ;;  %v1623_v34 = vld [vmem:[#allocation2 + $0xcc] sm:$0xf]  ;;  %v49_v8 = vsel %vm48_vm1, %v1796_v2, %v47_v56  ;;  %v1264_v56 = vld [vmem:[#allocation2 + $0x150] sm:$0xf] }
  0x2f   :  { %v1194_v35 = vld [vmem:[#allocation2 + $0xe8] sm:$0xf0]  ;;  %v1449_v36 = vor.u32 %v1691_v33, %v1448_v31  ;;  %v1160_v41 = vld [vmem:[#allocation2 + $0x88] sm:$0xf]  ;;  %v1328_v31 = vld [vmem:[#allocation2 + $0x1d0] sm:$0xf] }
  0x30   :  { %909 = vmatpush.bf16.msrb.mxu1 %v1545_v59  ;;  %935 = vmatpush.bf16.msrb.mxu3 %v1549_v1  ;;  %v1197_v37 = vor.u32 %v1623_v34, %v1194_v35  ;;  %v1687_v38 = vld [vmem:[#allocation2 + $0x2cc] sm:$0xf]  ;;  %v1619_v42 = vld [vmem:[#allocation2 + $0xa4] sm:$0xf0]  ;;  %v1584_v33 = vld [vmem:[#allocation2 + $0x3d0] sm:$0xf] }
  0x31   :  { %v1450_v39 = vld [vmem:[#allocation2 + $0x2e8] sm:$0xf0]  ;;  %v1416_v43 = vld [vmem:[#allocation2 + $0x288] sm:$0xf]  ;;  %v1161_v45 = vor.u32 %v1619_v42, %v1160_v41  ;;  %v1724_v34 = vld [vmem:[#allocation2 + $0x3ec] sm:$0xf0] }
  0x32   :  { %897 = vmatpush.bf16.msrb.mxu0 %v1257_v6  ;;  %923 = vmatpush.bf16.msrb.mxu2 %v1261_v11  ;;  %v1453_v40 = vor.u32 %v1687_v38, %v1450_v39  ;;  %v1683_v46 = vld [vmem:[#allocation2 + $0x2a4] sm:$0xf0]  ;;  %v1615_v47 = vld [vmem:[#allocation2 + $0x8c] sm:$0xf]  ;;  %v1656_v35 = vld [vmem:[#allocation2 + $0x1d4] sm:$0xf]  ;;  %v1585_v44 = vor.u32 %v1724_v34, %v1584_v33 }
  0x33   :  { %v1162_v48 = vld [vmem:[#allocation2 + $0xa8] sm:$0xf0]  ;;  %v1417_v49 = vor.u32 %v1683_v46, %v1416_v43  ;;  %v1128_v54 = vld [vmem:[#allocation2 + $0x48] sm:$0xf]  ;;  %v1720_v39 = vld [vmem:[#allocation2 + $0x3d4] sm:$0xf] }
  0x34   :  { %910 = vmatpush.bf16.msrb.mxu1 %v1513_v10  ;;  %936 = vmatpush.bf16.msrb.mxu3 %v1517_v15  ;;  %v1165_v50 = vor.u32 %v1615_v47, %v1162_v48  ;;  %v1679_v51 = vld [vmem:[#allocation2 + $0x28c] sm:$0xf]  ;;  %v1611_v55 = vld [vmem:[#allocation2 + $0x64] sm:$0xf0]  ;;  %v1652_v46 = vld [vmem:[#allocation2 + $0x1ac] sm:$0xf0] }
  0x35   :  { %v1418_v52 = vld [vmem:[#allocation2 + $0x2a8] sm:$0xf0]  ;;  %v1129_v57 = vor.u32 %v1611_v55, %v1128_v54  ;;  %v1384_v58 = vld [vmem:[#allocation2 + $0x248] sm:$0xf]  ;;  %v1552_v48 = vld [vmem:[#allocation2 + $0x390] sm:$0xf] }
  0x36   :  { %898 = vmatpush.bf16.msrb.mxu0 %v1225_v19  ;;  %924 = vmatpush.bf16.msrb.mxu2 %v1229_v24  ;;  %v1421_v53 = vor.u32 %v1679_v51, %v1418_v52  ;;  %v1675_v59 = vld [vmem:[#allocation2 + $0x264] sm:$0xf0]  ;;  %v1607_v60 = vld [vmem:[#allocation2 + $0x4c] sm:$0xf]  ;;  %v1298_v51 = vld [vmem:[#allocation2 + $0x1b0] sm:$0xf0] }
  0x37   :  { %v1385_v61 = vor.u32 %v1675_v59, %v1384_v58  ;;  %v1130_v62 = vld [vmem:[#allocation2 + $0x68] sm:$0xf0]  ;;  %v1096_v5 = vld [vmem:[#allocation2 + $0x8] sm:$0xf]  ;;  %v1712_v52 = vld [vmem:[#allocation2 + $0x394] sm:$0xf] }
  0x38   :  { %911 = vmatpush.bf16.msrb.mxu1 %v1481_v23  ;;  %937 = vmatpush.bf16.msrb.mxu3 %v1485_v28  ;;  %v1671_v63 = vld [vmem:[#allocation2 + $0x24c] sm:$0xf]  ;;  %v1133_v3 = vor.u32 %v1607_v60, %v1130_v62  ;;  %v1603_v6 = vld [vmem:[#allocation2 + $0x24] sm:$0xf0]  ;;  %v66_v28 = vld [vmem:[%s1832_s1] sm:$0x3] }
  0x39   :  { %v1386_v1 = vld [vmem:[#allocation2 + $0x268] sm:$0xf0]  ;;  %v1352_v7 = vld [vmem:[#allocation2 + $0x208] sm:$0xf]  ;;  %v1097_v9 = vor.u32 %v1603_v6, %v1096_v5  ;;  %v1520_v60 = vld [vmem:[#allocation2 + $0x350] sm:$0xf] }
  0x3a   :  { %899 = vmatpush.bf16.msrb.mxu0 %v1193_v32  ;;  %925 = vmatpush.bf16.msrb.mxu2 %v1197_v37  ;;  %v1389_v4 = vor.u32 %v1671_v63, %v1386_v1  ;;  %v1667_v10 = vld [vmem:[#allocation2 + $0x224] sm:$0xf0]  ;;  %v1599_v11 = vld [vmem:[#allocation2 + $0xc] sm:$0xf]  ;;  %v1660_v32 = vld [vmem:[#allocation2 + $0x1ec] sm:$0xf0] }
  0x3b   :  { %v1098_v12 = vld [vmem:[#allocation2 + $0x28] sm:$0xf0]  ;;  %v1353_v13 = vor.u32 %v1667_v10, %v1352_v7  ;;  %v1329_v43 = vor.u32 %v1660_v32, %v1328_v31  ;;  %v1640_v62 = vld [vmem:[#allocation2 + $0x154] sm:$0xf]  ;;  %v1232_v6 = vld [vmem:[#allocation2 + $0x110] sm:$0xf] }
  0x3c   :  { %912 = vmatpush.bf16.msrb.mxu1 %v1449_v36  ;;  %938 = vmatpush.bf16.msrb.mxu3 %v1453_v40  ;;  %v1101_v14 = vor.u32 %v1599_v11, %v1098_v12  ;;  %v1663_v15 = vld [vmem:[#allocation2 + $0x20c] sm:$0xf]  ;;  %v1330_v36 = vld [vmem:[#allocation2 + $0x1f0] sm:$0xf0]  ;;  %v1636_v7 = vld [vmem:[#allocation2 + $0x12c] sm:$0xf0] }
  0x3d   :  { %v1354_v16 = vld [vmem:[#allocation2 + $0x228] sm:$0xf0]  ;;  %v1586_v40 = vld [vmem:[#allocation2 + $0x3f0] sm:$0xf0]  ;;  %v1488_v10 = vld [vmem:[#allocation2 + $0x310] sm:$0xf] }
  0x3e   :  { %900 = vmatpush.bf16.msrb.mxu0 %v1161_v45  ;;  %926 = vmatpush.bf16.msrb.mxu2 %v1165_v50  ;;  %v1357_v18 = vor.u32 %v1663_v15, %v1354_v16  ;;  %v1296_v45 = vld [vmem:[#allocation2 + $0x190] sm:$0xf]  ;;  %v1589_v47 = vor.u32 %v1720_v39, %v1586_v40  ;;  %v1648_v50 = vld [vmem:[#allocation2 + $0x194] sm:$0xf]  ;;  %v1233_v16 = vor.u32 %v1636_v7, %v1232_v6  ;;  %v1657_v6 = vld [vmem:[#allocation2 + $0x1dc] sm:$0xf] }
  0x3f   :  { %v1297_v54 = vor.u32 %v1652_v46, %v1296_v45  ;;  %v1301_v58 = vor.u32 %v1648_v50, %v1298_v51  ;;  %v1266_v63 = vld [vmem:[#allocation2 + $0x170] sm:$0xf0]  ;;  %v1700_v11 = vld [vmem:[#allocation2 + $0x32c] sm:$0xf0] }
  0x40   :  { %913 = vmatpush.bf16.msrb.mxu1 %v1417_v49  ;;  %939 = vmatpush.bf16.msrb.mxu3 %v1421_v53  ;;  %v1716_v49 = vld [vmem:[#allocation2 + $0x3ac] sm:$0xf0]  ;;  %v1554_v53 = vld [vmem:[#allocation2 + $0x3b0] sm:$0xf0] }
  0x41   :  { %v1553_v55 = vor.u32 %v1716_v49, %v1552_v48  ;;  %v1557_v59 = vor.u32 %v1712_v52, %v1554_v53  ;;  %v1704_v1 = vld [vmem:[#allocation2 + $0x354] sm:$0xf]  ;;  %v1424_v33 = vld [vmem:[#allocation2 + $0x290] sm:$0xf] }
  0x42   :  { %901 = vmatpush.bf16.msrb.mxu0 %v1129_v57  ;;  %927 = vmatpush.bf16.msrb.mxu2 %v1133_v3  ;;  %v1644_v57 = vld [vmem:[#allocation2 + $0x16c] sm:$0xf0]  ;;  %v1522_v3 = vld [vmem:[#allocation2 + $0x370] sm:$0xf0] }
  0x43   :  { %v1632_v12 = vld [vmem:[#allocation2 + $0x114] sm:$0xf]  ;;  %v1684_v34 = vld [vmem:[#allocation2 + $0x2ac] sm:$0xf0] }
  0x44   :  { %914 = vmatpush.bf16.msrb.mxu1 %v1385_v61  ;;  %940 = vmatpush.bf16.msrb.mxu3 %v1389_v4  ;;  %v1708_v61 = vld [vmem:[#allocation2 + $0x36c] sm:$0xf0]  ;;  %v1265_v4 = vor.u32 %v1644_v57, %v1264_v56  ;;  %v1490_v15 = vld [vmem:[#allocation2 + $0x330] sm:$0xf0]  ;;  %v1425_v40 = vor.u32 %v1684_v34, %v1424_v33  ;;  %v1641_v33 = vld [vmem:[#allocation2 + $0x15c] sm:$0xf] }
  0x45   :  { %v1521_v5 = vor.u32 %v1708_v61, %v1520_v60  ;;  %v1608_v48 = vld [vmem:[#allocation2 + $0x54] sm:$0xf]  ;;  %v1104_v52 = vld [vmem:[#allocation2 + $0x10] sm:$0xf]  ;;  %v1274_v34 = vld [vmem:[#allocation2 + $0x178] sm:$0xf0] }
  0x46   :  { %902 = vmatpush.bf16.msrb.mxu0 %v1097_v9  ;;  %928 = vmatpush.bf16.msrb.mxu2 %v1101_v14  ;;  %v1525_v9 = vor.u32 %v1704_v1, %v1522_v3  ;;  %v1696_v14 = vld [vmem:[#allocation2 + $0x314] sm:$0xf]  ;;  %v1360_v56 = vld [vmem:[#allocation2 + $0x210] sm:$0xf]  ;;  %v1336_v1 = vld [vmem:[#allocation2 + $0x1d8] sm:$0xf] }
  0x47   :  { %v1138_v49 = vld [vmem:[#allocation2 + $0x70] sm:$0xf0]  ;;  %v1668_v57 = vld [vmem:[#allocation2 + $0x22c] sm:$0xf0]  ;;  %v1661_v3 = vld [vmem:[#allocation2 + $0x1f4] sm:$0xf0] }
  0x48   :  { %915 = vmatpush.bf16.msrb.mxu1 %v1353_v13  ;;  %941 = vmatpush.bf16.msrb.mxu3 %v1357_v18  ;;  %v1234_v13 = vld [vmem:[#allocation2 + $0x130] sm:$0xf0]  ;;  %v1200_v18 = vld [vmem:[#allocation2 + $0xd0] sm:$0xf] }
  0x49   :  { %v1672_v50 = vld [vmem:[#allocation2 + $0x254] sm:$0xf] }
  0x4a   :  { %v1394_v51 = vld [vmem:[#allocation2 + $0x270] sm:$0xf0] }
  0x4b   :  { %v1600_v60 = vld [vmem:[#allocation2 + $0x14] sm:$0xf] }
  0x4c   :  { %v1106_v61 = vld [vmem:[#allocation2 + $0x30] sm:$0xf0] }
  0x80   :  { %v42_v17 = vpop.xlane.xlu0 %41 }
  0x81   :  { %v50_v19 = vmul.f32 %v49_v8, %v42_v17  ;;  %v1269_v8 = vor.u32 %v1640_v62, %v1266_v63  ;;  %v1489_v17 = vor.u32 %v1700_v11, %v1488_v10  ;;  %v1664_v62 = vld [vmem:[#allocation2 + $0x214] sm:$0xf]  ;;  %v1721_v10 = vld [vmem:[#allocation2 + $0x3dc] sm:$0xf] }
  0x82   :  { %v1362_v63 = vld [vmem:[#allocation2 + $0x230] sm:$0xf0]  ;;  %v1594_v11 = vld [vmem:[#allocation2 + $0x3f8] sm:$0xf0] }
  0x83   :  { %v51_v20 = vadd.f32 1e-06, %v50_v19  ;;  %v1628_v19 = vld [vmem:[#allocation2 + $0xec] sm:$0xf0] }
  0x85   :  { %1732 = vrsqrt.f32 %v51_v20  ;;  %vm58_vm3 = vweird.f32 %v51_v20 }
  0x8b   :  { %v1733_v2 = vpop.eup %1732 }
  0x8c   :  { %v53_v21 = vmul.f32 %v1733_v2, %v51_v20  ;;  %vm59_vm2 = vweird.f32 %v1733_v2  ;;  %v1237_v20 = vor.u32 %v1632_v12, %v1234_v13  ;;  %v1109_v12 = vor.u32 %v1600_v60, %v1106_v61  ;;  %v1689_v60 = vld [vmem:[#allocation2 + $0x2dc] sm:$0xf] }
  0x8d   :  { %vm60_vm4 = vmor %vm58_vm3, %vm59_vm2  ;;  %v1365_v13 = vor.u32 %v1664_v62, %v1362_v63  ;;  %v1466_v61 = vld [vmem:[#allocation2 + $0x2f8] sm:$0xf0] }
  0x8e   :  { %v54_v22 = vmul.f32 %v1733_v2, %v53_v21  ;;  %v1456_v21 = vld [vmem:[#allocation2 + $0x2d0] sm:$0xf] }
  0x90   :  { %v55_v23 = vmul.f32 0.5, %v54_v22  ;;  %v1692_v22 = vld [vmem:[#allocation2 + $0x2ec] sm:$0xf0] }
  0x92   :  { %v56_v24 = vsub.f32 1.5, %v55_v23  ;;  %v1624_v23 = vld [vmem:[#allocation2 + $0xd4] sm:$0xf] }
  0x94   :  { %v57_v25 = vmul.f32 %v1733_v2, %v56_v24  ;;  %v1202_v24 = vld [vmem:[#allocation2 + $0xf0] sm:$0xf0] }
  0x95   :  { %v1205_v31 = vor.u32 %v1624_v23, %v1202_v24  ;;  %v1713_v23 = vld [vmem:[#allocation2 + $0x39c] sm:$0xf] }
  0x96   :  { %v61_v26 = vsel %vm60_vm4, %v1733_v2, %v57_v25  ;;  %v1493_v2 = vor.u32 %v1696_v14, %v1490_v15  ;;  %v1688_v25 = vld [vmem:[#allocation2 + $0x2d4] sm:$0xf]  ;;  %v1337_v14 = vor.u32 %v1661_v3, %v1336_v1  ;;  %v1562_v24 = vld [vmem:[#allocation2 + $0x3b8] sm:$0xf0]  ;;  %v1176_v1 = vld [vmem:[#allocation2 + $0x98] sm:$0xf] }
  0x97   :  { %v63_v27 = vperm.slane %v61_v26, 0  ;;  %v1458_v26 = vld [vmem:[#allocation2 + $0x2f0] sm:$0xf0]  ;;  %v1621_v3 = vld [vmem:[#allocation2 + $0xb4] sm:$0xf0] }
  0x98   :  { %v1461_v32 = vor.u32 %v1688_v25, %v1458_v26 }
  0x99   :  { %v65_v29 = vmul.f32 %v63_v27, %v1790_v0  ;;  %v1333_v0 = vor.u32 %v1656_v35, %v1330_v36  ;;  %v1201_v27 = vor.u32 %v1628_v19, %v1200_v18  ;;  %v1616_v35 = vld [vmem:[#allocation2 + $0x94] sm:$0xf]  ;;  %v1597_v19 = vor.u32 %v1721_v10, %v1594_v11  ;;  %v1681_v10 = vld [vmem:[#allocation2 + $0x29c] sm:$0xf] }
  0x9a   :  { %v1170_v36 = vld [vmem:[#allocation2 + $0xb0] sm:$0xf0]  ;;  %v1434_v11 = vld [vmem:[#allocation2 + $0x2b8] sm:$0xf0] }
  0x9b   :  { %v67_v30 = vmul.f32 %v66_v28, %v65_v29  ;;  %v1457_v28 = vor.u32 %v1692_v22, %v1456_v21  ;;  %v1168_v29 = vld [vmem:[#allocation2 + $0x90] sm:$0xf]  ;;  %v1173_v45 = vor.u32 %v1616_v35, %v1170_v36  ;;  %v1649_v21 = vld [vmem:[#allocation2 + $0x19c] sm:$0xf] }
  0x9c   :  { %v1306_v22 = vld [vmem:[#allocation2 + $0x1b8] sm:$0xf0] }
  0x9d   :  { %v69_v37 = vperm.slane %v67_v30, 0  ;;  %v70_v38 = vperm.slane %v67_v30, 1  ;;  %v1620_v30 = vld [vmem:[#allocation2 + $0xac] sm:$0xf0]  ;;  %v1705_v35 = vld [vmem:[#allocation2 + $0x35c] sm:$0xf] }
  0x9e   :  { %v1169_v39 = vor.u32 %v1620_v30, %v1168_v29  ;;  %v1309_v29 = vor.u32 %v1649_v21, %v1306_v22  ;;  %v1565_v30 = vor.u32 %v1713_v23, %v1562_v24  ;;  %v1530_v36 = vld [vmem:[#allocation2 + $0x378] sm:$0xf0] }
  0x9f   :  { %v1807_v41 = vpack.c.bf16 %v69_v37, %v69_v37  ;;  %v1809_v42 = vpack.c.bf16 %v70_v38, %v70_v38  ;;  %v1680_v37 = vld [vmem:[#allocation2 + $0x294] sm:$0xf]  ;;  %v1673_v21 = vld [vmem:[#allocation2 + $0x25c] sm:$0xf] }
  0xa0   :  { %v1426_v38 = vld [vmem:[#allocation2 + $0x2b0] sm:$0xf0]  ;;  %v1402_v22 = vld [vmem:[#allocation2 + $0x278] sm:$0xf0] }
  0xa1   :  { %851 = vmatmul.bf16.vlgmr.msra.gmra.mxu0 %v1807_v41  ;;  %864 = vmatmul.bf16.vlgmr.msra.gmra.mxu1 %v1809_v42  ;;  %v1429_v46 = vor.u32 %v1680_v37, %v1426_v38 }
  0xa2   :  { %877 = vmatmul.bf16.vlgmr.msra.gmra.mxu2 %v1807_v41  ;;  %890 = vmatmul.bf16.vlgmr.msra.gmra.mxu3 %v1809_v42 }
  0xa3   :  { %947 = vmatpush.bf16.msra.mxu0 %v1329_v43  ;;  %960 = vmatpush.bf16.msra.mxu1 %v1585_v44  ;;  %v1136_v43 = vld [vmem:[#allocation2 + $0x50] sm:$0xf] }
  0xa4   :  { %973 = vmatpush.bf16.msra.mxu2 %v1333_v0  ;;  %986 = vmatpush.bf16.msra.mxu3 %v1589_v47  ;;  %v1612_v44 = vld [vmem:[#allocation2 + $0x6c] sm:$0xf0] }
  0xa5   :  { %v1392_v0 = vld [vmem:[#allocation2 + $0x250] sm:$0xf]  ;;  %v1137_v53 = vor.u32 %v1612_v44, %v1136_v43  ;;  %v1277_v43 = vor.u32 %v1641_v33, %v1274_v34  ;;  %v1533_v44 = vor.u32 %v1705_v35, %v1530_v36  ;;  %v1665_v33 = vld [vmem:[#allocation2 + $0x21c] sm:$0xf] }
  0xa6   :  { %v1676_v47 = vld [vmem:[#allocation2 + $0x26c] sm:$0xf0]  ;;  %v1370_v34 = vld [vmem:[#allocation2 + $0x238] sm:$0xf0] }
  0xa7   :  { %948 = vmatpush.bf16.msra.mxu0 %v1297_v54  ;;  %961 = vmatpush.bf16.msra.mxu1 %v1553_v55  ;;  %v1393_v54 = vor.u32 %v1676_v47, %v1392_v0  ;;  %v1604_v55 = vld [vmem:[#allocation2 + $0x2c] sm:$0xf0]  ;;  %v1633_v0 = vld [vmem:[#allocation2 + $0x11c] sm:$0xf] }
  0xa8   :  { %974 = vmatpush.bf16.msra.mxu2 %v1301_v58  ;;  %987 = vmatpush.bf16.msra.mxu3 %v1557_v59  ;;  %v1141_v58 = vor.u32 %v1608_v48, %v1138_v49  ;;  %v1397_v59 = vor.u32 %v1672_v50, %v1394_v51  ;;  %v1105_v7 = vor.u32 %v1604_v55, %v1104_v52  ;;  %v1242_v47 = vld [vmem:[#allocation2 + $0x138] sm:$0xf0]  ;;  %v1208_v52 = vld [vmem:[#allocation2 + $0xd8] sm:$0xf] }
  0xa9   :  { %v1697_v48 = vld [vmem:[#allocation2 + $0x31c] sm:$0xf] }
  0xaa   :  { %v1498_v49 = vld [vmem:[#allocation2 + $0x338] sm:$0xf0] }
  0xab   :  { %949 = vmatpush.bf16.msra.mxu0 %v1265_v4  ;;  %962 = vmatpush.bf16.msra.mxu1 %v1521_v5  ;;  %v1592_v4 = vld [vmem:[#allocation2 + $0x3d8] sm:$0xf]  ;;  %v1501_v55 = vor.u32 %v1697_v48, %v1498_v49 }
  0xac   :  { %975 = vmatpush.bf16.msra.mxu2 %v1269_v8  ;;  %988 = vmatpush.bf16.msra.mxu3 %v1525_v9  ;;  %v1725_v5 = vld [vmem:[#allocation2 + $0x3f4] sm:$0xf0]  ;;  %v1361_v8 = vor.u32 %v1668_v57, %v1360_v56  ;;  %v1338_v9 = vld [vmem:[#allocation2 + $0x1f8] sm:$0xf0] }
  0xad   :  { %v1593_v15 = vor.u32 %v1725_v5, %v1592_v4  ;;  %v1341_v18 = vor.u32 %v1657_v6, %v1338_v9  ;;  %v1464_v56 = vld [vmem:[#allocation2 + $0x2d8] sm:$0xf]  ;;  %v1469_v5 = vor.u32 %v1689_v60, %v1466_v61  ;;  %v1178_v9 = vld [vmem:[#allocation2 + $0xb8] sm:$0xf0] }
  0xae   :  { %v1693_v57 = vld [vmem:[#allocation2 + $0x2f4] sm:$0xf0] }
  0xaf   :  { %950 = vmatpush.bf16.msra.mxu0 %v1233_v16  ;;  %963 = vmatpush.bf16.msra.mxu1 %v1489_v17  ;;  %v1304_v16 = vld [vmem:[#allocation2 + $0x198] sm:$0xf]  ;;  %v1465_v63 = vor.u32 %v1693_v57, %v1464_v56 }
  0xb0   :  { %976 = vmatpush.bf16.msra.mxu2 %v1237_v20  ;;  %989 = vmatpush.bf16.msra.mxu3 %v1493_v2  ;;  %v1653_v17 = vld [vmem:[#allocation2 + $0x1b4] sm:$0xf0] }
  0xb1   :  { %903 = vmatmul.bf16.vlgmr.msrb.gmra.mxu0 %v1807_v41  ;;  %916 = vmatmul.bf16.vlgmr.msrb.gmra.mxu1 %v1809_v42  ;;  %v1560_v20 = vld [vmem:[#allocation2 + $0x398] sm:$0xf]  ;;  %v1305_v25 = vor.u32 %v1653_v17, %v1304_v16  ;;  %v1437_v17 = vor.u32 %v1681_v10, %v1434_v11 }
  0xb2   :  { %929 = vmatmul.bf16.vlgmr.msrb.gmra.mxu2 %v1807_v41  ;;  %942 = vmatmul.bf16.vlgmr.msrb.gmra.mxu3 %v1809_v42  ;;  %v1717_v2 = vld [vmem:[#allocation2 + $0x3b4] sm:$0xf0] }
  0xb3   :  { %951 = vmatpush.bf16.msra.mxu0 %v1201_v27  ;;  %964 = vmatpush.bf16.msra.mxu1 %v1457_v28  ;;  %v1561_v26 = vor.u32 %v1717_v2, %v1560_v20  ;;  %v1272_v27 = vld [vmem:[#allocation2 + $0x158] sm:$0xf]  ;;  %v1609_v20 = vld [vmem:[#allocation2 + $0x5c] sm:$0xf] }
  0xb4   :  { %977 = vmatpush.bf16.msra.mxu2 %v1205_v31  ;;  %990 = vmatpush.bf16.msra.mxu3 %v1461_v32  ;;  %v1645_v28 = vld [vmem:[#allocation2 + $0x174] sm:$0xf0]  ;;  %v1146_v2 = vld [vmem:[#allocation2 + $0x78] sm:$0xf0] }
  0xb5   :  { %v1528_v31 = vld [vmem:[#allocation2 + $0x358] sm:$0xf]  ;;  %v1273_v37 = vor.u32 %v1645_v28, %v1272_v27  ;;  %v1149_v27 = vor.u32 %v1609_v20, %v1146_v2  ;;  %v1405_v28 = vor.u32 %v1673_v21, %v1402_v22 }
  0xb6   :  { %v1709_v32 = vld [vmem:[#allocation2 + $0x374] sm:$0xf0] }
  0xb7   :  { %952 = vmatpush.bf16.msra.mxu0 %v1169_v39  ;;  %965 = vmatpush.bf16.msra.mxu1 %v1425_v40  ;;  %v1529_v38 = vor.u32 %v1709_v32, %v1528_v31  ;;  %v1240_v39 = vld [vmem:[#allocation2 + $0x118] sm:$0xf]  ;;  %v1601_v31 = vld [vmem:[#allocation2 + $0x1c] sm:$0xf] }
  0xb8   :  { %978 = vmatpush.bf16.msra.mxu2 %v1173_v45  ;;  %991 = vmatpush.bf16.msra.mxu3 %v1429_v46  ;;  %v1637_v40 = vld [vmem:[#allocation2 + $0x134] sm:$0xf0]  ;;  %v1114_v32 = vld [vmem:[#allocation2 + $0x38] sm:$0xf0] }
  0xb9   :  { %v1496_v45 = vld [vmem:[#allocation2 + $0x318] sm:$0xf]  ;;  %v1241_v50 = vor.u32 %v1637_v40, %v1240_v39 }
  0xba   :  { %v1701_v46 = vld [vmem:[#allocation2 + $0x334] sm:$0xf0] }
  0xbb   :  { %953 = vmatpush.bf16.msra.mxu0 %v1137_v53  ;;  %966 = vmatpush.bf16.msra.mxu1 %v1393_v54  ;;  %v1497_v51 = vor.u32 %v1701_v46, %v1496_v45  ;;  %v1629_v53 = vld [vmem:[#allocation2 + $0xf4] sm:$0xf0]  ;;  %v1245_v54 = vor.u32 %v1633_v0, %v1242_v47 }
  0xbc   :  { %979 = vmatpush.bf16.msra.mxu2 %v1141_v58  ;;  %992 = vmatpush.bf16.msra.mxu3 %v1397_v59  ;;  %v1625_v58 = vld [vmem:[#allocation2 + $0xdc] sm:$0xf]  ;;  %v1209_v62 = vor.u32 %v1629_v53, %v1208_v52  ;;  %v1432_v6 = vld [vmem:[#allocation2 + $0x298] sm:$0xf] }
  0xbd   :  { %v1210_v59 = vld [vmem:[#allocation2 + $0xf8] sm:$0xf0] }
  0xbe   :  { %v1213_v4 = vor.u32 %v1625_v58, %v1210_v59 }
  0xbf   :  { %954 = vmatpush.bf16.msra.mxu0 %v1105_v7  ;;  %967 = vmatpush.bf16.msra.mxu1 %v1361_v8  ;;  %v1685_v7 = vld [vmem:[#allocation2 + $0x2b4] sm:$0xf0]  ;;  %v1617_v8 = vld [vmem:[#allocation2 + $0x9c] sm:$0xf] }
  0xc0   :  { %980 = vmatpush.bf16.msra.mxu2 %v1109_v12  ;;  %993 = vmatpush.bf16.msra.mxu3 %v1365_v13  ;;  %v1177_v12 = vor.u32 %v1621_v3, %v1176_v1  ;;  %v1433_v13 = vor.u32 %v1685_v7, %v1432_v6  ;;  %v1181_v16 = vor.u32 %v1617_v8, %v1178_v9 }
  0xc2   :  { %955 = vmatmul.bf16.vlgmr.msra.gmra.mxu0 %v1807_v41  ;;  %968 = vmatmul.bf16.vlgmr.msra.gmra.mxu1 %v1809_v42 }
  0xc3   :  { %999 = vmatpush.bf16.msrb.mxu0 %v1337_v14  ;;  %1012 = vmatpush.bf16.msrb.mxu1 %v1593_v15  ;;  %v1144_v14 = vld [vmem:[#allocation2 + $0x58] sm:$0xf] }
  0xc4   :  { %1025 = vmatpush.bf16.msrb.mxu2 %v1341_v18  ;;  %1038 = vmatpush.bf16.msrb.mxu3 %v1597_v19  ;;  %v1613_v15 = vld [vmem:[#allocation2 + $0x74] sm:$0xf0] }
  0xc5   :  { %981 = vmatmul.bf16.vlgmr.msra.gmra.mxu2 %v1807_v41  ;;  %994 = vmatmul.bf16.vlgmr.msra.gmra.mxu3 %v1809_v42  ;;  %v1400_v18 = vld [vmem:[#allocation2 + $0x258] sm:$0xf]  ;;  %v1145_v23 = vor.u32 %v1613_v15, %v1144_v14 }
  0xc6   :  { %v1677_v19 = vld [vmem:[#allocation2 + $0x274] sm:$0xf0] }
  0xc7   :  { %1000 = vmatpush.bf16.msrb.mxu0 %v1305_v25  ;;  %1013 = vmatpush.bf16.msrb.mxu1 %v1561_v26  ;;  %v1401_v24 = vor.u32 %v1677_v19, %v1400_v18  ;;  %v1112_v25 = vld [vmem:[#allocation2 + $0x18] sm:$0xf] }
  0xc8   :  { %1026 = vmatpush.bf16.msrb.mxu2 %v1309_v29  ;;  %1039 = vmatpush.bf16.msrb.mxu3 %v1565_v30  ;;  %v1605_v26 = vld [vmem:[#allocation2 + $0x34] sm:$0xf0] }
  0xc9   :  { %v1368_v29 = vld [vmem:[#allocation2 + $0x218] sm:$0xf]  ;;  %v1113_v35 = vor.u32 %v1605_v26, %v1112_v25 }
  0xca   :  { %v1669_v30 = vld [vmem:[#allocation2 + $0x234] sm:$0xf0] }
  0xcb   :  { %1001 = vmatpush.bf16.msrb.mxu0 %v1273_v37  ;;  %1014 = vmatpush.bf16.msrb.mxu1 %v1529_v38  ;;  %v1369_v36 = vor.u32 %v1669_v30, %v1368_v29  ;;  %v1117_v37 = vor.u32 %v1601_v31, %v1114_v32  ;;  %v1373_v38 = vor.u32 %v1665_v33, %v1370_v34 }
  0xcc   :  { %1027 = vmatpush.bf16.msrb.mxu2 %v1277_v43  ;;  %1040 = vmatpush.bf16.msrb.mxu3 %v1533_v44 }
  0xcf   :  { %1002 = vmatpush.bf16.msrb.mxu0 %v1241_v50  ;;  %1015 = vmatpush.bf16.msrb.mxu1 %v1497_v51 }
  0xd0   :  { %1028 = vmatpush.bf16.msrb.mxu2 %v1245_v54  ;;  %1041 = vmatpush.bf16.msrb.mxu3 %v1501_v55 }
  0xd3   :  { %1003 = vmatpush.bf16.msrb.mxu0 %v1209_v62  ;;  %1016 = vmatpush.bf16.msrb.mxu1 %v1465_v63 }
  0xd4   :  { %1029 = vmatpush.bf16.msrb.mxu2 %v1213_v4  ;;  %1042 = vmatpush.bf16.msrb.mxu3 %v1469_v5 }
  0xd7   :  { %1004 = vmatpush.bf16.msrb.mxu0 %v1177_v12  ;;  %1017 = vmatpush.bf16.msrb.mxu1 %v1433_v13 }
  0xd8   :  { %1030 = vmatpush.bf16.msrb.mxu2 %v1181_v16  ;;  %1043 = vmatpush.bf16.msrb.mxu3 %v1437_v17 }
  0xdb   :  { %1005 = vmatpush.bf16.msrb.mxu0 %v1145_v23  ;;  %1018 = vmatpush.bf16.msrb.mxu1 %v1401_v24 }
  0xdc   :  { %1031 = vmatpush.bf16.msrb.mxu2 %v1149_v27  ;;  %1044 = vmatpush.bf16.msrb.mxu3 %v1405_v28 }
  0xdf   :  { %1006 = vmatpush.bf16.msrb.mxu0 %v1113_v35  ;;  %1019 = vmatpush.bf16.msrb.mxu1 %v1369_v36 }
  0xe0   :  { %1032 = vmatpush.bf16.msrb.mxu2 %v1117_v37  ;;  %1045 = vmatpush.bf16.msrb.mxu3 %v1373_v38 }
  0xe2   :  { %1007 = vmatmul.bf16.vlgmr.msrb.gmra.mxu0 %v1807_v41  ;;  %1020 = vmatmul.bf16.vlgmr.msrb.gmra.mxu1 %v1809_v42 }
  0xe3   :  { %1033 = vmatmul.bf16.vlgmr.msrb.gmra.mxu2 %v1807_v41  ;;  %1046 = vmatmul.bf16.vlgmr.msrb.gmra.mxu3 %v1809_v42 }
 0x11e   :  { %v852_v39 = vpop.f32.mrf.mxu0  ;;  %v865_v40 = vpop.f32.mrf.mxu1 }
 0x11f   :  { %v866_v43 = vadd.f32 %v865_v40, %v852_v39 }
 0x125   :  { %v878_v44 = vpop.f32.mrf.mxu2  ;;  %v891_v45 = vpop.f32.mrf.mxu3 }
 0x126   :  { %v854_v46 = vpop.f32.mrf.mxu0  ;;  %v867_v0 = vpop.f32.mrf.mxu1  ;;  %v892_v5 = vadd.f32 %v891_v45, %v878_v44 }
 0x128   :  { %v1059_v13 = vrot.slane %v892_v5, 7 }
 0x12a   :  { %v1066_v21 = vsel %vm37_vm0, %v866_v43, %v1059_v13 }
 0x12d   :  { %v880_v47 = vpop.f32.mrf.mxu2  ;;  %v893_v48 = vpop.f32.mrf.mxu3 }
 0x12e   :  { %v904_v49 = vpop.f32.mrf.mxu0  ;;  %v917_v50 = vpop.f32.mrf.mxu1 }
 0x12f   :  { %v918_v4 = vadd.f32 %v917_v50, %v904_v49 }
 0x131   :  { %v1060_v10 = vrot.slane %v918_v4, 6 }
 0x135   :  { %v930_v51 = vpop.f32.mrf.mxu2  ;;  %v943_v52 = vpop.f32.mrf.mxu3 }
 0x136   :  { %v906_v53 = vpop.f32.mrf.mxu0  ;;  %v919_v54 = vpop.f32.mrf.mxu1  ;;  %v944_v3 = vadd.f32 %v943_v52, %v930_v51 }
 0x138   :  { %v1061_v7 = vrot.slane %v944_v3, 5 }
 0x13a   :  { %v1068_v18 = vsel %vm1067_vm5, %v1060_v10, %v1061_v7 }
 0x13b   :  { %v1070_v24 = vsel %vm1069_vm6, %v1066_v21, %v1068_v18 }
 0x13d   :  { %v932_v55 = vpop.f32.mrf.mxu2  ;;  %v945_v56 = vpop.f32.mrf.mxu3 }
 0x13f   :  { %v956_v41 = vpop.f32.mrf.mxu0  ;;  %v969_v57 = vpop.f32.mrf.mxu1 }
 0x140   :  { %v970_v8 = vadd.f32 %v969_v57, %v956_v41 }
 0x142   :  { %v1062_v19 = vrot.slane %v970_v8, 4 }
 0x147   :  { %v958_v59 = vpop.f32.mrf.mxu0  ;;  %v971_v60 = vpop.f32.mrf.mxu1 }
 0x148   :  { %v982_v42 = vpop.f32.mrf.mxu2  ;;  %v995_v58 = vpop.f32.mrf.mxu3 }
 0x149   :  { %v996_v6 = vadd.f32 %v995_v58, %v982_v42 }
 0x14b   :  { %v1063_v14 = vrot.slane %v996_v6, 3 }
 0x14d   :  { %v1072_v22 = vsel %vm1071_vm7, %v1062_v19, %v1063_v14 }
 0x150   :  { %v984_v61 = vpop.f32.mrf.mxu2  ;;  %v997_v62 = vpop.f32.mrf.mxu3 }
 0x15f   :  { %v1008_v63 = vpop.f32.mrf.mxu0  ;;  %v1021_v1 = vpop.f32.mrf.mxu1 }
 0x160   :  { %v1022_v9 = vadd.f32 %v1021_v1, %v1008_v63 }
 0x162   :  { %v1064_v20 = vrot.slane %v1022_v9, 2 }
 0x166   :  { %v1034_v11 = vpop.f32.mrf.mxu2  ;;  %v1047_v12 = vpop.f32.mrf.mxu3 }
 0x167   :  { %v1048_v15 = vadd.f32 %v1047_v12, %v1034_v11  ;;  %v1010_v16 = vpop.f32.mrf.mxu0  ;;  %v1023_v17 = vpop.f32.mrf.mxu1 }
 0x169   :  { %v1065_v2 = vrot.slane %v1048_v15, 1 }
 0x16b   :  { %v1074_v23 = vsel %vm1073_vm8, %v1064_v20, %v1065_v2 }
 0x16c   :  { %v1076_v25 = vsel %vm1075_vm9, %v1072_v22, %v1074_v23 }
 0x16d   :  { %v1078_v26 = vsel %vm1077_vm10, %v1070_v24, %v1076_v25 }
 0x16e   :  { %1080 = vst [vmem:[%s1834_s3] sm:$0xff] %v1078_v26  ;;  %v1036_v27 = vpop.f32.mrf.mxu2  ;;  %v1049_v28 = vpop.f32.mrf.mxu3 }
 0x16f   :  { %1085 = vsyncpa [#allocation3], 1 }

// kernel: llama_forward.3
= control target key start
LH: loop header
LB: loop body
LE: loop exit
PB: predicated region body
PF: predicated region fallthrough
CT: control target
= control target key end

     0   :  { %17 = vsyncpa [#allocation3], 0  ;;  %s4885_s0 = inlined_call_operand.vmem [shape: f32[8,256], index: 0, kind: input, shape index: {}]   ;;  %s4886_s1 = inlined_call_operand.vmem [shape: f32[8,32], index: 1, kind: input, shape index: {}]   ;;  %s4887_s2 = inlined_call_operand.vmem [shape: f32[8,32], index: 2, kind: input, shape index: {}]   ;;  %s4888_s3 = inlined_call_operand.vmem [shape: f32[1,256], index: 3, kind: input, shape index: {}]   ;;  %s4889_s4 = inlined_call_operand.vmem [shape: f32[1,256], index: 4, kind: input, shape index: {}]   ;;  %s4890_s5 = inlined_call_operand.hbm [shape: bf16[256,512], index: 5, kind: input, shape index: {}]   ;;  %s4891_s6 = inlined_call_operand.hbm [shape: bf16[256,256], index: 6, kind: input, shape index: {}]   ;;  %s4892_s7 = inlined_call_operand.hbm [shape: bf16[256,1024], index: 7, kind: input, shape index: {}]   ;;  %s4893_s8 = inlined_call_operand.hbm [shape: bf16[512,256], index: 8, kind: input, shape index: {}]   ;;  %s4894_s9 = inlined_call_operand.vmem [shape: f32[8,256], index: 9, kind: output, shape index: {0}]   ;;  %s4895_s10 = inlined_call_operand.hbm [shape: bf16[8,128], index: 10, kind: output, shape index: {1}]   ;;  %s4896_s11 = inlined_call_operand.hbm [shape: bf16[8,128], index: 11, kind: output, shape index: {2}]  }
   0x1   :  { %18 = vsyncpa [#allocation6], 0 }
   0x2   :  { %19 = vsyncpa [#allocation9], 0 }
   0x3   :  { %20 = vsyncpa [#allocation4], 0  ;;  %s49_s19 = sshll.u32 %s4891_s6, 4  ;;  %s50_s19 = int_to_ptr.hbm [resolvable:$true] %s49_s19 }
   0x4   :  { %21 = vsyncpa [#allocation12], 0  ;;  %s4506_s20 = smov [#allocation5]   ;;  %s36_s24 = sshll.u32 %s4890_s5, 4  ;;  %s37_s24 = int_to_ptr.hbm [resolvable:$true] %s36_s24 }
   0x5   :  { %s51_s21 = sshll.u32 %s4506_s20, 4  ;;  %s4507_s25 = smov 128   ;;  %s52_s21 = int_to_ptr.vmem [resolvable:$true] %s51_s21 }
   0x6   :  { %s4508_s26 = smov 8   ;;  %s4509_s27 = smov [#allocation2]  }
   0x7   :  { %57 = dma.hbm_to_vmem [thread:$0]  %s50_s19, 4096, %s52_s21, [#allocation6], %s4507_s25, %s4507_s25, %s4508_s26  }
   0x8   :  { %s38_s28 = sshll.u32 %s4509_s27, 4  ;;  %s4510_s29 = smov 256   ;;  %s39_s28 = int_to_ptr.vmem [resolvable:$true] %s38_s28 }
   0x9   :  { %s4511_s30 = smov 16   ;;  %s62_s13 = sshll.u32 %s4892_s7, 4  ;;  %s63_s13 = int_to_ptr.hbm [resolvable:$true] %s62_s13 }
   0xa   :  { %44 = dma.hbm_to_vmem [thread:$0]  %s37_s24, 8192, %s39_s28, [#allocation3], %s4510_s29, %s4510_s29, %s4511_s30  }
   0xb   :  { %s4512_s14 = smov [#allocation7]   ;;  %s75_s17 = sshll.u32 %s4893_s8, 4  ;;  %s76_s17 = int_to_ptr.hbm [resolvable:$true] %s75_s17 }
   0xc   :  { %s64_s15 = sshll.u32 %s4512_s14, 4  ;;  %s4513_s18 = smov 512   ;;  %s65_s15 = int_to_ptr.vmem [resolvable:$true] %s64_s15 }
   0xd   :  { %s4514_s19 = smov 32   ;;  %s4515_s20 = smov [#allocation8]  }
   0xe   :  { %70 = dma.hbm_to_vmem [thread:$0]  %s63_s13, 16384, %s65_s15, [#allocation6], %s4513_s18, %s4513_s18, %s4514_s19  }
   0xf   :  { %s77_s21 = sshll.u32 %s4515_s20, 4  ;;  %s78_s21 = int_to_ptr.vmem [resolvable:$true] %s77_s21 }
  0x10   :  { %83 = dma.hbm_to_vmem [thread:$0]  %s76_s17, 8192, %s78_s21, [#allocation9], %s4507_s25, %s4507_s25, %s4508_s26  }
  0x11   :  { %4496 = dma.done.wait [#allocation3], 8192  }
  0x12   :  { %4497 = vsyncadd [#allocation3], 4294959104 }
  0x13   :  { %4498 = dma.done.wait [#allocation6], 20480  }
  0x14   :  { %4499 = vsyncadd [#allocation6], 4294946816 }
  0x15   :  { %4500 = dma.done.wait [#allocation9], 8192  }
  0x16   :  { %4501 = vsyncadd [#allocation9], 4294959104  ;;  %v4597_v0 = vld [vmem:[%s4885_s0] sm:$0xff]  ;;  %v4602_v1 = vld [vmem:[%s4885_s0 + $0x8] sm:$0xff]  ;;  %v4516_v60 = vmov 256.0   ;;  %s4517_s26 = smov 64  }
  0x17   :  { %v2952_v2 = vld [vmem:[#allocation2 + $0xe0] sm:$0xf]  ;;  %v102_v3 = vmul.f32 %v4597_v0, %v4597_v0  ;;  %v103_v4 = vmul.f32 %v4602_v1, %v4602_v1  ;;  %v4034_v5 = vld [vmem:[#allocation2 + $0xec] sm:$0xf0]  ;;  %v4032_v10 = vld [vmem:[#allocation2 + $0xe4] sm:$0xf]  ;;  %4312 = vrcp.f32 %v4516_v60 }
  0x18   :  { %v3080_v6 = vld [vmem:[#allocation2 + $0x1e0] sm:$0xf]  ;;  %v4066_v7 = vld [vmem:[#allocation2 + $0x1ec] sm:$0xf0]  ;;  %v2953_v8 = vor.u32 %v4034_v5, %v2952_v2  ;;  %v2954_v11 = vld [vmem:[#allocation2 + $0xf0] sm:$0xf0] }
  0x19   :  { %v3081_v9 = vor.u32 %v4066_v7, %v3080_v6  ;;  %v4064_v12 = vld [vmem:[#allocation2 + $0x1e4] sm:$0xf]  ;;  %v104_v13 = vadd.f32 %v103_v4, %v102_v3  ;;  %v2957_v14 = vor.u32 %v4032_v10, %v2954_v11  ;;  %v3082_v15 = vld [vmem:[#allocation2 + $0x1f0] sm:$0xf0]  ;;  %v2936_v16 = vld [vmem:[#allocation2 + $0xc0] sm:$0xf] }
  0x1a   :  { %v4030_v17 = vld [vmem:[#allocation2 + $0xcc] sm:$0xf0]  ;;  %522 = vmatpush.bf16.msra.mxu0 %v2953_v8  ;;  %v3085_v18 = vor.u32 %v4064_v12, %v3082_v15  ;;  %v3064_v20 = vld [vmem:[#allocation2 + $0x1c0] sm:$0xf]  ;;  %v4028_v22 = vld [vmem:[#allocation2 + $0xc4] sm:$0xf] }
  0x1b   :  { %535 = vmatpush.bf16.msra.mxu1 %v3081_v9  ;;  %v2937_v19 = vor.u32 %v4030_v17, %v2936_v16  ;;  %v4062_v21 = vld [vmem:[#allocation2 + $0x1cc] sm:$0xf0]  ;;  %105 = vadd.xlane.f32.xlu0 %v104_v13  ;;  %v2938_v24 = vld [vmem:[#allocation2 + $0xd0] sm:$0xf0]  ;;  %v4060_v25 = vld [vmem:[#allocation2 + $0x1c4] sm:$0xf] }
  0x1c   :  { %548 = vmatpush.bf16.msra.mxu2 %v2957_v14  ;;  %v3065_v23 = vor.u32 %v4062_v21, %v3064_v20  ;;  %v3066_v26 = vld [vmem:[#allocation2 + $0x1d0] sm:$0xf0]  ;;  %561 = vmatpush.bf16.msra.mxu3 %v3085_v18  ;;  %v2941_v27 = vor.u32 %v4028_v22, %v2938_v24  ;;  %v2920_v29 = vld [vmem:[#allocation2 + $0xa0] sm:$0xf]  ;;  %v4026_v30 = vld [vmem:[#allocation2 + $0xac] sm:$0xf0] }
  0x1d   :  { %v3069_v28 = vor.u32 %v4060_v25, %v3066_v26  ;;  %v3048_v31 = vld [vmem:[#allocation2 + $0x1a0] sm:$0xf]  ;;  %v4058_v32 = vld [vmem:[#allocation2 + $0x1ac] sm:$0xf0]  ;;  %v4024_v33 = vld [vmem:[#allocation2 + $0xa4] sm:$0xf]  ;;  %v2921_v35 = vor.u32 %v4026_v30, %v2920_v29  ;;  %v4608_v16 = vpop.eup %4312 }
  0x1e   :  { %v2922_v34 = vld [vmem:[#allocation2 + $0xb0] sm:$0xf0]  ;;  %523 = vmatpush.bf16.msra.mxu0 %v2937_v19  ;;  %v3049_v36 = vor.u32 %v4058_v32, %v3048_v31  ;;  %v4056_v37 = vld [vmem:[#allocation2 + $0x1a4] sm:$0xf]  ;;  %v2904_v39 = vld [vmem:[#allocation2 + $0x80] sm:$0xf]  ;;  %vm112_vm0 = vweird.f32 %v4608_v16 }
  0x1f   :  { %536 = vmatpush.bf16.msra.mxu1 %v3065_v23  ;;  %v3050_v38 = vld [vmem:[#allocation2 + $0x1b0] sm:$0xf0]  ;;  %v2925_v40 = vor.u32 %v4024_v33, %v2922_v34  ;;  %v4022_v41 = vld [vmem:[#allocation2 + $0x8c] sm:$0xf0]  ;;  %v3032_v42 = vld [vmem:[#allocation2 + $0x180] sm:$0xf] }
  0x20   :  { %549 = vmatpush.bf16.msra.mxu2 %v2941_v27  ;;  %v4054_v43 = vld [vmem:[#allocation2 + $0x18c] sm:$0xf0]  ;;  %562 = vmatpush.bf16.msra.mxu3 %v3069_v28  ;;  %v3053_v44 = vor.u32 %v4056_v37, %v3050_v38  ;;  %v4020_v45 = vld [vmem:[#allocation2 + $0x84] sm:$0xf]  ;;  %v2906_v46 = vld [vmem:[#allocation2 + $0x90] sm:$0xf0]  ;;  %v2905_v49 = vor.u32 %v4022_v41, %v2904_v39 }
  0x21   :  { %v4052_v47 = vld [vmem:[#allocation2 + $0x184] sm:$0xf]  ;;  %v3034_v48 = vld [vmem:[#allocation2 + $0x190] sm:$0xf0]  ;;  %v3033_v50 = vor.u32 %v4054_v43, %v3032_v42  ;;  %v2909_v51 = vor.u32 %v4020_v45, %v2906_v46  ;;  %v2888_v53 = vld [vmem:[#allocation2 + $0x60] sm:$0xf] }
  0x22   :  { %524 = vmatpush.bf16.msra.mxu0 %v2921_v35  ;;  %v3037_v52 = vor.u32 %v4052_v47, %v3034_v48  ;;  %v4018_v54 = vld [vmem:[#allocation2 + $0x6c] sm:$0xf0]  ;;  %v3016_v55 = vld [vmem:[#allocation2 + $0x160] sm:$0xf]  ;;  %v4016_v58 = vld [vmem:[#allocation2 + $0x64] sm:$0xf] }
  0x23   :  { %537 = vmatpush.bf16.msra.mxu1 %v3049_v36  ;;  %v2889_v56 = vor.u32 %v4018_v54, %v2888_v53  ;;  %v4050_v57 = vld [vmem:[#allocation2 + $0x16c] sm:$0xf0]  ;;  %v2890_v59 = vld [vmem:[#allocation2 + $0x70] sm:$0xf0]  ;;  %v4048_v63 = vld [vmem:[#allocation2 + $0x164] sm:$0xf] }
  0x24   :  { %550 = vmatpush.bf16.msra.mxu2 %v2925_v40  ;;  %563 = vmatpush.bf16.msra.mxu3 %v3053_v44  ;;  %v3017_v61 = vor.u32 %v4050_v57, %v3016_v55  ;;  %v2893_v62 = vor.u32 %v4016_v58, %v2890_v59  ;;  %v3018_v2 = vld [vmem:[#allocation2 + $0x170] sm:$0xf0]  ;;  %v2872_v4 = vld [vmem:[#allocation2 + $0x40] sm:$0xf]  ;;  %v4014_v5 = vld [vmem:[#allocation2 + $0x4c] sm:$0xf0] }
  0x25   :  { %v3021_v3 = vor.u32 %v4048_v63, %v3018_v2  ;;  %v3000_v6 = vld [vmem:[#allocation2 + $0x140] sm:$0xf]  ;;  %v2873_v7 = vor.u32 %v4014_v5, %v2872_v4  ;;  %v4046_v8 = vld [vmem:[#allocation2 + $0x14c] sm:$0xf0]  ;;  %v4012_v9 = vld [vmem:[#allocation2 + $0x44] sm:$0xf] }
  0x26   :  { %525 = vmatpush.bf16.msra.mxu0 %v2905_v49  ;;  %v2874_v10 = vld [vmem:[#allocation2 + $0x50] sm:$0xf0]  ;;  %v3001_v11 = vor.u32 %v4046_v8, %v3000_v6  ;;  %v4044_v13 = vld [vmem:[#allocation2 + $0x144] sm:$0xf]  ;;  %v2856_v17 = vld [vmem:[#allocation2 + $0x20] sm:$0xf] }
  0x27   :  { %538 = vmatpush.bf16.msra.mxu1 %v3033_v50  ;;  %v2877_v12 = vor.u32 %v4012_v9, %v2874_v10  ;;  %v3002_v14 = vld [vmem:[#allocation2 + $0x150] sm:$0xf0]  ;;  %v4010_v18 = vld [vmem:[#allocation2 + $0x2c] sm:$0xf0]  ;;  %v2984_v19 = vld [vmem:[#allocation2 + $0x120] sm:$0xf] }
  0x28   :  { %551 = vmatpush.bf16.msra.mxu2 %v2909_v51  ;;  %564 = vmatpush.bf16.msra.mxu3 %v3037_v52  ;;  %v3005_v15 = vor.u32 %v4044_v13, %v3002_v14  ;;  %v2857_v20 = vor.u32 %v4010_v18, %v2856_v17  ;;  %v4042_v21 = vld [vmem:[#allocation2 + $0x12c] sm:$0xf0]  ;;  %v4008_v22 = vld [vmem:[#allocation2 + $0x24] sm:$0xf]  ;;  %v2858_v23 = vld [vmem:[#allocation2 + $0x30] sm:$0xf0] }
  0x29   :  { %v2985_v24 = vor.u32 %v4042_v21, %v2984_v19  ;;  %v2861_v25 = vor.u32 %v4008_v22, %v2858_v23  ;;  %v4040_v26 = vld [vmem:[#allocation2 + $0x124] sm:$0xf]  ;;  %v2986_v27 = vld [vmem:[#allocation2 + $0x130] sm:$0xf0]  ;;  %v4611_v28 = vmul.f32 256.0, %v4608_v16  ;;  %s4518_s27 = smov 96  }
  0x2a   :  { %526 = vmatpush.bf16.msra.mxu0 %v2889_v56  ;;  %v2989_v29 = vor.u32 %v4040_v26, %v2986_v27  ;;  %v2840_v30 = vld [vmem:[#allocation2] sm:$0xf]  ;;  %v4006_v31 = vld [vmem:[#allocation2 + $0xc] sm:$0xf0]  ;;  %v4004_v35 = vld [vmem:[#allocation2 + $0x4] sm:$0xf] }
  0x2b   :  { %539 = vmatpush.bf16.msra.mxu1 %v3017_v61  ;;  %v2968_v32 = vld [vmem:[#allocation2 + $0x100] sm:$0xf]  ;;  %v2841_v33 = vor.u32 %v4006_v31, %v2840_v30  ;;  %v4038_v34 = vld [vmem:[#allocation2 + $0x10c] sm:$0xf0]  ;;  %v2842_v36 = vld [vmem:[#allocation2 + $0x10] sm:$0xf0] }
  0x2c   :  { %552 = vmatpush.bf16.msra.mxu2 %v2893_v62  ;;  %565 = vmatpush.bf16.msra.mxu3 %v3021_v3  ;;  %v2969_v37 = vor.u32 %v4038_v34, %v2968_v32  ;;  %v2845_v38 = vor.u32 %v4004_v35, %v2842_v36  ;;  %v4036_v39 = vld [vmem:[#allocation2 + $0x104] sm:$0xf]  ;;  %v2970_v40 = vld [vmem:[#allocation2 + $0x110] sm:$0xf0]  ;;  %v2960_v41 = vld [vmem:[#allocation2 + $0xe8] sm:$0xf] }
  0x2d   :  { %v2973_v42 = vor.u32 %v4036_v39, %v2970_v40  ;;  %v4035_v43 = vld [vmem:[#allocation2 + $0xf4] sm:$0xf0]  ;;  %v3088_v44 = vld [vmem:[#allocation2 + $0x1e8] sm:$0xf]  ;;  %v4033_v48 = vld [vmem:[#allocation2 + $0xec] sm:$0xf] }
  0x2e   :  { %527 = vmatpush.bf16.msra.mxu0 %v2873_v7  ;;  %v4067_v45 = vld [vmem:[#allocation2 + $0x1f4] sm:$0xf0]  ;;  %v2961_v46 = vor.u32 %v4035_v43, %v2960_v41  ;;  %v2962_v49 = vld [vmem:[#allocation2 + $0xf8] sm:$0xf0]  ;;  %v4065_v50 = vld [vmem:[#allocation2 + $0x1ec] sm:$0xf] }
  0x2f   :  { %540 = vmatpush.bf16.msra.mxu1 %v3001_v11  ;;  %v3089_v47 = vor.u32 %v4067_v45, %v3088_v44  ;;  %v2965_v51 = vor.u32 %v4033_v48, %v2962_v49  ;;  %v3090_v52 = vld [vmem:[#allocation2 + $0x1f8] sm:$0xf0]  ;;  %v2944_v53 = vld [vmem:[#allocation2 + $0xc8] sm:$0xf]  ;;  %v4031_v54 = vld [vmem:[#allocation2 + $0xd4] sm:$0xf0] }
  0x30   :  { %553 = vmatpush.bf16.msra.mxu2 %v2877_v12  ;;  %566 = vmatpush.bf16.msra.mxu3 %v3005_v15  ;;  %v3093_v55 = vor.u32 %v4065_v50, %v3090_v52  ;;  %v2945_v56 = vor.u32 %v4031_v54, %v2944_v53  ;;  %v3072_v57 = vld [vmem:[#allocation2 + $0x1c8] sm:$0xf]  ;;  %v4063_v58 = vld [vmem:[#allocation2 + $0x1d4] sm:$0xf0]  ;;  %v4029_v59 = vld [vmem:[#allocation2 + $0xcc] sm:$0xf] }
  0x31   :  { %v3073_v60 = vor.u32 %v4063_v58, %v3072_v57  ;;  %v2946_v61 = vld [vmem:[#allocation2 + $0xd8] sm:$0xf0]  ;;  %v4061_v62 = vld [vmem:[#allocation2 + $0x1cc] sm:$0xf]  ;;  %v109_v2 = vsub.f32 1.0, %v4611_v28  ;;  %v4623_v44 = vld [vmem:[%s4887_s2] sm:$0xff] }
  0x32   :  { %528 = vmatpush.bf16.msra.mxu0 %v2857_v20  ;;  %v3074_v63 = vld [vmem:[#allocation2 + $0x1d8] sm:$0xf0]  ;;  %v2949_v3 = vor.u32 %v4029_v59, %v2946_v61  ;;  %v2928_v5 = vld [vmem:[#allocation2 + $0xa8] sm:$0xf]  ;;  %v4027_v6 = vld [vmem:[#allocation2 + $0xb4] sm:$0xf0]  ;;  %689 = vrot.lane.b32.xlu1 %v4623_v44, %s4517_s26 }
  0x33   :  { %541 = vmatpush.bf16.msra.mxu1 %v2985_v24  ;;  %v3077_v4 = vor.u32 %v4061_v62, %v3074_v63  ;;  %v3056_v7 = vld [vmem:[#allocation2 + $0x1a8] sm:$0xf]  ;;  %v2929_v8 = vor.u32 %v4027_v6, %v2928_v5  ;;  %v4059_v9 = vld [vmem:[#allocation2 + $0x1b4] sm:$0xf0]  ;;  %v4025_v10 = vld [vmem:[#allocation2 + $0xac] sm:$0xf]  ;;  %v110_v17 = vmul.f32 %v4608_v16, %v109_v2  ;;  %676 = vrot.lane.b32.xlu0 %v4623_v44, %s4518_s27 }
  0x34   :  { %554 = vmatpush.bf16.msra.mxu2 %v2861_v25  ;;  %567 = vmatpush.bf16.msra.mxu3 %v2989_v29  ;;  %v2930_v11 = vld [vmem:[#allocation2 + $0xb8] sm:$0xf0]  ;;  %v3057_v12 = vor.u32 %v4059_v9, %v3056_v7  ;;  %v4057_v14 = vld [vmem:[#allocation2 + $0x1ac] sm:$0xf]  ;;  %v2912_v19 = vld [vmem:[#allocation2 + $0x88] sm:$0xf] }
  0x35   :  { %v2933_v13 = vor.u32 %v4025_v10, %v2930_v11  ;;  %v3058_v15 = vld [vmem:[#allocation2 + $0x1b8] sm:$0xf0]  ;;  %v4023_v20 = vld [vmem:[#allocation2 + $0x94] sm:$0xf0]  ;;  %v3040_v21 = vld [vmem:[#allocation2 + $0x188] sm:$0xf]  ;;  %v111_v30 = vadd.f32 %v4608_v16, %v110_v17 }
  0x36   :  { %529 = vmatpush.bf16.msra.mxu0 %v2841_v33  ;;  %v3061_v18 = vor.u32 %v4057_v14, %v3058_v15  ;;  %v2913_v22 = vor.u32 %v4023_v20, %v2912_v19  ;;  %v4055_v23 = vld [vmem:[#allocation2 + $0x194] sm:$0xf0]  ;;  %v4021_v24 = vld [vmem:[#allocation2 + $0x8c] sm:$0xf]  ;;  %v2914_v25 = vld [vmem:[#allocation2 + $0x98] sm:$0xf0] }
  0x37   :  { %542 = vmatpush.bf16.msra.mxu1 %v2969_v37  ;;  %v3041_v26 = vor.u32 %v4055_v23, %v3040_v21  ;;  %v2917_v27 = vor.u32 %v4021_v24, %v2914_v25  ;;  %v4053_v28 = vld [vmem:[#allocation2 + $0x18c] sm:$0xf]  ;;  %v3042_v29 = vld [vmem:[#allocation2 + $0x198] sm:$0xf0]  ;;  %v2896_v32 = vld [vmem:[#allocation2 + $0x68] sm:$0xf]  ;;  %v4618_v39 = vsel %vm112_vm0, %v4608_v16, %v111_v30 }
  0x38   :  { %555 = vmatpush.bf16.msra.mxu2 %v2845_v38  ;;  %568 = vmatpush.bf16.msra.mxu3 %v2973_v42  ;;  %v3045_v31 = vor.u32 %v4053_v28, %v3042_v29  ;;  %v4019_v33 = vld [vmem:[#allocation2 + $0x74] sm:$0xf0]  ;;  %v3024_v34 = vld [vmem:[#allocation2 + $0x168] sm:$0xf]  ;;  %v4017_v37 = vld [vmem:[#allocation2 + $0x6c] sm:$0xf] }
  0x39   :  { %v2897_v35 = vor.u32 %v4019_v33, %v2896_v32  ;;  %v4051_v36 = vld [vmem:[#allocation2 + $0x174] sm:$0xf0]  ;;  %v2898_v38 = vld [vmem:[#allocation2 + $0x78] sm:$0xf0]  ;;  %v4049_v42 = vld [vmem:[#allocation2 + $0x16c] sm:$0xf] }
  0x3a   :  { %574 = vmatpush.bf16.msrb.mxu0 %v2961_v46  ;;  %v3025_v40 = vor.u32 %v4051_v36, %v3024_v34  ;;  %v2901_v41 = vor.u32 %v4017_v37, %v2898_v38  ;;  %v3026_v43 = vld [vmem:[#allocation2 + $0x178] sm:$0xf0]  ;;  %v2880_v46 = vld [vmem:[#allocation2 + $0x48] sm:$0xf]  ;;  %v4047_v50 = vld [vmem:[#allocation2 + $0x154] sm:$0xf0] }
  0x3b   :  { %587 = vmatpush.bf16.msrb.mxu1 %v3089_v47  ;;  %v3029_v45 = vor.u32 %v4049_v42, %v3026_v43  ;;  %v4015_v47 = vld [vmem:[#allocation2 + $0x54] sm:$0xf0]  ;;  %v3008_v48 = vld [vmem:[#allocation2 + $0x148] sm:$0xf]  ;;  %v2882_v52 = vld [vmem:[#allocation2 + $0x58] sm:$0xf0] }
  0x3c   :  { %600 = vmatpush.bf16.msrb.mxu2 %v2965_v51  ;;  %613 = vmatpush.bf16.msrb.mxu3 %v3093_v55  ;;  %v2881_v49 = vor.u32 %v4015_v47, %v2880_v46  ;;  %v4013_v51 = vld [vmem:[#allocation2 + $0x4c] sm:$0xf]  ;;  %v3009_v54 = vor.u32 %v4047_v50, %v3008_v48  ;;  %v3010_v57 = vld [vmem:[#allocation2 + $0x158] sm:$0xf0]  ;;  %v2864_v58 = vld [vmem:[#allocation2 + $0x28] sm:$0xf] }
  0x3d   :  { %v2885_v55 = vor.u32 %v4013_v51, %v2882_v52  ;;  %v2992_v61 = vld [vmem:[#allocation2 + $0x128] sm:$0xf]  ;;  %v4043_v62 = vld [vmem:[#allocation2 + $0x134] sm:$0xf0]  ;;  %v4009_v2 = vld [vmem:[#allocation2 + $0x2c] sm:$0xf] }
  0x3e   :  { %575 = vmatpush.bf16.msrb.mxu0 %v2945_v56  ;;  %v4045_v56 = vld [vmem:[#allocation2 + $0x14c] sm:$0xf]  ;;  %v2993_v5 = vor.u32 %v4043_v62, %v2992_v61  ;;  %v2994_v7 = vld [vmem:[#allocation2 + $0x138] sm:$0xf0]  ;;  %v2848_v10 = vld [vmem:[#allocation2 + $0x8] sm:$0xf] }
  0x3f   :  { %588 = vmatpush.bf16.msrb.mxu1 %v3073_v60  ;;  %v3013_v59 = vor.u32 %v4045_v56, %v3010_v57  ;;  %v4011_v60 = vld [vmem:[#allocation2 + $0x34] sm:$0xf0]  ;;  %v4041_v6 = vld [vmem:[#allocation2 + $0x12c] sm:$0xf]  ;;  %v2850_v17 = vld [vmem:[#allocation2 + $0x18] sm:$0xf0] }
  0x40   :  { %601 = vmatpush.bf16.msrb.mxu2 %v2949_v3  ;;  %614 = vmatpush.bf16.msrb.mxu3 %v3077_v4  ;;  %v2866_v3 = vld [vmem:[#allocation2 + $0x38] sm:$0xf0]  ;;  %v2865_v4 = vor.u32 %v4011_v60, %v2864_v58  ;;  %v4007_v11 = vld [vmem:[#allocation2 + $0x14] sm:$0xf0]  ;;  %v4005_v15 = vld [vmem:[#allocation2 + $0xc] sm:$0xf] }
  0x41   :  { %v2869_v9 = vor.u32 %v4009_v2, %v2866_v3  ;;  %v4039_v14 = vld [vmem:[#allocation2 + $0x114] sm:$0xf0]  ;;  %v2978_v19 = vld [vmem:[#allocation2 + $0x118] sm:$0xf0]  ;;  %v2849_v20 = vor.u32 %v4007_v11, %v2848_v10  ;;  %v128_v29 = vld [vmem:[%s4888_s3] sm:$0x3] }
  0x42   :  { %576 = vmatpush.bf16.msrb.mxu0 %v2929_v8  ;;  %v4633_v8 = vld [vmem:[%s4886_s1] sm:$0xff]  ;;  %v131_v32 = vperm.slane %v128_v29, 1  ;;  %vm707_vm4 = vcmask 523264   ;;  %vm655_vm5 = vcmask 261120   ;;  %vm744_vm7 = vcmask 64512   ;;  %s2808_s5 = sshll.u32 %s4895_s10, 4  ;;  %s2809_s5 = int_to_ptr.hbm [resolvable:$true] %s2808_s5 }
  0x43   :  { %589 = vmatpush.bf16.msrb.mxu1 %v3057_v12  ;;  %v2976_v12 = vld [vmem:[#allocation2 + $0x108] sm:$0xf]  ;;  %685 = vrot.lane.b32.xlu2 %v4633_v8, %s4518_s27  ;;  %s4520_s17 = smov [#allocation11]   ;;  %s2819_s21 = sshll.u32 %s4896_s11, 4  ;;  %s2820_s21 = int_to_ptr.hbm [resolvable:$true] %s2819_s21 }
  0x44   :  { %602 = vmatpush.bf16.msrb.mxu2 %v2933_v13  ;;  %615 = vmatpush.bf16.msrb.mxu3 %v3061_v18  ;;  %v2997_v13 = vor.u32 %v4041_v6, %v2994_v7  ;;  %v4037_v18 = vld [vmem:[#allocation2 + $0x10c] sm:$0xf]  ;;  %v2977_v21 = vor.u32 %v4039_v14, %v2976_v12  ;;  %s2817_s18 = sshll.u32 %s4520_s17, 4  ;;  %s2818_s18 = int_to_ptr.vmem [resolvable:$true] %s2817_s18 }
  0x45   :  { %672 = vrot.lane.b32.xlu1 %v4633_v8, %s4517_s26  ;;  %v2981_v23 = vor.u32 %v4037_v18, %v2978_v19 }
  0x46   :  { %577 = vmatpush.bf16.msrb.mxu0 %v2913_v22  ;;  %v2853_v22 = vor.u32 %v4005_v15, %v2850_v17 }
  0x47   :  { %590 = vmatpush.bf16.msrb.mxu1 %v3041_v26 }
  0x48   :  { %603 = vmatpush.bf16.msrb.mxu2 %v2917_v27  ;;  %616 = vmatpush.bf16.msrb.mxu3 %v3045_v31  ;;  %v130_v31 = vperm.slane %v128_v29, 0 }
  0x4a   :  { %578 = vmatpush.bf16.msrb.mxu0 %v2897_v35 }
  0x4b   :  { %591 = vmatpush.bf16.msrb.mxu1 %v3025_v40 }
  0x4c   :  { %604 = vmatpush.bf16.msrb.mxu2 %v2901_v41  ;;  %617 = vmatpush.bf16.msrb.mxu3 %v3029_v45 }
  0x4e   :  { %579 = vmatpush.bf16.msrb.mxu0 %v2881_v49 }
  0x4f   :  { %592 = vmatpush.bf16.msrb.mxu1 %v3009_v54 }
  0x50   :  { %605 = vmatpush.bf16.msrb.mxu2 %v2885_v55  ;;  %618 = vmatpush.bf16.msrb.mxu3 %v3013_v59 }
  0x52   :  { %580 = vmatpush.bf16.msrb.mxu0 %v2865_v4 }
  0x53   :  { %593 = vmatpush.bf16.msrb.mxu1 %v2993_v5 }
  0x54   :  { %606 = vmatpush.bf16.msrb.mxu2 %v2869_v9  ;;  %619 = vmatpush.bf16.msrb.mxu3 %v2997_v13 }
  0x56   :  { %581 = vmatpush.bf16.msrb.mxu0 %v2849_v20 }
  0x57   :  { %594 = vmatpush.bf16.msrb.mxu1 %v2977_v21 }
  0x58   :  { %607 = vmatpush.bf16.msrb.mxu2 %v2853_v22  ;;  %620 = vmatpush.bf16.msrb.mxu3 %v2981_v23 }
  0x8e   :  { %v106_v16 = vpop.xlane.xlu0 %105 }
  0x8f   :  { %v114_v53 = vmul.f32 %v4618_v39, %v106_v16 }
  0x91   :  { %v115_v63 = vadd.f32 1e-06, %v114_v53 }
  0x93   :  { %4314 = vrsqrt.f32 %v115_v63  ;;  %vm122_vm2 = vweird.f32 %v115_v63 }
  0x99   :  { %v4315_v24 = vpop.eup %4314 }
  0x9a   :  { %v117_v25 = vmul.f32 %v4315_v24, %v115_v63  ;;  %vm123_vm1 = vweird.f32 %v4315_v24 }
  0x9b   :  { %vm124_vm3 = vmor %vm122_vm2, %vm123_vm1 }
  0x9c   :  { %v118_v26 = vmul.f32 %v4315_v24, %v117_v25 }
  0x9d   :  { %v686_v7 = vpop.permute.xlu2 %685 }
  0x9e   :  { %v119_v27 = vmul.f32 0.5, %v118_v26 }
  0xa0   :  { %v120_v28 = vsub.f32 1.5, %v119_v27 }
  0xa2   :  { %v121_v30 = vmul.f32 %v4315_v24, %v120_v28 }
  0xa4   :  { %v125_v33 = vsel %vm124_vm3, %v4315_v24, %v121_v30  ;;  %v690_v55 = vpop.permute.xlu1 %689 }
  0xa5   :  { %v126_v34 = vmul.f32 %v125_v33, %v4597_v0  ;;  %v127_v35 = vmul.f32 %v125_v33, %v4602_v1  ;;  %v677_v41 = vpop.permute.xlu0 %676 }
  0xa7   :  { %v134_v36 = vmul.f32 %v130_v31, %v126_v34  ;;  %v135_v37 = vmul.f32 %v131_v32, %v127_v35 }
  0xa9   :  { %v136_v38 = vpack.c.bf16 %v134_v36, %v134_v36  ;;  %v137_v40 = vpack.c.bf16 %v135_v37, %v135_v37 }
  0xab   :  { %530 = vmatmul.bf16.vlgmr.msra.gmra.mxu0 %v136_v38  ;;  %543 = vmatmul.bf16.vlgmr.msra.gmra.mxu1 %v137_v40 }
  0xac   :  { %556 = vmatmul.bf16.vlgmr.msra.gmra.mxu2 %v136_v38  ;;  %569 = vmatmul.bf16.vlgmr.msra.gmra.mxu3 %v137_v40 }
  0xb7   :  { %v673_v9 = vpop.permute.xlu1 %672 }
  0xbb   :  { %582 = vmatmul.bf16.vlgmr.msrb.gmra.mxu0 %v136_v38  ;;  %595 = vmatmul.bf16.vlgmr.msrb.gmra.mxu1 %v137_v40 }
  0xbc   :  { %608 = vmatmul.bf16.vlgmr.msrb.gmra.mxu2 %v136_v38  ;;  %621 = vmatmul.bf16.vlgmr.msrb.gmra.mxu3 %v137_v40 }
 0x128   :  { %v531_v42 = vpop.f32.mrf.mxu0  ;;  %v544_v43 = vpop.f32.mrf.mxu1 }
 0x129   :  { %v4644_v45 = vadd.f32 %v544_v43, %v531_v42 }
 0x12b   :  { %v679_v0 = vmul.f32 %v677_v41, %v4644_v45  ;;  %v692_v5 = vmul.f32 %v690_v55, %v4644_v45  ;;  %v688_v27 = vmul.f32 %v686_v7, %v4644_v45  ;;  %v665_v31 = vmul.f32 %v4623_v44, %v4644_v45 }
 0x12c   :  { %v675_v33 = vmul.f32 %v673_v9, %v4644_v45 }
 0x12d   :  { %681 = vrot.lane.b32.xlu0 %v679_v0, %s4518_s27 }
 0x12f   :  { %v557_v1 = vpop.f32.mrf.mxu2  ;;  %v570_v46 = vpop.f32.mrf.mxu3 }
 0x130   :  { %v4648_v47 = vadd.f32 %v570_v46, %v557_v1  ;;  %v533_v48 = vpop.f32.mrf.mxu0  ;;  %v546_v16 = vpop.f32.mrf.mxu1 }
 0x132   :  { %v827_v49 = vmul.f32 %v4623_v44, %v4648_v47  ;;  %v835_v2 = vmul.f32 %v677_v41, %v4648_v47  ;;  %v842_v6 = vmul.f32 %v690_v55, %v4648_v47  ;;  %v834_v21 = vmul.f32 %v673_v9, %v4648_v47 }
 0x133   :  { %v841_v26 = vmul.f32 %v686_v7, %v4648_v47 }
 0x135   :  { %829 = vrot.lane.b32.xlu0 %v827_v49, %s4514_s19 }
 0x137   :  { %v559_v50 = vpop.f32.mrf.mxu2  ;;  %v572_v51 = vpop.f32.mrf.mxu3 }
 0x138   :  { %v583_v52 = vpop.f32.mrf.mxu0  ;;  %v596_v53 = vpop.f32.mrf.mxu1 }
 0x139   :  { %v4653_v54 = vadd.f32 %v596_v53, %v583_v52 }
 0x13b   :  { %v804_v56 = vmul.f32 %v690_v55, %v4653_v54  ;;  %v797_v57 = vmul.f32 %v677_v41, %v4653_v54  ;;  %v796_v10 = vmul.f32 %v673_v9, %v4653_v54  ;;  %v649_v15 = vmul.f32 %v4623_v44, %v4653_v54 }
 0x13c   :  { %v803_v17 = vmul.f32 %v686_v7, %v4653_v54  ;;  %v657_v55 = vmul.f32 %v4633_v8, %v4644_v45 }
 0x13d   :  { %806 = vrot.lane.b32.xlu1 %v804_v56, %s4514_s19  ;;  %799 = vrot.lane.b32.xlu2 %v797_v57, %s4518_s27 }
 0x13f   :  { %v609_v58 = vpop.f32.mrf.mxu2  ;;  %v622_v59 = vpop.f32.mrf.mxu3 }
 0x140   :  { %v4659_v60 = vadd.f32 %v622_v59, %v609_v58  ;;  %v585_v61 = vpop.f32.mrf.mxu0  ;;  %v598_v62 = vpop.f32.mrf.mxu1 }
 0x142   :  { %v964_v63 = vpack.c.bf16 %v4659_v60, %v4659_v60  ;;  %788 = vmatpush.msra.mxu1 %v4659_v60 }
 0x144   :  { %965 = vst [vmem:[#allocation11] sm:$0xf] %v964_v63 }
 0x145   :  { %837 = vrot.lane.b32.xlu1 %v835_v2, %s4518_s27  ;;  %635 = vrot.lane.b32.xlu2 %v4623_v44, %s4514_s19  ;;  %v819_v44 = vmul.f32 %v4633_v8, %v4648_v47  ;;  %2822 = dma.vmem_to_hbm [thread:$0]  %s2818_s18, 64, %s2820_s21, [#allocation12]  }
 0x147   :  { %v611_v3 = vpop.f32.mrf.mxu2  ;;  %v624_v4 = vpop.f32.mrf.mxu3 }
 0x14d   :  { %694 = vrot.lane.b32.xlu1 %v692_v5, %s4514_s19  ;;  %844 = vrot.lane.b32.xlu2 %v842_v6, %s4514_s19 }
 0x155   :  { %645 = vrot.lane.b32.xlu2 %v4633_v8, %s4514_s19 }
 0x197   :  { %v800_v11 = vpop.permute.xlu2 %799 }
 0x198   :  { %v802_v12 = vsub.f32 %v796_v10, %v800_v11 }
 0x19a   :  { %811 = vrot.lane.b32.xlu0 %v802_v12, %s4517_s26 }
 0x19f   :  { %v636_v13 = vpop.permute.xlu2 %635  ;;  %v682_v32 = vpop.permute.xlu0 %681 }
 0x1a0   :  { %v820_v14 = vmul.f32 %v636_v13, %v4648_v47  ;;  %v658_v19 = vmul.f32 %v636_v13, %v4644_v45  ;;  %v638_v23 = vmul.f32 %v636_v13, %v4653_v54  ;;  %v684_v34 = vsub.f32 %v675_v33, %v682_v32 }
 0x1a2   :  { %822 = vrot.lane.b32.xlu2 %v820_v14, %s4518_s27 }
 0x1a7   :  { %v845_v25 = vpop.permute.xlu2 %844  ;;  %v830_v36 = vpop.permute.xlu0 %829 }
 0x1a8   :  { %v847_v29 = vadd.f32 %v845_v25, %v841_v26 }
 0x1aa   :  { %651 = vrot.lane.b32.xlu2 %v649_v15, %s4514_s19 }
 0x1af   :  { %v807_v18 = vpop.permute.xlu1 %806  ;;  %v646_v35 = vpop.permute.xlu2 %645 }
 0x1b0   :  { %v809_v20 = vadd.f32 %v807_v18, %v803_v17  ;;  %v826_v38 = vmul.f32 %v646_v35, %v4648_v47  ;;  %v648_v48 = vmul.f32 %v646_v35, %v4653_v54  ;;  %v633_v47 = vmul.f32 %v4633_v8, %v4653_v54 }
 0x1b1   :  { %v664_v57 = vmul.f32 %v646_v35, %v4644_v45  ;;  %v628_v8 = vlaneseq }
 0x1b2   :  { %815 = vrot.lane.b32.xlu1 %v809_v20, %s4517_s26  ;;  %660 = vrot.lane.b32.xlu2 %v658_v19, %s4518_s27  ;;  %v832_v0 = vadd.f32 %v830_v36, %v826_v38 }
 0x1b3   :  { %v629_v4 = vshrl.u32 %v628_v8, 7  ;;  %v631_v45 = vand.u32 127, %v628_v8  ;;  %v4098_v8 = vld [vmem:[#allocation5 + $0xf4] sm:$0xf] }
 0x1b5   :  { %vm632_vm6 = vcmp.le.s32.totalorder %v631_v45, %v629_v4  ;;  %v3228_v4 = vld [vmem:[#allocation5 + $0xf8] sm:$0xf0]  ;;  %v3154_v45 = vld [vmem:[#allocation5 + $0x60] sm:$0xf] }
 0x1b7   :  { %v838_v22 = vpop.permute.xlu1 %837 }
 0x1b8   :  { %v840_v24 = vsub.f32 %v834_v21, %v838_v22 }
 0x1ba   :  { %640 = vrot.lane.b32.xlu1 %v638_v23, %s4518_s27  ;;  %849 = vrot.lane.b32.xlu0 %v840_v24, %s4517_s26 }
 0x1bf   :  { %v695_v28 = vpop.permute.xlu1 %694 }
 0x1c0   :  { %v697_v30 = vadd.f32 %v695_v28, %v688_v27 }
 0x1c2   :  { %703 = vrot.lane.b32.xlu2 %v697_v30, %s4517_s26  ;;  %853 = vrot.lane.b32.xlu1 %v847_v29, %s4517_s26 }
 0x1c3   :  { %667 = vrot.lane.b32.xlu0 %v665_v31, %s4514_s19 }
 0x1ca   :  { %699 = vrot.lane.b32.xlu1 %v684_v34, %s4517_s26 }
 0x1fc   :  { %v823_v37 = vpop.permute.xlu2 %822 }
 0x1fd   :  { %v825_v40 = vsub.f32 %v819_v44, %v823_v37 }
 0x1ff   :  { %v833_v1 = vsel %vm655_vm5, %v825_v40, %v832_v0 }
 0x204   :  { %v652_v46 = vpop.permute.xlu2 %651 }
 0x205   :  { %v654_v50 = vadd.f32 %v652_v46, %v648_v48 }
 0x20c   :  { %v812_v41 = vpop.permute.xlu0 %811  ;;  %v661_v53 = vpop.permute.xlu2 %660 }
 0x20d   :  { %v663_v59 = vsub.f32 %v657_v55, %v661_v53 }
 0x21c   :  { %v704_v2 = vpop.permute.xlu2 %703 }
 0x224   :  { %v816_v42 = vpop.permute.xlu1 %815 }
 0x225   :  { %v4702_v43 = vsel %vm655_vm5, %v812_v41, %v816_v42 }
 0x226   :  { %3099 = vmatpush.xpose.msk.msra.mxu2 %vm707_vm4, %v4702_v43 }
 0x229   :  { %3100 = vmatmul.msk.f32.vlgmr.msra.gmra.mxu2 %vm707_vm4, %v833_v1 }
 0x22c   :  { %v641_v16 = vpop.permute.xlu1 %640  ;;  %v850_v49 = vpop.permute.xlu0 %849 }
 0x22d   :  { %v643_v51 = vsub.f32 %v633_v47, %v641_v16 }
 0x22f   :  { %v4712_v52 = vsel %vm655_vm5, %v643_v51, %v654_v50 }
 0x230   :  { %3094 = vmatpush.xpose.msk.msra.mxu0 %vm707_vm4, %v4712_v52 }
 0x234   :  { %v854_v56 = vpop.permute.xlu1 %853 }
 0x235   :  { %v668_v58 = vpop.permute.xlu0 %667  ;;  %v856_v54 = vsel %vm655_vm5, %v850_v49, %v854_v56 }
 0x236   :  { %v670_v61 = vadd.f32 %v668_v58, %v664_v57  ;;  %3101 = vmatmul.msk.f32.gmra.mxu2 %vm707_vm4, %v856_v54  ;;  %v3162_v57 = vld [vmem:[#allocation5 + $0x70] sm:$0xf]  ;;  %v4083_v58 = vld [vmem:[#allocation5 + $0x74] sm:$0xf0] }
 0x237   :  { %v3226_v54 = vld [vmem:[#allocation5 + $0xf0] sm:$0xf] }
 0x238   :  { %v671_v62 = vsel %vm655_vm5, %v663_v59, %v670_v61  ;;  %v3163_v59 = vor.u32 %v4083_v58, %v3162_v57  ;;  %v4099_v61 = vld [vmem:[#allocation5 + $0xf4] sm:$0xf0]  ;;  %v3186_v57 = vld [vmem:[#allocation5 + $0xa0] sm:$0xf] }
 0x239   :  { %3095 = vmatmul.msk.f32.vlgmr.msra.gmra.mxu0 %vm707_vm4, %v671_v62  ;;  %v4082_v62 = vld [vmem:[#allocation5 + $0x74] sm:$0xf] }
 0x23a   :  { %1160 = vmatpush.bf16.msrb.mxu0 %v3163_v59  ;;  %v4072_v59 = vld [vmem:[#allocation5 + $0x24] sm:$0xf] }
 0x23c   :  { %v700_v63 = vpop.permute.xlu1 %699 }
 0x23d   :  { %v706_v3 = vsel %vm655_vm5, %v700_v63, %v704_v2  ;;  %v3164_v63 = vld [vmem:[#allocation5 + $0x78] sm:$0xf0]  ;;  %v3227_v2 = vor.u32 %v4099_v61, %v3226_v54  ;;  %v4089_v54 = vld [vmem:[#allocation5 + $0xa4] sm:$0xf0]  ;;  %v3124_v61 = vld [vmem:[#allocation5 + $0x28] sm:$0xf0] }
 0x23f   :  { %1173 = vmatpush.bf16.msrb.mxu1 %v3227_v2 }
 0x241   :  { %3096 = vmatmul.msk.f32.gmra.mxu0 %vm707_vm4, %v706_v3  ;;  %v3167_v3 = vor.u32 %v4082_v62, %v3164_v63  ;;  %v4088_v62 = vld [vmem:[#allocation5 + $0xa4] sm:$0xf]  ;;  %v3188_v63 = vld [vmem:[#allocation5 + $0xa8] sm:$0xf0] }
 0x243   :  { %1186 = vmatpush.bf16.msrb.mxu2 %v3167_v3 }
 0x2ac   :  { %v883_v5 = vpop.f32.mrf.mxu2 }
 0x2ad   :  { %v889_v6 = vmul.f32 0.125, %v883_v5  ;;  %v3231_v5 = vor.u32 %v4098_v8, %v3228_v4  ;;  %v3187_v8 = vor.u32 %v4089_v54, %v3186_v57  ;;  %v3127_v4 = vor.u32 %v4072_v59, %v3124_v61  ;;  %v4224_v54 = vld [vmem:[#allocation7 + $0x3dc] sm:$0xf0]  ;;  %v4156_v59 = vld [vmem:[#allocation7 + $0x1c4] sm:$0xf] }
 0x2ae   :  { %v3460_v61 = vld [vmem:[#allocation7 + $0x1e0] sm:$0xf0] }
 0x2af   :  { %v891_v7 = vsel %vm632_vm6, %v889_v6, -1e+30  ;;  %v4081_v6 = vld [vmem:[#allocation5 + $0x64] sm:$0xf0] }
 0x2b0   :  { %v893_v9 = vsel %vm744_vm7, %v891_v7, -inf }
 0x2b1   :  { %894 = vmax.xlane.f32.xlu0 %v893_v9  ;;  %v4097_v9 = vld [vmem:[#allocation5 + $0xe4] sm:$0xf0] }
 0x2b6   :  { %v734_v10 = vpop.f32.mrf.mxu0 }
 0x2b7   :  { %v740_v11 = vmul.f32 0.125, %v734_v10  ;;  %v3155_v10 = vor.u32 %v4081_v6, %v3154_v45  ;;  %v3114_v45 = vld [vmem:[#allocation5 + $0x10] sm:$0xf] }
 0x2b8   :  { %v3178_v6 = vld [vmem:[#allocation5 + $0x90] sm:$0xf] }
 0x2b9   :  { %v886_v12 = vpop.f32.mrf.mxu2  ;;  %v742_v13 = vsel %vm632_vm6, %v740_v11, -1e+30  ;;  %1161 = vmatpush.bf16.msrb.mxu0 %v3155_v10  ;;  %v4087_v10 = vld [vmem:[#allocation5 + $0x94] sm:$0xf0] }
 0x2ba   :  { %v890_v14 = vmul.f32 0.125, %v886_v12  ;;  %v745_v15 = vsel %vm744_vm7, %v742_v13, -inf  ;;  %v4080_v12 = vld [vmem:[#allocation5 + $0x64] sm:$0xf] }
 0x2bb   :  { %746 = vmax.xlane.f32.xlu1 %v745_v15 }
 0x2bc   :  { %v892_v17 = vsel %vm632_vm6, %v890_v14, -1e+30  ;;  %v4096_v14 = vld [vmem:[#allocation5 + $0xe4] sm:$0xf] }
 0x2bd   :  { %v896_v18 = vsel %vm744_vm7, %v892_v17, -inf }
 0x2be   :  { %v737_v19 = vpop.f32.mrf.mxu0  ;;  %897 = vmax.xlane.f32.xlu2 %v896_v18  ;;  %v3146_v18 = vld [vmem:[#allocation5 + $0x50] sm:$0xf] }
 0x2bf   :  { %v741_v20 = vmul.f32 0.125, %v737_v19  ;;  %v4079_v19 = vld [vmem:[#allocation5 + $0x54] sm:$0xf0] }
 0x2c1   :  { %v743_v21 = vsel %vm632_vm6, %v741_v20, -1e+30 }
 0x2c2   :  { %v748_v22 = vsel %vm744_vm7, %v743_v21, -inf }
 0x2c3   :  { %749 = vmax.xlane.f32.xlu0 %v748_v22  ;;  %v4095_v22 = vld [vmem:[#allocation5 + $0xd4] sm:$0xf0] }
 0x324   :  { %v895_v23 = vpop.xlane.xlu0 %894 }
 0x325   :  { %v899_v24 = vsub.f32 %v891_v7, %v895_v23  ;;  %v3218_v7 = vld [vmem:[#allocation5 + $0xe0] sm:$0xf]  ;;  %v4078_v23 = vld [vmem:[#allocation5 + $0x54] sm:$0xf] }
 0x326   :  { %v3219_v11 = vor.u32 %v4097_v9, %v3218_v7  ;;  %v3191_v9 = vor.u32 %v4088_v62, %v3188_v63  ;;  %v3463_v63 = vor.u32 %v4156_v59, %v3460_v61  ;;  %v3298_v59 = vld [vmem:[#allocation7 + $0x80] sm:$0xf] }
 0x327   :  { %v901_v25 = vmul.f32 1.442695, %v899_v24  ;;  %v3147_v24 = vor.u32 %v4079_v19, %v3146_v18  ;;  %v4120_v61 = vld [vmem:[#allocation7 + $0x9c] sm:$0xf0] }
 0x328   :  { %1174 = vmatpush.bf16.msrb.mxu1 %v3219_v11  ;;  %v4070_v11 = vld [vmem:[#allocation5 + $0x14] sm:$0xf] }
 0x329   :  { %4316 = vpow2.f32 %v901_v25  ;;  %v3148_v25 = vld [vmem:[#allocation5 + $0x58] sm:$0xf0]  ;;  %1162 = vmatpush.bf16.msrb.mxu0 %v3147_v24  ;;  %v4069_v24 = vld [vmem:[#allocation5 + $0x4] sm:$0xf0] }
 0x32e   :  { %v747_v26 = vpop.xlane.xlu1 %746 }
 0x32f   :  { %v4317_v27 = vpop.eup %4316  ;;  %v751_v28 = vsub.f32 %v742_v13, %v747_v26  ;;  %v3156_v13 = vld [vmem:[#allocation5 + $0x68] sm:$0xf0]  ;;  %v4094_v26 = vld [vmem:[#allocation5 + $0xd4] sm:$0xf] }
 0x330   :  { %v905_v29 = vsel %vm744_vm7, %v4317_v27, 0.0  ;;  %v3159_v15 = vor.u32 %v4080_v12, %v3156_v13  ;;  %v3116_v12 = vld [vmem:[#allocation5 + $0x18] sm:$0xf0]  ;;  %v4086_v13 = vld [vmem:[#allocation5 + $0x94] sm:$0xf] }
 0x331   :  { %v753_v30 = vmul.f32 1.442695, %v751_v28  ;;  %v898_v31 = vpop.xlane.xlu2 %897  ;;  %906 = vadd.xlane.f32.xlu2 %v905_v29  ;;  %v3151_v29 = vor.u32 %v4078_v23, %v3148_v25  ;;  %v3119_v18 = vor.u32 %v4070_v11, %v3116_v12  ;;  %v3106_v23 = vld [vmem:[#allocation5] sm:$0xf]  ;;  %v4148_v12 = vld [vmem:[#allocation7 + $0x184] sm:$0xf] }
 0x332   :  { %v900_v32 = vsub.f32 %v892_v17, %v898_v31  ;;  %v3220_v17 = vld [vmem:[#allocation5 + $0xe8] sm:$0xf0]  ;;  %1187 = vmatpush.bf16.msrb.mxu2 %v3159_v15  ;;  %v4077_v31 = vld [vmem:[#allocation5 + $0x44] sm:$0xf0]  ;;  %v3170_v25 = vld [vmem:[#allocation5 + $0x80] sm:$0xf] }
 0x333   :  { %4318 = vpow2.f32 %v753_v30  ;;  %v3223_v20 = vor.u32 %v4096_v14, %v3220_v17  ;;  %v3138_v30 = vld [vmem:[#allocation5 + $0x40] sm:$0xf]  ;;  %v3180_v14 = vld [vmem:[#allocation5 + $0x98] sm:$0xf0]  ;;  %v3179_v17 = vor.u32 %v4087_v10, %v3178_v6 }
 0x334   :  { %v903_v33 = vmul.f32 1.442695, %v900_v32  ;;  %v3202_v32 = vld [vmem:[#allocation5 + $0xc0] sm:$0xf]  ;;  %v3183_v19 = vor.u32 %v4086_v13, %v3180_v14  ;;  %v3428_v13 = vld [vmem:[#allocation7 + $0x1a0] sm:$0xf0] }
 0x335   :  { %v4152_v6 = vld [vmem:[#allocation7 + $0x19c] sm:$0xf0]  ;;  %v4212_v14 = vld [vmem:[#allocation7 + $0x384] sm:$0xf] }
 0x336   :  { %4320 = vpow2.f32 %v903_v33  ;;  %v750_v34 = vpop.xlane.xlu0 %749  ;;  %1188 = vmatpush.bf16.msrb.mxu2 %v3151_v29  ;;  %v3108_v29 = vld [vmem:[#allocation5 + $0x8] sm:$0xf0] }
 0x337   :  { %v752_v35 = vsub.f32 %v743_v21, %v750_v34  ;;  %v3210_v21 = vld [vmem:[#allocation5 + $0xd0] sm:$0xf]  ;;  %v4093_v34 = vld [vmem:[#allocation5 + $0xc4] sm:$0xf0] }
 0x338   :  { %v3211_v28 = vor.u32 %v4095_v22, %v3210_v21 }
 0x339   :  { %v4319_v36 = vpop.eup %4318  ;;  %v755_v37 = vmul.f32 1.442695, %v752_v35  ;;  %v4076_v35 = vld [vmem:[#allocation5 + $0x44] sm:$0xf] }
 0x33a   :  { %v757_v38 = vsel %vm744_vm7, %v4319_v36, 0.0  ;;  %1175 = vmatpush.bf16.msrb.mxu1 %v3211_v28  ;;  %v4068_v28 = vld [vmem:[#allocation5 + $0x4] sm:$0xf] }
 0x33b   :  { %4322 = vpow2.f32 %v755_v37  ;;  %758 = vadd.xlane.f32.xlu1 %v757_v38  ;;  %v4092_v37 = vld [vmem:[#allocation5 + $0xc4] sm:$0xf]  ;;  %v3204_v38 = vld [vmem:[#allocation5 + $0xc8] sm:$0xf0] }
 0x33c   :  { %v4321_v44 = vpop.eup %4320 }
 0x33d   :  { %v908_v40 = vsel %vm744_vm7, %v4321_v44, 0.0 }
 0x33e   :  { %909 = vadd.xlane.f32.xlu0 %v908_v40  ;;  %v3203_v40 = vor.u32 %v4093_v34, %v3202_v32  ;;  %v4084_v32 = vld [vmem:[#allocation5 + $0x84] sm:$0xf] }
 0x340   :  { %1176 = vmatpush.bf16.msrb.mxu1 %v3203_v40 }
 0x341   :  { %v4323_v41 = vpop.eup %4322 }
 0x342   :  { %v760_v42 = vsel %vm744_vm7, %v4323_v41, 0.0 }
 0x343   :  { %761 = vadd.xlane.f32.xlu1 %v760_v42  ;;  %v3130_v42 = vld [vmem:[#allocation5 + $0x30] sm:$0xf] }
 0x349   :  { %916 = vrot.lane.b32.xlu2 %v4659_v60, %s4517_s26 }
 0x3a4   :  { %v907_v0 = vpop.xlane.xlu2 %906 }
 0x3a5   :  { %4324 = vrcp.f32 %v907_v0  ;;  %v4075_v0 = vld [vmem:[#allocation5 + $0x34] sm:$0xf0] }
 0x3ab   :  { %v4325_v1 = vpop.eup %4324 }
 0x3ac   :  { %v913_v46 = vmul.f32 %v4325_v1, %v4317_v27  ;;  %v917_v48 = vpop.permute.xlu2 %916  ;;  %v3212_v27 = vld [vmem:[#allocation5 + $0xd8] sm:$0xf0]  ;;  %v3194_v1 = vld [vmem:[#allocation5 + $0xb0] sm:$0xf] }
 0x3ad   :  { %940 = vmatpush.msra.mxu3 %v917_v48  ;;  %v3215_v33 = vor.u32 %v4094_v26, %v3212_v27  ;;  %v4091_v48 = vld [vmem:[#allocation5 + $0xb4] sm:$0xf0]  ;;  %v3107_v26 = vor.u32 %v4069_v24, %v3106_v23  ;;  %v4085_v27 = vld [vmem:[#allocation5 + $0x84] sm:$0xf0]  ;;  %v3650_v24 = vld [vmem:[#allocation7 + $0x340] sm:$0xf] }
 0x3ae   :  { %v759_v47 = vpop.xlane.xlu1 %758  ;;  %3102 = vmatmul.msk.f32.vlgmr.msra.gmra.mxu3 %vm744_vm7, %v913_v46  ;;  %v3207_v46 = vor.u32 %v4092_v37, %v3204_v38 }
 0x3af   :  { %4326 = vrcp.f32 %v759_v47  ;;  %1199 = vmatpush.bf16.msrb.mxu3 %v3231_v5  ;;  %v4074_v47 = vld [vmem:[#allocation5 + $0x34] sm:$0xf]  ;;  %v4071_v5 = vld [vmem:[#allocation5 + $0x14] sm:$0xf0] }
 0x3b0   :  { %v3115_v15 = vor.u32 %v4071_v5, %v3114_v45 }
 0x3b1   :  { %v910_v16 = vpop.xlane.xlu0 %909 }
 0x3b2   :  { %4328 = vrcp.f32 %v910_v16  ;;  %v3132_v16 = vld [vmem:[#allocation5 + $0x38] sm:$0xf0] }
 0x3b3   :  { %1200 = vmatpush.bf16.msrb.mxu3 %v3223_v20 }
 0x3b5   :  { %v4327_v49 = vpop.eup %4326 }
 0x3b6   :  { %v765_v50 = vmul.f32 %v4327_v49, %v4319_v36  ;;  %v762_v51 = vpop.xlane.xlu1 %761  ;;  %v3140_v36 = vld [vmem:[#allocation5 + $0x48] sm:$0xf0]  ;;  %v4090_v49 = vld [vmem:[#allocation5 + $0xb4] sm:$0xf] }
 0x3b7   :  { %4330 = vrcp.f32 %v762_v51  ;;  %1201 = vmatpush.bf16.msrb.mxu3 %v3215_v33  ;;  %v3131_v51 = vor.u32 %v4075_v0, %v3130_v42  ;;  %v3172_v33 = vld [vmem:[#allocation5 + $0x88] sm:$0xf0] }
 0x3b8   :  { %v4329_v53 = vpop.eup %4328  ;;  %3097 = vmatmul.msk.f32.vlgmr.msra.gmra.mxu1 %vm744_vm7, %v765_v50  ;;  %v3196_v50 = vld [vmem:[#allocation5 + $0xb8] sm:$0xf0]  ;;  %v3175_v34 = vor.u32 %v4084_v32, %v3172_v33  ;;  %v3362_v33 = vld [vmem:[#allocation7 + $0x100] sm:$0xf] }
 0x3b9   :  { %v914_v60 = vmul.f32 %v4329_v53, %v4321_v44  ;;  %v3139_v44 = vor.u32 %v4077_v31, %v3138_v30  ;;  %v3195_v53 = vor.u32 %v4091_v48, %v3194_v1  ;;  %v3199_v58 = vor.u32 %v4090_v49, %v3196_v50 }
 0x3ba   :  { %v3171_v30 = vor.u32 %v4085_v27, %v3170_v25  ;;  %v3111_v31 = vor.u32 %v4068_v28, %v3108_v29  ;;  %v4208_v25 = vld [vmem:[#allocation7 + $0x35c] sm:$0xf0]  ;;  %v3396_v28 = vld [vmem:[#allocation7 + $0x160] sm:$0xf0] }
 0x3bb   :  { %3103 = vmatmul.msk.f32.gmra.mxu3 %vm744_vm7, %v914_v60  ;;  %1163 = vmatpush.bf16.msrb.mxu0 %v3139_v44  ;;  %v3135_v60 = vor.u32 %v4074_v47, %v3132_v16  ;;  %v4350_v47 = vld [vmem:[%s4885_s0] sm:$0xff] }
 0x3bc   :  { %1202 = vmatpush.bf16.msrb.mxu3 %v3207_v46  ;;  %1177 = vmatpush.bf16.msrb.mxu1 %v3195_v53  ;;  %v3458_v53 = vld [vmem:[#allocation7 + $0x1c0] sm:$0xf]  ;;  %v4204_v29 = vld [vmem:[#allocation7 + $0x344] sm:$0xf] }
 0x3bd   :  { %v4331_v55 = vpop.eup %4330 }
 0x3be   :  { %v766_v56 = vmul.f32 %v4331_v55, %v4323_v41  ;;  %v3143_v41 = vor.u32 %v4076_v35, %v3140_v36  ;;  %v3122_v55 = vld [vmem:[#allocation5 + $0x20] sm:$0xf] }
 0x3bf   :  { %1164 = vmatpush.bf16.msrb.mxu0 %v3131_v51 }
 0x3c0   :  { %3098 = vmatmul.msk.f32.gmra.mxu1 %vm744_vm7, %v766_v56  ;;  %1189 = vmatpush.bf16.msrb.mxu2 %v3143_v41  ;;  %v4073_v56 = vld [vmem:[#allocation5 + $0x24] sm:$0xf0] }
 0x3c1   :  { %v3123_v2 = vor.u32 %v4073_v56, %v3122_v55  ;;  %1203 = vmatpush.bf16.msrb.mxu3 %v3199_v58  ;;  %1178 = vmatpush.bf16.msrb.mxu1 %v3187_v8  ;;  %v3714_v55 = vld [vmem:[#allocation7 + $0x3c0] sm:$0xf]  ;;  %v4351_v56 = vld [vmem:[%s4885_s0 + $0x8] sm:$0xff] }
 0x3c2   :  { %v3715_v62 = vor.u32 %v4224_v54, %v3714_v55  ;;  %v3426_v8 = vld [vmem:[#allocation7 + $0x180] sm:$0xf]  ;;  %v3588_v55 = vld [vmem:[#allocation7 + $0x2e0] sm:$0xf0] }
 0x3c3   :  { %1165 = vmatpush.bf16.msrb.mxu0 %v3123_v2  ;;  %v4220_v2 = vld [vmem:[#allocation7 + $0x3c4] sm:$0xf]  ;;  %v3427_v10 = vor.u32 %v4152_v6, %v3426_v8 }
 0x3c4   :  { %1190 = vmatpush.bf16.msrb.mxu2 %v3135_v60  ;;  %v4160_v60 = vld [vmem:[#allocation7 + $0x1dc] sm:$0xf0]  ;;  %v3300_v8 = vld [vmem:[#allocation7 + $0xa0] sm:$0xf0] }
 0x3c5   :  { %1204 = vmatpush.bf16.msrb.mxu3 %v3191_v9  ;;  %1179 = vmatpush.bf16.msrb.mxu1 %v3179_v17  ;;  %v3459_v58 = vor.u32 %v4160_v60, %v3458_v53  ;;  %v4216_v9 = vld [vmem:[#allocation7 + $0x39c] sm:$0xf0]  ;;  %v3431_v17 = vor.u32 %v4148_v12, %v3428_v13  ;;  %v3332_v53 = vld [vmem:[#allocation7 + $0xe0] sm:$0xf0] }
 0x3c6   :  { %v4188_v60 = vld [vmem:[#allocation7 + $0x2c4] sm:$0xf]  ;;  %v4176_v13 = vld [vmem:[#allocation7 + $0x25c] sm:$0xf0] }
 0x3c7   :  { %1166 = vmatpush.bf16.msrb.mxu0 %v3115_v15 }
 0x3c8   :  { %1191 = vmatpush.bf16.msrb.mxu2 %v3127_v4 }
 0x3c9   :  { %1205 = vmatpush.bf16.msrb.mxu3 %v3183_v19  ;;  %1180 = vmatpush.bf16.msrb.mxu1 %v3171_v30  ;;  %v3394_v19 = vld [vmem:[#allocation7 + $0x140] sm:$0xf]  ;;  %v3652_v30 = vld [vmem:[#allocation7 + $0x360] sm:$0xf0] }
 0x3cb   :  { %1167 = vmatpush.bf16.msrb.mxu0 %v3107_v26  ;;  %v4140_v26 = vld [vmem:[#allocation7 + $0x144] sm:$0xf] }
 0x3cc   :  { %1192 = vmatpush.bf16.msrb.mxu2 %v3119_v18  ;;  %v3684_v18 = vld [vmem:[#allocation7 + $0x3a0] sm:$0xf0]  ;;  %v3399_v32 = vor.u32 %v4140_v26, %v3396_v28 }
 0x3cd   :  { %1206 = vmatpush.bf16.msrb.mxu3 %v3175_v34  ;;  %2024 = vmatpush.bf16.msra.mxu1 %v3715_v62  ;;  %v3687_v23 = vor.u32 %v4212_v14, %v3684_v18  ;;  %v4136_v34 = vld [vmem:[#allocation7 + $0x11c] sm:$0xf0]  ;;  %v4108_v14 = vld [vmem:[#allocation7 + $0x44] sm:$0xf] }
 0x3ce   :  { %v3554_v62 = vld [vmem:[#allocation7 + $0x280] sm:$0xf]  ;;  %v3524_v18 = vld [vmem:[#allocation7 + $0x260] sm:$0xf0] }
 0x3cf   :  { %2011 = vmatpush.bf16.msra.mxu0 %v3459_v58  ;;  %v3236_v28 = vld [vmem:[#allocation7 + $0x20] sm:$0xf0] }
 0x3d0   :  { %1193 = vmatpush.bf16.msrb.mxu2 %v3111_v31  ;;  %v3651_v31 = vor.u32 %v4208_v25, %v3650_v24  ;;  %v3490_v24 = vld [vmem:[#allocation7 + $0x200] sm:$0xf] }
 0x3d1   :  { %v4168_v25 = vld [vmem:[#allocation7 + $0x21c] sm:$0xf0] }
 0x3d3   :  { %2012 = vmatpush.bf16.msra.mxu0 %v3427_v10  ;;  %v4112_v10 = vld [vmem:[#allocation7 + $0x5c] sm:$0xf0] }
 0x3d4   :  { %2037 = vmatpush.bf16.msra.mxu2 %v3463_v63  ;;  %v3591_v63 = vor.u32 %v4188_v60, %v3588_v55  ;;  %v4149_v60 = vld [vmem:[#allocation7 + $0x18c] sm:$0xf] }
 0x3d5   :  { %v3436_v55 = vld [vmem:[#allocation7 + $0x1a8] sm:$0xf0] }
 0x3d8   :  { %2038 = vmatpush.bf16.msra.mxu2 %v3431_v17  ;;  %v4172_v17 = vld [vmem:[#allocation7 + $0x244] sm:$0xf] }
 0x3d9   :  { %v3527_v26 = vor.u32 %v4172_v17, %v3524_v18  ;;  %v3372_v17 = vld [vmem:[#allocation7 + $0x128] sm:$0xf0] }
 0x3dc   :  { %2039 = vmatpush.bf16.msra.mxu2 %v3399_v32  ;;  %v4161_v32 = vld [vmem:[#allocation7 + $0x1e4] sm:$0xf0] }
 0x431   :  { %v942_v7 = vpop.f32.mrf.mxu3 }
 0x435   :  { %v790_v3 = vpop.f32.mrf.mxu1 }
 0x43d   :  { %v793_v20 = vpop.f32.mrf.mxu1 }
 0x43e   :  { %v945_v21 = vpop.f32.mrf.mxu3 }
 0x43f   :  { %v4307_v22 = vpack.i.bf16 %v945_v21, %v793_v20  ;;  %v4144_v20 = vld [vmem:[#allocation7 + $0x15c] sm:$0xf0] }
 0x440   :  { %v3395_v27 = vor.u32 %v4144_v20, %v3394_v19  ;;  %v3234_v20 = vld [vmem:[#allocation7] sm:$0xf] }
 0x441   :  { %4308 = vrot.lane.b32.xlu0 %v4307_v22, %s4517_s26 }
 0x442   :  { %2013 = vmatpush.bf16.msra.mxu0 %v3395_v27  ;;  %v4100_v27 = vld [vmem:[#allocation7 + $0x4] sm:$0xf] }
 0x4b3   :  { %v4309_v35 = vpop.permute.xlu0 %4308 }
 0x4b4   :  { %v4311_v36 = vunpack.i.h.bf16 %v4309_v35  ;;  %v4310_v37 = vunpack.i.l.bf16 %v4309_v35  ;;  %v3618_v35 = vld [vmem:[#allocation7 + $0x300] sm:$0xf] }
 0x4b6   :  { %v957_v38 = vsel %vm707_vm4, %v942_v7, %v4311_v36  ;;  %v956_v44 = vsel %vm707_vm4, %v790_v3, %v4310_v37  ;;  %v3716_v3 = vld [vmem:[#allocation7 + $0x3e0] sm:$0xf0]  ;;  %v3682_v7 = vld [vmem:[#allocation7 + $0x380] sm:$0xf]  ;;  %v3655_v36 = vor.u32 %v4204_v29, %v3652_v30 }
 0x4b7   :  { %v967_v40 = vpack.c.bf16 %v957_v38, %v957_v38  ;;  %v966_v41 = vpack.c.bf16 %v956_v44, %v956_v44  ;;  %v3719_v5 = vor.u32 %v4220_v2, %v3716_v3  ;;  %v3683_v11 = vor.u32 %v4216_v9, %v3682_v7  ;;  %v4200_v37 = vld [vmem:[#allocation7 + $0x31c] sm:$0xf0]  ;;  %v4132_v38 = vld [vmem:[#allocation7 + $0x104] sm:$0xf] }
 0x4b8   :  { %v3364_v44 = vld [vmem:[#allocation7 + $0x120] sm:$0xf0]  ;;  %v4184_v2 = vld [vmem:[#allocation7 + $0x29c] sm:$0xf0] }
 0x4b9   :  { %1168 = vmatmul.bf16.vlgmr.msrb.gmra.mxu0 %v966_v41  ;;  %1181 = vmatmul.bf16.vlgmr.msrb.gmra.mxu1 %v967_v40  ;;  %v4116_v3 = vld [vmem:[#allocation7 + $0x84] sm:$0xf]  ;;  %v3555_v6 = vor.u32 %v4184_v2, %v3554_v62  ;;  %v3266_v9 = vld [vmem:[#allocation7 + $0x40] sm:$0xf]  ;;  %v4145_v62 = vld [vmem:[#allocation7 + $0x164] sm:$0xf0] }
 0x4ba   :  { %1194 = vmatmul.bf16.vlgmr.msrb.gmra.mxu2 %v966_v41  ;;  %1207 = vmatmul.bf16.vlgmr.msrb.gmra.mxu3 %v967_v40  ;;  %v4196_v40 = vld [vmem:[#allocation7 + $0x304] sm:$0xf]  ;;  %v3303_v7 = vor.u32 %v4116_v3, %v3300_v8  ;;  %v3267_v19 = vor.u32 %v4112_v10, %v3266_v9  ;;  %v4209_v3 = vld [vmem:[#allocation7 + $0x364] sm:$0xf0]  ;;  %v4141_v8 = vld [vmem:[#allocation7 + $0x14c] sm:$0xf] }
 0x4bb   :  { %2050 = vmatpush.bf16.msra.mxu3 %v3719_v5  ;;  %2025 = vmatpush.bf16.msra.mxu1 %v3683_v11  ;;  %v3620_v41 = vld [vmem:[#allocation7 + $0x320] sm:$0xf0]  ;;  %v3299_v5 = vor.u32 %v4120_v61, %v3298_v59  ;;  %v3522_v11 = vld [vmem:[#allocation7 + $0x240] sm:$0xf]  ;;  %v3692_v59 = vld [vmem:[#allocation7 + $0x3a8] sm:$0xf0] }
 0x4bc   :  { %v4164_v29 = vld [vmem:[#allocation7 + $0x204] sm:$0xf]  ;;  %v3402_v61 = vld [vmem:[#allocation7 + $0x148] sm:$0xf] }
 0x4bd   :  { %v3492_v30 = vld [vmem:[#allocation7 + $0x220] sm:$0xf0]  ;;  %v3403_v2 = vor.u32 %v4145_v62, %v3402_v61  ;;  %v3370_v10 = vld [vmem:[#allocation7 + $0x108] sm:$0xf] }
 0x4be   :  { %v3242_v61 = vld [vmem:[#allocation7 + $0x8] sm:$0xf] }
 0x4bf   :  { %2051 = vmatpush.bf16.msra.mxu3 %v3687_v23  ;;  %2026 = vmatpush.bf16.msra.mxu1 %v3651_v31  ;;  %v4104_v23 = vld [vmem:[#allocation7 + $0x1c] sm:$0xf0]  ;;  %v3466_v31 = vld [vmem:[#allocation7 + $0x1c8] sm:$0xf] }
 0x4c0   :  { %v4105_v62 = vld [vmem:[#allocation7 + $0x24] sm:$0xf0] }
 0x4c3   :  { %2052 = vmatpush.bf16.msra.mxu3 %v3655_v36  ;;  %v4157_v36 = vld [vmem:[#allocation7 + $0x1cc] sm:$0xf] }
 0x536   :  { %v1169_v42 = vpop.f32.mrf.mxu0  ;;  %v1182_v0 = vpop.f32.mrf.mxu1 }
 0x537   :  { %v1183_v1 = vadd.f32 %v1182_v0, %v1169_v42  ;;  %v3363_v42 = vor.u32 %v4136_v34, %v3362_v33  ;;  %v3619_v0 = vor.u32 %v4200_v37, %v3618_v35  ;;  %v3235_v33 = vor.u32 %v4104_v23, %v3234_v20  ;;  %v3722_v34 = vld [vmem:[#allocation7 + $0x3c8] sm:$0xf]  ;;  %v4197_v20 = vld [vmem:[#allocation7 + $0x30c] sm:$0xf] }
 0x538   :  { %v4225_v35 = vld [vmem:[#allocation7 + $0x3e4] sm:$0xf0]  ;;  %v3491_v37 = vor.u32 %v4168_v25, %v3490_v24 }
 0x539   :  { %v4749_v16 = vadd.f32 %v4350_v47, %v1183_v1  ;;  %v3367_v1 = vor.u32 %v4132_v38, %v3364_v44  ;;  %v3586_v47 = vld [vmem:[#allocation7 + $0x2c0] sm:$0xf]  ;;  %2014 = vmatpush.bf16.msra.mxu0 %v3363_v42  ;;  %2027 = vmatpush.bf16.msra.mxu1 %v3619_v0  ;;  %v3468_v38 = vld [vmem:[#allocation7 + $0x1e8] sm:$0xf0]  ;;  %v3495_v42 = vor.u32 %v4164_v29, %v3492_v30  ;;  %v3338_v23 = vld [vmem:[#allocation7 + $0xc8] sm:$0xf] }
 0x53a   :  { %v4221_v44 = vld [vmem:[#allocation7 + $0x3cc] sm:$0xf]  ;;  %v3467_v0 = vor.u32 %v4161_v32, %v3466_v31  ;;  %v4129_v24 = vld [vmem:[#allocation7 + $0xe4] sm:$0xf0] }
 0x53b   :  { %v1214_v4 = vmul.f32 %v4749_v16, %v4749_v16  ;;  %2040 = vmatpush.bf16.msra.mxu2 %v3367_v1  ;;  %v3723_v1 = vor.u32 %v4225_v35, %v3722_v34  ;;  %v3594_v25 = vld [vmem:[#allocation7 + $0x2c8] sm:$0xf]  ;;  %v3340_v29 = vld [vmem:[#allocation7 + $0xe8] sm:$0xf0] }
 0x53c   :  { %v4189_v32 = vld [vmem:[#allocation7 + $0x2cc] sm:$0xf]  ;;  %v3306_v35 = vld [vmem:[#allocation7 + $0x88] sm:$0xf] }
 0x53d   :  { %v1195_v46 = vpop.f32.mrf.mxu2  ;;  %v1208_v48 = vpop.f32.mrf.mxu3 }
 0x53e   :  { %v1209_v49 = vadd.f32 %v1208_v48, %v1195_v46  ;;  %v1171_v50 = vpop.f32.mrf.mxu0  ;;  %v1184_v51 = vpop.f32.mrf.mxu1  ;;  %v3330_v46 = vld [vmem:[#allocation7 + $0xc0] sm:$0xf] }
 0x53f   :  { %v4128_v48 = vld [vmem:[#allocation7 + $0xdc] sm:$0xf0]  ;;  %v4124_v51 = vld [vmem:[#allocation7 + $0xc4] sm:$0xf] }
 0x540   :  { %v4754_v57 = vadd.f32 %v4351_v56, %v1209_v49  ;;  %v3623_v49 = vor.u32 %v4196_v40, %v3620_v41  ;;  %v4192_v50 = vld [vmem:[#allocation7 + $0x2dc] sm:$0xf0]  ;;  %v3331_v56 = vor.u32 %v4128_v48, %v3330_v46  ;;  %v3335_v54 = vor.u32 %v4124_v51, %v3332_v53  ;;  %v3724_v40 = vld [vmem:[#allocation7 + $0x3e8] sm:$0xf0]  ;;  %v4217_v53 = vld [vmem:[#allocation7 + $0x3a4] sm:$0xf0] }
 0x541   :  { %v3587_v58 = vor.u32 %v4192_v50, %v3586_v47  ;;  %v3239_v41 = vor.u32 %v4100_v27, %v3236_v28  ;;  %v3471_v46 = vor.u32 %v4157_v36, %v3468_v38  ;;  %v3727_v48 = vor.u32 %v4221_v44, %v3724_v40  ;;  %v3434_v47 = vld [vmem:[#allocation7 + $0x188] sm:$0xf]  ;;  %v4125_v28 = vld [vmem:[#allocation7 + $0xcc] sm:$0xf] }
 0x542   :  { %v1215_v45 = vmul.f32 %v4754_v57, %v4754_v57  ;;  %2053 = vmatpush.bf16.msra.mxu3 %v3623_v49  ;;  %2015 = vmatpush.bf16.msra.mxu0 %v3331_v56  ;;  %v4153_v49 = vld [vmem:[#allocation7 + $0x1a4] sm:$0xf0]  ;;  %v3343_v31 = vor.u32 %v4125_v28, %v3340_v29  ;;  %v4117_v40 = vld [vmem:[#allocation7 + $0x8c] sm:$0xf]  ;;  %v3730_v28 = vld [vmem:[#allocation7 + $0x3d0] sm:$0xf] }
 0x543   :  { %2028 = vmatpush.bf16.msra.mxu1 %v3587_v58  ;;  %2041 = vmatpush.bf16.msra.mxu2 %v3335_v54  ;;  %v3690_v50 = vld [vmem:[#allocation7 + $0x388] sm:$0xf]  ;;  %v3435_v51 = vor.u32 %v4153_v49, %v3434_v47  ;;  %v3439_v58 = vor.u32 %v4149_v60, %v3436_v55  ;;  %v4213_v54 = vld [vmem:[#allocation7 + $0x38c] sm:$0xf]  ;;  %v4226_v29 = vld [vmem:[#allocation7 + $0x3ec] sm:$0xf0] }
 0x544   :  { %v1216_v15 = vadd.f32 %v1215_v45, %v1214_v4  ;;  %v4180_v4 = vld [vmem:[#allocation7 + $0x284] sm:$0xf]  ;;  %v3691_v56 = vor.u32 %v4217_v53, %v3690_v50  ;;  %v4193_v27 = vld [vmem:[#allocation7 + $0x2e4] sm:$0xf0]  ;;  %v4109_v60 = vld [vmem:[#allocation7 + $0x4c] sm:$0xf] }
 0x545   :  { %v1197_v21 = vpop.f32.mrf.mxu2  ;;  %v1210_v22 = vpop.f32.mrf.mxu3  ;;  %v3556_v45 = vld [vmem:[#allocation7 + $0x2a0] sm:$0xf0]  ;;  %v3595_v30 = vor.u32 %v4193_v27, %v3594_v25  ;;  %v4121_v36 = vld [vmem:[#allocation7 + $0xa4] sm:$0xf0]  ;;  %v3276_v55 = vld [vmem:[#allocation7 + $0x68] sm:$0xf0] }
 0x546   :  { %1217 = vadd.xlane.f32.xlu1 %v1216_v15  ;;  %2054 = vmatpush.bf16.msra.mxu3 %v3591_v63  ;;  %v3559_v12 = vor.u32 %v4180_v4, %v3556_v45  ;;  %v3268_v15 = vld [vmem:[#allocation7 + $0x60] sm:$0xf0]  ;;  %v3523_v21 = vor.u32 %v4176_v13, %v3522_v11  ;;  %v3658_v63 = vld [vmem:[#allocation7 + $0x348] sm:$0xf]  ;;  %v3404_v4 = vld [vmem:[#allocation7 + $0x168] sm:$0xf0]  ;;  %v3307_v38 = vor.u32 %v4121_v36, %v3306_v35 }
 0x547   :  { %2016 = vmatpush.bf16.msra.mxu0 %v3299_v5  ;;  %2029 = vmatpush.bf16.msra.mxu1 %v3555_v6  ;;  %v3271_v22 = vor.u32 %v4108_v14, %v3268_v15  ;;  %v3659_v45 = vor.u32 %v4209_v3, %v3658_v63  ;;  %v3407_v5 = vor.u32 %v4141_v8, %v3404_v4  ;;  %v4205_v6 = vld [vmem:[#allocation7 + $0x34c] sm:$0xf]  ;;  %v4137_v11 = vld [vmem:[#allocation7 + $0x124] sm:$0xf0]  ;;  %v3474_v25 = vld [vmem:[#allocation7 + $0x1d0] sm:$0xf] }
 0x548   :  { %2042 = vmatpush.bf16.msra.mxu2 %v3303_v7  ;;  %v3660_v7 = vld [vmem:[#allocation7 + $0x368] sm:$0xf0]  ;;  %v3371_v13 = vor.u32 %v4137_v11, %v3370_v10  ;;  %v4201_v14 = vld [vmem:[#allocation7 + $0x324] sm:$0xf0]  ;;  %v4222_v35 = vld [vmem:[#allocation7 + $0x3d4] sm:$0xf] }
 0x549   :  { %v3663_v9 = vor.u32 %v4205_v6, %v3660_v7  ;;  %v4133_v15 = vld [vmem:[#allocation7 + $0x10c] sm:$0xf]  ;;  %v4185_v44 = vld [vmem:[#allocation7 + $0x2a4] sm:$0xf0]  ;;  %v3732_v36 = vld [vmem:[#allocation7 + $0x3f0] sm:$0xf0] }
 0x54a   :  { %2055 = vmatpush.bf16.msra.mxu3 %v3559_v12  ;;  %v3626_v12 = vld [vmem:[#allocation7 + $0x308] sm:$0xf]  ;;  %v4101_v8 = vld [vmem:[#allocation7 + $0xc] sm:$0xf] }
 0x54b   :  { %2017 = vmatpush.bf16.msra.mxu0 %v3267_v19  ;;  %2030 = vmatpush.bf16.msra.mxu1 %v3523_v21  ;;  %v3627_v18 = vor.u32 %v4201_v14, %v3626_v12  ;;  %v3375_v19 = vor.u32 %v4133_v15, %v3372_v17  ;;  %v3628_v21 = vld [vmem:[#allocation7 + $0x328] sm:$0xf0]  ;;  %v3274_v47 = vld [vmem:[#allocation7 + $0x48] sm:$0xf] }
 0x54c   :  { %2043 = vmatpush.bf16.msra.mxu2 %v3271_v22  ;;  %v3631_v22 = vor.u32 %v4197_v20, %v3628_v21  ;;  %v4113_v49 = vld [vmem:[#allocation7 + $0x64] sm:$0xf0]  ;;  %v3244_v4 = vld [vmem:[#allocation7 + $0x28] sm:$0xf0] }
 0x54d   :  { %v3530_v50 = vld [vmem:[#allocation7 + $0x248] sm:$0xf]  ;;  %v4165_v6 = vld [vmem:[#allocation7 + $0x20c] sm:$0xf] }
 0x54e   :  { %2056 = vmatpush.bf16.msra.mxu3 %v3527_v26  ;;  %v3339_v26 = vor.u32 %v4129_v24, %v3338_v23  ;;  %v4177_v53 = vld [vmem:[#allocation7 + $0x264] sm:$0xf0]  ;;  %v3500_v7 = vld [vmem:[#allocation7 + $0x228] sm:$0xf0] }
 0x54f   :  { %2018 = vmatpush.bf16.msra.mxu0 %v3235_v33  ;;  %2031 = vmatpush.bf16.msra.mxu1 %v3491_v37  ;;  %v3596_v33 = vld [vmem:[#allocation7 + $0x2e8] sm:$0xf0]  ;;  %v3562_v37 = vld [vmem:[#allocation7 + $0x288] sm:$0xf] }
 0x550   :  { %2044 = vmatpush.bf16.msra.mxu2 %v3239_v41  ;;  %v3599_v34 = vor.u32 %v4189_v32, %v3596_v33  ;;  %v3308_v41 = vld [vmem:[#allocation7 + $0xa8] sm:$0xf0]  ;;  %v3498_v63 = vld [vmem:[#allocation7 + $0x208] sm:$0xf] }
 0x551   :  { %v4169_v3 = vld [vmem:[#allocation7 + $0x224] sm:$0xf0] }
 0x552   :  { %2057 = vmatpush.bf16.msra.mxu3 %v3495_v42  ;;  %v3563_v42 = vor.u32 %v4185_v44, %v3562_v37 }
 0x553   :  { %2063 = vmatpush.bf16.msrb.mxu0 %v3467_v0  ;;  %2076 = vmatpush.bf16.msrb.mxu1 %v3723_v1  ;;  %v3311_v0 = vor.u32 %v4117_v40, %v3308_v41  ;;  %v4181_v1 = vld [vmem:[#allocation7 + $0x28c] sm:$0xf]  ;;  %v3731_v41 = vor.u32 %v4226_v29, %v3730_v28  ;;  %v3314_v28 = vld [vmem:[#allocation7 + $0x90] sm:$0xf] }
 0x554   :  { %2089 = vmatpush.bf16.msrb.mxu2 %v3471_v46  ;;  %v3564_v46 = vld [vmem:[#allocation7 + $0x2a8] sm:$0xf0]  ;;  %v4122_v29 = vld [vmem:[#allocation7 + $0xac] sm:$0xf0] }
 0x556   :  { %2102 = vmatpush.bf16.msrb.mxu3 %v3727_v48  ;;  %v3567_v48 = vor.u32 %v4181_v1, %v3564_v46  ;;  %v3698_v1 = vld [vmem:[#allocation7 + $0x390] sm:$0xf] }
 0x557   :  { %2064 = vmatpush.bf16.msrb.mxu0 %v3435_v51  ;;  %2077 = vmatpush.bf16.msrb.mxu1 %v3691_v56  ;;  %v3275_v51 = vor.u32 %v4113_v49, %v3274_v47  ;;  %v3531_v56 = vor.u32 %v4177_v53, %v3530_v50  ;;  %v4218_v47 = vld [vmem:[#allocation7 + $0x3ac] sm:$0xf0]  ;;  %v4150_v49 = vld [vmem:[#allocation7 + $0x194] sm:$0xf] }
 0x558   :  { %2090 = vmatpush.bf16.msrb.mxu2 %v3439_v58  ;;  %v3279_v58 = vor.u32 %v4109_v60, %v3276_v55  ;;  %v4214_v50 = vld [vmem:[#allocation7 + $0x394] sm:$0xf]  ;;  %v3699_v60 = vor.u32 %v4218_v47, %v3698_v1  ;;  %v3410_v55 = vld [vmem:[#allocation7 + $0x150] sm:$0xf] }
 0x559   :  { %v4178_v47 = vld [vmem:[#allocation7 + $0x26c] sm:$0xf0] }
 0x55b   :  { %2065 = vmatpush.bf16.msrb.mxu0 %v3403_v2  ;;  %2078 = vmatpush.bf16.msrb.mxu1 %v3659_v45  ;;  %v3243_v2 = vor.u32 %v4105_v62, %v3242_v61  ;;  %v3499_v45 = vor.u32 %v4169_v3, %v3498_v63  ;;  %v4142_v61 = vld [vmem:[#allocation7 + $0x154] sm:$0xf] }
 0x55c   :  { %2091 = vmatpush.bf16.msrb.mxu2 %v3407_v5  ;;  %v3247_v5 = vor.u32 %v4101_v8, %v3244_v4  ;;  %v3412_v62 = vld [vmem:[#allocation7 + $0x170] sm:$0xf0]  ;;  %v3378_v4 = vld [vmem:[#allocation7 + $0x110] sm:$0xf] }
 0x55d   :  { %v4206_v63 = vld [vmem:[#allocation7 + $0x354] sm:$0xf] }
 0x55f   :  { %958 = vrot.lane.b32.xlu1 %v4702_v43, %s4517_s26  ;;  %v3695_v43 = vor.u32 %v4213_v54, %v3692_v59  ;;  %2066 = vmatpush.bf16.msrb.mxu0 %v3371_v13  ;;  %v4173_v54 = vld [vmem:[#allocation7 + $0x24c] sm:$0xf] }
 0x560   :  { %2079 = vmatpush.bf16.msrb.mxu1 %v3627_v18  ;;  %2092 = vmatpush.bf16.msrb.mxu2 %v3375_v19  ;;  %v3532_v59 = vld [vmem:[#allocation7 + $0x268] sm:$0xf0]  ;;  %v1233_v18 = vld [vmem:[%s4889_s4] sm:$0x3]  ;;  %s4519_s4 = smov [#allocation10]  }
 0x561   :  { %2103 = vmatpush.bf16.msrb.mxu3 %v3695_v43  ;;  %v3535_v43 = vor.u32 %v4173_v54, %v3532_v59  ;;  %v1235_v21 = vperm.slane %v1233_v18, 0  ;;  %v3666_v59 = vld [vmem:[#allocation7 + $0x350] sm:$0xf]  ;;  %s2806_s14 = sshll.u32 %s4519_s4, 4  ;;  %s2807_s14 = int_to_ptr.vmem [resolvable:$true] %s2806_s14 }
 0x563   :  { %2067 = vmatpush.bf16.msrb.mxu0 %v3339_v26  ;;  %v4162_v26 = vld [vmem:[#allocation7 + $0x1ec] sm:$0xf0] }
 0x564   :  { %2080 = vmatpush.bf16.msrb.mxu1 %v3595_v30  ;;  %2093 = vmatpush.bf16.msrb.mxu2 %v3343_v31  ;;  %v4158_v30 = vld [vmem:[#allocation7 + $0x1d4] sm:$0xf]  ;;  %v3475_v40 = vor.u32 %v4162_v26, %v3474_v25 }
 0x565   :  { %2104 = vmatpush.bf16.msrb.mxu3 %v3663_v9  ;;  %v3503_v9 = vor.u32 %v4165_v6, %v3500_v7  ;;  %v3634_v7 = vld [vmem:[#allocation7 + $0x310] sm:$0xf]  ;;  %v3604_v25 = vld [vmem:[#allocation7 + $0x2f0] sm:$0xf0] }
 0x567   :  { %2068 = vmatpush.bf16.msrb.mxu0 %v3307_v38 }
 0x568   :  { %2081 = vmatpush.bf16.msrb.mxu1 %v3563_v42  ;;  %2094 = vmatpush.bf16.msrb.mxu2 %v3311_v0  ;;  %v3442_v42 = vld [vmem:[#allocation7 + $0x190] sm:$0xf] }
 0x569   :  { %2105 = vmatpush.bf16.msrb.mxu3 %v3631_v22  ;;  %v1236_v22 = vperm.slane %v1233_v18, 1  ;;  %v4154_v0 = vld [vmem:[#allocation7 + $0x1ac] sm:$0xf0] }
 0x56a   :  { %v3443_v53 = vor.u32 %v4154_v0, %v3442_v42  ;;  %v4130_v18 = vld [vmem:[#allocation7 + $0xec] sm:$0xf0] }
 0x56b   :  { %2069 = vmatpush.bf16.msrb.mxu0 %v3275_v51  ;;  %v3700_v51 = vld [vmem:[#allocation7 + $0x3b0] sm:$0xf0]  ;;  %v3282_v42 = vld [vmem:[#allocation7 + $0x50] sm:$0xf] }
 0x56c   :  { %2082 = vmatpush.bf16.msrb.mxu1 %v3531_v56  ;;  %2095 = vmatpush.bf16.msrb.mxu2 %v3279_v58  ;;  %v4146_v56 = vld [vmem:[#allocation7 + $0x16c] sm:$0xf0]  ;;  %v3703_v54 = vor.u32 %v4214_v50, %v3700_v51  ;;  %v4174_v50 = vld [vmem:[#allocation7 + $0x254] sm:$0xf] }
 0x56d   :  { %2106 = vmatpush.bf16.msrb.mxu3 %v3599_v34  ;;  %v3476_v34 = vld [vmem:[#allocation7 + $0x1f0] sm:$0xf0]  ;;  %v3411_v3 = vor.u32 %v4146_v56, %v3410_v55  ;;  %v4114_v0 = vld [vmem:[#allocation7 + $0x6c] sm:$0xf0] }
 0x56e   :  { %v3479_v46 = vor.u32 %v4158_v30, %v3476_v34  ;;  %v4118_v34 = vld [vmem:[#allocation7 + $0x94] sm:$0xf]  ;;  %v4106_v56 = vld [vmem:[#allocation7 + $0x2c] sm:$0xf0] }
 0x56f   :  { %2070 = vmatpush.bf16.msrb.mxu0 %v3243_v2  ;;  %v3668_v2 = vld [vmem:[#allocation7 + $0x370] sm:$0xf0] }
 0x570   :  { %2083 = vmatpush.bf16.msrb.mxu1 %v3499_v45  ;;  %2096 = vmatpush.bf16.msrb.mxu2 %v3247_v5  ;;  %v4138_v45 = vld [vmem:[#allocation7 + $0x12c] sm:$0xf0]  ;;  %v3415_v5 = vor.u32 %v4142_v61, %v3412_v62  ;;  %v3671_v6 = vor.u32 %v4206_v63, %v3668_v2  ;;  %v3540_v51 = vld [vmem:[#allocation7 + $0x270] sm:$0xf0] }
 0x571   :  { %2107 = vmatpush.bf16.msrb.mxu3 %v3567_v48  ;;  %v3735_v48 = vor.u32 %v4222_v35, %v3732_v36  ;;  %v3316_v35 = vld [vmem:[#allocation7 + $0xb0] sm:$0xf0] }
 0x572   :  { %v4182_v36 = vld [vmem:[#allocation7 + $0x294] sm:$0xf]  ;;  %v3319_v1 = vor.u32 %v4118_v34, %v3316_v35  ;;  %v4143_v34 = vld [vmem:[#allocation7 + $0x15c] sm:$0xf] }
 0x573   :  { %v4102_v61 = vld [vmem:[#allocation7 + $0x14] sm:$0xf]  ;;  %v3420_v35 = vld [vmem:[#allocation7 + $0x178] sm:$0xf0] }
 0x574   :  { %v3252_v62 = vld [vmem:[#allocation7 + $0x30] sm:$0xf0] }
 0x575   :  { %2108 = vmatpush.bf16.msrb.mxu3 %v3535_v43  ;;  %v4210_v43 = vld [vmem:[#allocation7 + $0x36c] sm:$0xf0]  ;;  %v4166_v63 = vld [vmem:[#allocation7 + $0x214] sm:$0xf] }
 0x576   :  { %v3667_v8 = vor.u32 %v4210_v43, %v3666_v59  ;;  %v3543_v43 = vor.u32 %v4174_v50, %v3540_v51  ;;  %v3508_v2 = vld [vmem:[#allocation7 + $0x230] sm:$0xf0]  ;;  %v4199_v50 = vld [vmem:[#allocation7 + $0x31c] sm:$0xf] }
 0x577   :  { %v3644_v51 = vld [vmem:[#allocation7 + $0x338] sm:$0xf0] }
 0x579   :  { %2109 = vmatpush.bf16.msrb.mxu3 %v3503_v9  ;;  %v4202_v9 = vld [vmem:[#allocation7 + $0x32c] sm:$0xf0] }
 0x5b9   :  { %v1218_v10 = vpop.xlane.xlu1 %1217 }
 0x5ba   :  { %v1219_v11 = vmul.f32 %v1218_v10, %v4618_v39  ;;  %v4134_v10 = vld [vmem:[#allocation7 + $0x114] sm:$0xf] }
 0x5bc   :  { %v1220_v12 = vadd.f32 1e-06, %v1219_v11  ;;  %v3380_v11 = vld [vmem:[#allocation7 + $0x130] sm:$0xf0] }
 0x5be   :  { %4332 = vrsqrt.f32 %v1220_v12  ;;  %vm1227_vm9 = vweird.f32 %v1220_v12 }
 0x5c4   :  { %v4333_v13 = vpop.eup %4332 }
 0x5c5   :  { %v1222_v14 = vmul.f32 %v4333_v13, %v1220_v12  ;;  %vm1228_vm8 = vweird.f32 %v4333_v13  ;;  %v4198_v12 = vld [vmem:[#allocation7 + $0x314] sm:$0xf] }
 0x5c6   :  { %vm1229_vm10 = vmor %vm1227_vm9, %vm1228_vm8 }
 0x5c7   :  { %v1223_v15 = vmul.f32 %v4333_v13, %v1222_v14  ;;  %v3379_v14 = vor.u32 %v4138_v45, %v3378_v4  ;;  %v3738_v4 = vld [vmem:[#allocation7 + $0x3d8] sm:$0xf] }
 0x5c8   :  { %v4227_v45 = vld [vmem:[#allocation7 + $0x3f4] sm:$0xf0] }
 0x5c9   :  { %v1224_v17 = vmul.f32 0.5, %v1223_v15  ;;  %v3635_v15 = vor.u32 %v4202_v9, %v3634_v7  ;;  %v3484_v9 = vld [vmem:[#allocation7 + $0x1f8] sm:$0xf0] }
 0x5cb   :  { %v1225_v19 = vsub.f32 1.5, %v1224_v17  ;;  %v3346_v17 = vld [vmem:[#allocation7 + $0xd0] sm:$0xf] }
 0x5cc   :  { %v3347_v26 = vor.u32 %v4130_v18, %v3346_v17  ;;  %v3450_v17 = vld [vmem:[#allocation7 + $0x198] sm:$0xf] }
 0x5cd   :  { %v1226_v20 = vmul.f32 %v4333_v13, %v1225_v19  ;;  %v3383_v19 = vor.u32 %v4134_v10, %v3380_v11  ;;  %v4223_v10 = vld [vmem:[#allocation7 + $0x3dc] sm:$0xf]  ;;  %v4155_v18 = vld [vmem:[#allocation7 + $0x1b4] sm:$0xf0] }
 0x5ce   :  { %v3740_v11 = vld [vmem:[#allocation7 + $0x3f8] sm:$0xf0] }
 0x5cf   :  { %v1230_v23 = vsel %vm1229_vm10, %v4333_v13, %v1226_v20  ;;  %v3636_v13 = vld [vmem:[#allocation7 + $0x330] sm:$0xf0] }
 0x5d0   :  { %v1231_v39 = vmul.f32 %v1230_v23, %v4749_v16  ;;  %v1232_v24 = vmul.f32 %v1230_v23, %v4754_v57  ;;  %v3639_v20 = vor.u32 %v4198_v12, %v3636_v13  ;;  %v4126_v23 = vld [vmem:[#allocation7 + $0xd4] sm:$0xf]  ;;  %v3255_v12 = vor.u32 %v4102_v61, %v3252_v62  ;;  %v4127_v61 = vld [vmem:[#allocation7 + $0xdc] sm:$0xf] }
 0x5d1   :  { %v959_v27 = vpop.permute.xlu1 %958  ;;  %v3511_v13 = vor.u32 %v4166_v63, %v3508_v2  ;;  %v3356_v62 = vld [vmem:[#allocation7 + $0xf8] sm:$0xf0] }
 0x5d2   :  { %v1239_v31 = vmul.f32 %v1235_v21, %v1231_v39  ;;  %v1240_v32 = vmul.f32 %v1236_v22, %v1232_v24  ;;  %v961_v33 = vsel %vm707_vm4, %v4712_v52, %v959_v27  ;;  %v3444_v52 = vld [vmem:[#allocation7 + $0x1b0] sm:$0xf0]  ;;  %v3602_v21 = vld [vmem:[#allocation7 + $0x2d0] sm:$0xf]  ;;  %v4191_v63 = vld [vmem:[#allocation7 + $0x2dc] sm:$0xf] }
 0x5d3   :  { %v962_v37 = vpack.c.bf16 %v961_v33, %v961_v33  ;;  %v3447_v58 = vor.u32 %v4150_v49, %v3444_v52  ;;  %v4194_v22 = vld [vmem:[#allocation7 + $0x2ec] sm:$0xf0]  ;;  %v3348_v39 = vld [vmem:[#allocation7 + $0xf0] sm:$0xf0]  ;;  %v3612_v2 = vld [vmem:[#allocation7 + $0x2f8] sm:$0xf0] }
 0x5d4   :  { %v4770_v38 = vpack.c.bf16 %v1239_v31, %v1239_v31  ;;  %v4772_v44 = vpack.c.bf16 %v1240_v32, %v1240_v32  ;;  %v4190_v24 = vld [vmem:[#allocation7 + $0x2d4] sm:$0xf]  ;;  %v3603_v27 = vor.u32 %v4194_v22, %v3602_v21  ;;  %v3351_v30 = vor.u32 %v4126_v23, %v3348_v39  ;;  %v3570_v32 = vld [vmem:[#allocation7 + $0x290] sm:$0xf]  ;;  %v3706_v21 = vld [vmem:[#allocation7 + $0x398] sm:$0xf] }
 0x5d5   :  { %963 = vst [vmem:[#allocation10] sm:$0xf] %v962_v37  ;;  %v3607_v31 = vor.u32 %v4190_v24, %v3604_v25  ;;  %v4186_v33 = vld [vmem:[#allocation7 + $0x2ac] sm:$0xf0]  ;;  %v3572_v37 = vld [vmem:[#allocation7 + $0x2b0] sm:$0xf0] }
 0x5d6   :  { %2019 = vmatmul.bf16.vlgmr.msra.gmra.mxu0 %v4770_v38  ;;  %2032 = vmatmul.bf16.vlgmr.msra.gmra.mxu1 %v4772_v44  ;;  %v4110_v49 = vld [vmem:[#allocation7 + $0x54] sm:$0xf]  ;;  %v4219_v22 = vld [vmem:[#allocation7 + $0x3b4] sm:$0xf0]  ;;  %v4151_v23 = vld [vmem:[#allocation7 + $0x19c] sm:$0xf] }
 0x5d7   :  { %2045 = vmatmul.bf16.vlgmr.msra.gmra.mxu2 %v4770_v38  ;;  %2058 = vmatmul.bf16.vlgmr.msra.gmra.mxu3 %v4772_v44  ;;  %v3284_v52 = vld [vmem:[#allocation7 + $0x70] sm:$0xf0]  ;;  %v3452_v39 = vld [vmem:[#allocation7 + $0x1b8] sm:$0xf0]  ;;  %2811 = dma.vmem_to_hbm [thread:$0]  %s2807_s14, 64, %s2809_s5, [#allocation4]  }
 0x5d8   :  { %2115 = vmatpush.bf16.msra.mxu0 %v3475_v40  ;;  %2128 = vmatpush.bf16.msra.mxu1 %v3731_v41  ;;  %v3315_v40 = vor.u32 %v4122_v29, %v3314_v28  ;;  %v3571_v41 = vor.u32 %v4186_v33, %v3570_v32  ;;  %v3287_v59 = vor.u32 %v4110_v49, %v3284_v52  ;;  %v4215_v24 = vld [vmem:[#allocation7 + $0x39c] sm:$0xf]  ;;  %v3418_v28 = vld [vmem:[#allocation7 + $0x158] sm:$0xf] }
 0x5d9   :  { %2141 = vmatpush.bf16.msra.mxu2 %v3479_v46  ;;  %2154 = vmatpush.bf16.msra.mxu3 %v3735_v48  ;;  %v3575_v46 = vor.u32 %v4182_v36, %v3572_v37  ;;  %v3538_v48 = vld [vmem:[#allocation7 + $0x250] sm:$0xf]  ;;  %v3708_v25 = vld [vmem:[#allocation7 + $0x3b8] sm:$0xf0]  ;;  %v4147_v29 = vld [vmem:[#allocation7 + $0x174] sm:$0xf0] }
 0x5da   :  { %v3539_v55 = vor.u32 %v4178_v47, %v3538_v48  ;;  %v3674_v32 = vld [vmem:[#allocation7 + $0x358] sm:$0xf]  ;;  %v4207_v36 = vld [vmem:[#allocation7 + $0x35c] sm:$0xf] }
 0x5db   :  { %v4211_v33 = vld [vmem:[#allocation7 + $0x374] sm:$0xf0]  ;;  %v3676_v37 = vld [vmem:[#allocation7 + $0x378] sm:$0xf0] }
 0x5dc   :  { %2116 = vmatpush.bf16.msra.mxu0 %v3443_v53  ;;  %2129 = vmatpush.bf16.msra.mxu1 %v3699_v60  ;;  %v3250_v53 = vld [vmem:[#allocation7 + $0x10] sm:$0xf]  ;;  %v3283_v60 = vor.u32 %v4114_v0, %v3282_v42  ;;  %v3386_v42 = vld [vmem:[#allocation7 + $0x118] sm:$0xf]  ;;  %v4135_v49 = vld [vmem:[#allocation7 + $0x11c] sm:$0xf] }
 0x5dd   :  { %2142 = vmatpush.bf16.msra.mxu2 %v3447_v58  ;;  %2155 = vmatpush.bf16.msra.mxu3 %v3703_v54  ;;  %v3506_v58 = vld [vmem:[#allocation7 + $0x210] sm:$0xf]  ;;  %v4139_v0 = vld [vmem:[#allocation7 + $0x134] sm:$0xf0]  ;;  %v3388_v52 = vld [vmem:[#allocation7 + $0x138] sm:$0xf0] }
 0x5de   :  { %v4170_v54 = vld [vmem:[#allocation7 + $0x22c] sm:$0xf0]  ;;  %v3642_v48 = vld [vmem:[#allocation7 + $0x318] sm:$0xf] }
 0x5df   :  { %v3507_v7 = vor.u32 %v4170_v54, %v3506_v58  ;;  %v4203_v47 = vld [vmem:[#allocation7 + $0x334] sm:$0xf0]  ;;  %v3391_v58 = vor.u32 %v4135_v49, %v3388_v52  ;;  %v3647_v54 = vor.u32 %v4199_v50, %v3644_v51  ;;  %v4241_v49 = vld [vmem:[#allocation8 + $0x64] sm:$0xf0]  ;;  %v3870_v50 = vld [vmem:[#allocation8 + $0xf0] sm:$0xf] }
 0x5e0   :  { %2117 = vmatpush.bf16.msra.mxu0 %v3411_v3  ;;  %2130 = vmatpush.bf16.msra.mxu1 %v3667_v8  ;;  %v3482_v3 = vld [vmem:[#allocation7 + $0x1d8] sm:$0xf] }
 0x5e1   :  { %2143 = vmatpush.bf16.msra.mxu2 %v3415_v5  ;;  %2156 = vmatpush.bf16.msra.mxu3 %v3671_v6  ;;  %v4163_v8 = vld [vmem:[#allocation7 + $0x1f4] sm:$0xf0]  ;;  %v4159_v5 = vld [vmem:[#allocation7 + $0x1dc] sm:$0xf]  ;;  %v3251_v6 = vor.u32 %v4106_v56, %v3250_v53  ;;  %v3387_v53 = vor.u32 %v4139_v0, %v3386_v42 }
 0x5e2   :  { %v4131_v56 = vld [vmem:[#allocation7 + $0xf4] sm:$0xf0] }
 0x5e3   :  { %v4259_v51 = vld [vmem:[#allocation8 + $0xf4] sm:$0xf0] }
 0x5e4   :  { %2118 = vmatpush.bf16.msra.mxu0 %v3379_v14  ;;  %2131 = vmatpush.bf16.msra.mxu1 %v3635_v15  ;;  %v3483_v14 = vor.u32 %v4163_v8, %v3482_v3  ;;  %v3739_v15 = vor.u32 %v4227_v45, %v3738_v4  ;;  %v3322_v4 = vld [vmem:[#allocation7 + $0x98] sm:$0xf] }
 0x5e5   :  { %2144 = vmatpush.bf16.msra.mxu2 %v3383_v19  ;;  %2157 = vmatpush.bf16.msra.mxu3 %v3639_v20  ;;  %v3487_v19 = vor.u32 %v4159_v5, %v3484_v9  ;;  %v3743_v20 = vor.u32 %v4223_v10, %v3740_v11  ;;  %v4123_v45 = vld [vmem:[#allocation7 + $0xb4] sm:$0xf0]  ;;  %v3359_v5 = vor.u32 %v4127_v61, %v3356_v62  ;;  %v4119_v10 = vld [vmem:[#allocation7 + $0x9c] sm:$0xf]  ;;  %v4237_v61 = vld [vmem:[#allocation8 + $0x44] sm:$0xf0] }
 0x5e6   :  { %2071 = vmatmul.bf16.vlgmr.msrb.gmra.mxu0 %v4770_v38  ;;  %2084 = vmatmul.bf16.vlgmr.msrb.gmra.mxu1 %v4772_v44  ;;  %v4187_v9 = vld [vmem:[#allocation7 + $0x2b4] sm:$0xf0]  ;;  %v3324_v11 = vld [vmem:[#allocation7 + $0xb8] sm:$0xf0] }
 0x5e7   :  { %2097 = vmatmul.bf16.vlgmr.msrb.gmra.mxu2 %v4770_v38  ;;  %2110 = vmatmul.bf16.vlgmr.msrb.gmra.mxu3 %v4772_v44 }
 0x5e8   :  { %2119 = vmatpush.bf16.msra.mxu0 %v3347_v26  ;;  %2132 = vmatpush.bf16.msra.mxu1 %v3603_v27  ;;  %v3451_v26 = vor.u32 %v4155_v18, %v3450_v17  ;;  %v3707_v27 = vor.u32 %v4219_v22, %v3706_v21  ;;  %v3290_v17 = vld [vmem:[#allocation7 + $0x58] sm:$0xf] }
 0x5e9   :  { %2145 = vmatpush.bf16.msra.mxu2 %v3351_v30  ;;  %2158 = vmatpush.bf16.msra.mxu3 %v3607_v31  ;;  %v3455_v30 = vor.u32 %v4151_v23, %v3452_v39  ;;  %v3711_v31 = vor.u32 %v4215_v24, %v3708_v25  ;;  %v4115_v18 = vld [vmem:[#allocation7 + $0x74] sm:$0xf0]  ;;  %v4111_v23 = vld [vmem:[#allocation7 + $0x5c] sm:$0xf] }
 0x5ea   :  { %v3546_v21 = vld [vmem:[#allocation7 + $0x258] sm:$0xf]  ;;  %v3292_v39 = vld [vmem:[#allocation7 + $0x78] sm:$0xf0] }
 0x5eb   :  { %v4179_v22 = vld [vmem:[#allocation7 + $0x274] sm:$0xf0]  ;;  %v4175_v24 = vld [vmem:[#allocation7 + $0x25c] sm:$0xf] }
 0x5ec   :  { %2120 = vmatpush.bf16.msra.mxu0 %v3315_v40  ;;  %2133 = vmatpush.bf16.msra.mxu1 %v3571_v41  ;;  %v3419_v40 = vor.u32 %v4147_v29, %v3418_v28  ;;  %v3675_v41 = vor.u32 %v4211_v33, %v3674_v32  ;;  %v3548_v25 = vld [vmem:[#allocation7 + $0x278] sm:$0xf0]  ;;  %v3258_v28 = vld [vmem:[#allocation7 + $0x18] sm:$0xf] }
 0x5ed   :  { %2146 = vmatpush.bf16.msra.mxu2 %v3319_v1  ;;  %2159 = vmatpush.bf16.msra.mxu3 %v3575_v46  ;;  %v3423_v1 = vor.u32 %v4143_v34, %v3420_v35  ;;  %v3679_v46 = vor.u32 %v4207_v36, %v3676_v37  ;;  %v4107_v29 = vld [vmem:[#allocation7 + $0x34] sm:$0xf0]  ;;  %v4103_v34 = vld [vmem:[#allocation7 + $0x1c] sm:$0xf] }
 0x5ee   :  { %v3514_v32 = vld [vmem:[#allocation7 + $0x218] sm:$0xf]  ;;  %v3260_v35 = vld [vmem:[#allocation7 + $0x38] sm:$0xf0]  ;;  %v3259_v42 = vor.u32 %v4107_v29, %v3258_v28  ;;  %v3822_v28 = vld [vmem:[#allocation8 + $0x90] sm:$0xf] }
 0x5ef   :  { %v4171_v33 = vld [vmem:[#allocation7 + $0x234] sm:$0xf0]  ;;  %v4167_v36 = vld [vmem:[#allocation7 + $0x21c] sm:$0xf] }
 0x5f0   :  { %2121 = vmatpush.bf16.msra.mxu0 %v3283_v60  ;;  %2134 = vmatpush.bf16.msra.mxu1 %v3539_v55  ;;  %v3643_v60 = vor.u32 %v4203_v47, %v3642_v48  ;;  %v3354_v55 = vld [vmem:[#allocation7 + $0xd8] sm:$0xf]  ;;  %v3516_v37 = vld [vmem:[#allocation7 + $0x238] sm:$0xf0]  ;;  %v3515_v0 = vor.u32 %v4171_v33, %v3514_v32  ;;  %v3798_v47 = vld [vmem:[#allocation8 + $0x60] sm:$0xf] }
 0x5f1   :  { %2147 = vmatpush.bf16.msra.mxu2 %v3287_v59  ;;  %2160 = vmatpush.bf16.msra.mxu3 %v3543_v43  ;;  %v3610_v59 = vld [vmem:[#allocation7 + $0x2d8] sm:$0xf]  ;;  %v3355_v3 = vor.u32 %v4131_v56, %v3354_v55  ;;  %v3799_v52 = vor.u32 %v4241_v49, %v3798_v47  ;;  %v4273_v32 = vld [vmem:[#allocation8 + $0x164] sm:$0xf0] }
 0x5f2   :  { %v4195_v43 = vld [vmem:[#allocation7 + $0x2f4] sm:$0xf0] }
 0x5f3   :  { %v3611_v8 = vor.u32 %v4195_v43, %v3610_v59  ;;  %v4239_v55 = vld [vmem:[#allocation8 + $0x54] sm:$0xf0]  ;;  %v3782_v43 = vld [vmem:[#allocation8 + $0x40] sm:$0xf] }
 0x5f4   :  { %2122 = vmatpush.bf16.msra.mxu0 %v3251_v6  ;;  %2135 = vmatpush.bf16.msra.mxu1 %v3507_v7  ;;  %v3615_v6 = vor.u32 %v4191_v63, %v3612_v2  ;;  %v3578_v7 = vld [vmem:[#allocation7 + $0x298] sm:$0xf]  ;;  %v3783_v62 = vor.u32 %v4237_v61, %v3782_v43  ;;  %v3854_v63 = vld [vmem:[#allocation8 + $0xd0] sm:$0xf] }
 0x5f5   :  { %2148 = vmatpush.bf16.msra.mxu2 %v3255_v12  ;;  %2161 = vmatpush.bf16.msra.mxu3 %v3511_v13  ;;  %v4183_v12 = vld [vmem:[#allocation7 + $0x29c] sm:$0xf]  ;;  %v3774_v2 = vld [vmem:[#allocation8 + $0x30] sm:$0xf]  ;;  %v4247_v29 = vld [vmem:[#allocation8 + $0x94] sm:$0xf0] }
 0x5f6   :  { %v3580_v13 = vld [vmem:[#allocation7 + $0x2b8] sm:$0xf0] }
 0x5f7   :  { %2123 = vmatmul.bf16.vlgmr.msra.gmra.mxu0 %v4770_v38  ;;  %2136 = vmatmul.bf16.vlgmr.msra.gmra.mxu1 %v4772_v44 }
 0x5f8   :  { %2167 = vmatpush.bf16.msrb.mxu0 %v3483_v14  ;;  %2180 = vmatpush.bf16.msrb.mxu1 %v3739_v15  ;;  %v3323_v14 = vor.u32 %v4123_v45, %v3322_v4  ;;  %v3579_v15 = vor.u32 %v4187_v9, %v3578_v7  ;;  %v3846_v4 = vld [vmem:[#allocation8 + $0xc0] sm:$0xf]  ;;  %v4253_v45 = vld [vmem:[#allocation8 + $0xc4] sm:$0xf0] }
 0x5f9   :  { %2193 = vmatpush.bf16.msrb.mxu2 %v3487_v19  ;;  %2206 = vmatpush.bf16.msrb.mxu3 %v3743_v20  ;;  %v3327_v19 = vor.u32 %v4119_v10, %v3324_v11  ;;  %v3583_v20 = vor.u32 %v4183_v12, %v3580_v13  ;;  %v4233_v7 = vld [vmem:[#allocation8 + $0x24] sm:$0xf0]  ;;  %v3838_v10 = vld [vmem:[#allocation8 + $0xb0] sm:$0xf]  ;;  %v4251_v11 = vld [vmem:[#allocation8 + $0xb4] sm:$0xf0] }
 0x5fa   :  { %2149 = vmatmul.bf16.vlgmr.msra.gmra.mxu2 %v4770_v38  ;;  %2162 = vmatmul.bf16.vlgmr.msra.gmra.mxu3 %v4772_v44  ;;  %v3839_v12 = vor.u32 %v4251_v11, %v3838_v10  ;;  %v3758_v13 = vld [vmem:[#allocation8 + $0x10] sm:$0xf]  ;;  %v4254_v11 = vld [vmem:[#allocation8 + $0xd4] sm:$0xf] }
 0x5fc   :  { %2168 = vmatpush.bf16.msrb.mxu0 %v3451_v26  ;;  %2181 = vmatpush.bf16.msrb.mxu1 %v3707_v27  ;;  %v3291_v26 = vor.u32 %v4115_v18, %v3290_v17  ;;  %v3547_v27 = vor.u32 %v4179_v22, %v3546_v21  ;;  %v3830_v17 = vld [vmem:[#allocation8 + $0xa0] sm:$0xf]  ;;  %v4249_v18 = vld [vmem:[#allocation8 + $0xa4] sm:$0xf0]  ;;  %v3934_v22 = vld [vmem:[#allocation8 + $0x170] sm:$0xf] }
 0x5fd   :  { %2194 = vmatpush.bf16.msrb.mxu2 %v3455_v30  ;;  %2207 = vmatpush.bf16.msrb.mxu3 %v3711_v31  ;;  %v3295_v30 = vor.u32 %v4111_v23, %v3292_v39  ;;  %v3551_v31 = vor.u32 %v4175_v24, %v3548_v25  ;;  %v4229_v21 = vld [vmem:[#allocation8 + $0x4] sm:$0xf0]  ;;  %v4275_v39 = vld [vmem:[#allocation8 + $0x174] sm:$0xf0]  ;;  %v4242_v24 = vld [vmem:[#allocation8 + $0x74] sm:$0xf] }
 0x5fe   :  { %v3808_v25 = vld [vmem:[#allocation8 + $0x78] sm:$0xf0] }
 0x600   :  { %2169 = vmatpush.bf16.msrb.mxu0 %v3419_v40  ;;  %2182 = vmatpush.bf16.msrb.mxu1 %v3675_v41  ;;  %v3806_v40 = vld [vmem:[#allocation8 + $0x70] sm:$0xf]  ;;  %v4243_v41 = vld [vmem:[#allocation8 + $0x74] sm:$0xf0] }
 0x601   :  { %2195 = vmatpush.bf16.msrb.mxu2 %v3423_v1  ;;  %2208 = vmatpush.bf16.msrb.mxu3 %v3679_v46  ;;  %v3263_v1 = vor.u32 %v4103_v34, %v3260_v35  ;;  %v3519_v46 = vor.u32 %v4167_v36, %v3516_v37  ;;  %v3807_v48 = vor.u32 %v4243_v41, %v3806_v40  ;;  %v4240_v34 = vld [vmem:[#allocation8 + $0x64] sm:$0xf]  ;;  %v3800_v35 = vld [vmem:[#allocation8 + $0x68] sm:$0xf0]  ;;  %v3814_v37 = vld [vmem:[#allocation8 + $0x80] sm:$0xf] }
 0x602   :  { %v3803_v36 = vor.u32 %v4240_v34, %v3800_v35  ;;  %v4245_v40 = vld [vmem:[#allocation8 + $0x84] sm:$0xf0]  ;;  %v3998_v41 = vld [vmem:[#allocation8 + $0x1f0] sm:$0xf]  ;;  %v4232_v35 = vld [vmem:[#allocation8 + $0x24] sm:$0xf] }
 0x604   :  { %2170 = vmatpush.bf16.msrb.mxu0 %v3387_v53  ;;  %2183 = vmatpush.bf16.msrb.mxu1 %v3643_v60  ;;  %v3871_v53 = vor.u32 %v4259_v51, %v3870_v50  ;;  %v3790_v60 = vld [vmem:[#allocation8 + $0x50] sm:$0xf]  ;;  %v4271_v51 = vld [vmem:[#allocation8 + $0x154] sm:$0xf0] }
 0x605   :  { %2196 = vmatpush.bf16.msrb.mxu2 %v3391_v58  ;;  %2209 = vmatpush.bf16.msrb.mxu3 %v3647_v54  ;;  %v3791_v56 = vor.u32 %v4239_v55, %v3790_v60  ;;  %v3862_v58 = vld [vmem:[#allocation8 + $0xe0] sm:$0xf]  ;;  %v4257_v54 = vld [vmem:[#allocation8 + $0xe4] sm:$0xf0]  ;;  %v3918_v50 = vld [vmem:[#allocation8 + $0x150] sm:$0xf] }
 0x606   :  { %v3863_v59 = vor.u32 %v4257_v54, %v3862_v58  ;;  %v3919_v60 = vor.u32 %v4271_v51, %v3918_v50  ;;  %v4238_v55 = vld [vmem:[#allocation8 + $0x54] sm:$0xf]  ;;  %v3990_v54 = vld [vmem:[#allocation8 + $0x1e0] sm:$0xf]  ;;  %v3886_v50 = vld [vmem:[#allocation8 + $0x110] sm:$0xf] }
 0x607   :  { %v4263_v51 = vld [vmem:[#allocation8 + $0x114] sm:$0xf0] }
 0x608   :  { %2171 = vmatpush.bf16.msrb.mxu0 %v3355_v3  ;;  %2184 = vmatpush.bf16.msrb.mxu1 %v3611_v8  ;;  %v4235_v3 = vld [vmem:[#allocation8 + $0x34] sm:$0xf0] }
 0x609   :  { %2197 = vmatpush.bf16.msrb.mxu2 %v3359_v5  ;;  %2210 = vmatpush.bf16.msrb.mxu3 %v3615_v6  ;;  %v3775_v8 = vor.u32 %v4235_v3, %v3774_v2  ;;  %v3847_v5 = vor.u32 %v4253_v45, %v3846_v4  ;;  %v3766_v6 = vld [vmem:[#allocation8 + $0x20] sm:$0xf]  ;;  %v4269_v2 = vld [vmem:[#allocation8 + $0x144] sm:$0xf0]  ;;  %v3784_v4 = vld [vmem:[#allocation8 + $0x48] sm:$0xf0] }
 0x60a   :  { %v3767_v9 = vor.u32 %v4233_v7, %v3766_v6  ;;  %v4287_v6 = vld [vmem:[#allocation8 + $0x1d4] sm:$0xf0] }
 0x60c   :  { %2172 = vmatpush.bf16.msrb.mxu0 %v3323_v14  ;;  %2185 = vmatpush.bf16.msrb.mxu1 %v3579_v15  ;;  %v4231_v14 = vld [vmem:[#allocation8 + $0x14] sm:$0xf0] }
 0x60d   :  { %2198 = vmatpush.bf16.msrb.mxu2 %v3327_v19  ;;  %2211 = vmatpush.bf16.msrb.mxu3 %v3583_v20  ;;  %v3759_v15 = vor.u32 %v4231_v14, %v3758_v13  ;;  %v3831_v19 = vor.u32 %v4249_v18, %v3830_v17  ;;  %v3750_v20 = vld [vmem:[#allocation8] sm:$0xf]  ;;  %v3902_v18 = vld [vmem:[#allocation8 + $0x130] sm:$0xf] }
 0x60e   :  { %v3751_v23 = vor.u32 %v4229_v21, %v3750_v20  ;;  %v4234_v21 = vld [vmem:[#allocation8 + $0x34] sm:$0xf] }
 0x610   :  { %2173 = vmatpush.bf16.msrb.mxu0 %v3291_v26  ;;  %2186 = vmatpush.bf16.msrb.mxu1 %v3547_v27  ;;  %v3935_v26 = vor.u32 %v4275_v39, %v3934_v22  ;;  %v3811_v27 = vor.u32 %v4242_v24, %v3808_v25  ;;  %v3776_v22 = vld [vmem:[#allocation8 + $0x38] sm:$0xf0]  ;;  %v3974_v24 = vld [vmem:[#allocation8 + $0x1c0] sm:$0xf]  ;;  %v4285_v25 = vld [vmem:[#allocation8 + $0x1c4] sm:$0xf0] }
 0x611   :  { %2199 = vmatpush.bf16.msrb.mxu2 %v3295_v30  ;;  %2212 = vmatpush.bf16.msrb.mxu3 %v3551_v31  ;;  %v3823_v30 = vor.u32 %v4247_v29, %v3822_v28  ;;  %v3926_v31 = vld [vmem:[#allocation8 + $0x160] sm:$0xf]  ;;  %v3779_v39 = vor.u32 %v4234_v21, %v3776_v22  ;;  %v4252_v28 = vld [vmem:[#allocation8 + $0xc4] sm:$0xf]  ;;  %v3848_v29 = vld [vmem:[#allocation8 + $0xc8] sm:$0xf0] }
 0x612   :  { %v3927_v33 = vor.u32 %v4273_v32, %v3926_v31  ;;  %v3851_v31 = vor.u32 %v4252_v28, %v3848_v29  ;;  %v3894_v32 = vld [vmem:[#allocation8 + $0x120] sm:$0xf]  ;;  %v4272_v29 = vld [vmem:[#allocation8 + $0x164] sm:$0xf] }
 0x614   :  { %2174 = vmatpush.bf16.msrb.mxu0 %v3259_v42  ;;  %2187 = vmatpush.bf16.msrb.mxu1 %v3515_v0  ;;  %v3815_v42 = vor.u32 %v4245_v40, %v3814_v37  ;;  %v4291_v0 = vld [vmem:[#allocation8 + $0x1f4] sm:$0xf0]  ;;  %v3966_v37 = vld [vmem:[#allocation8 + $0x1b0] sm:$0xf] }
 0x615   :  { %2200 = vmatpush.bf16.msrb.mxu2 %v3263_v1  ;;  %2213 = vmatpush.bf16.msrb.mxu3 %v3519_v46  ;;  %v4258_v1 = vld [vmem:[#allocation8 + $0xf4] sm:$0xf]  ;;  %v3872_v46 = vld [vmem:[#allocation8 + $0xf8] sm:$0xf0]  ;;  %v3999_v49 = vor.u32 %v4291_v0, %v3998_v41  ;;  %v4283_v0 = vld [vmem:[#allocation8 + $0x1b4] sm:$0xf0] }
 0x617   :  { %2175 = vmatmul.bf16.vlgmr.msrb.gmra.mxu0 %v4770_v38  ;;  %2188 = vmatmul.bf16.vlgmr.msrb.gmra.mxu1 %v4772_v44 }
 0x618   :  { %2691 = vmatpush.bf16.msra.mxu0 %v3807_v48  ;;  %2201 = vmatmul.bf16.vlgmr.msrb.gmra.mxu2 %v4770_v38  ;;  %v4255_v38 = vld [vmem:[#allocation8 + $0xd4] sm:$0xf0] }
 0x619   :  { %2214 = vmatmul.bf16.vlgmr.msrb.gmra.mxu3 %v4772_v44  ;;  %2704 = vmatpush.bf16.msra.mxu1 %v3871_v53  ;;  %v3855_v44 = vor.u32 %v4255_v38, %v3854_v63  ;;  %v3864_v63 = vld [vmem:[#allocation8 + $0xe8] sm:$0xf0] }
 0x61a   :  { %2717 = vmatpush.bf16.msra.mxu2 %v3935_v26  ;;  %2730 = vmatpush.bf16.msra.mxu3 %v3999_v49  ;;  %v3967_v49 = vor.u32 %v4283_v0, %v3966_v37  ;;  %v4290_v0 = vld [vmem:[#allocation8 + $0x1f4] sm:$0xf] }
 0x61c   :  { %2692 = vmatpush.bf16.msra.mxu0 %v3799_v52  ;;  %v3875_v52 = vor.u32 %v4258_v1, %v3872_v46  ;;  %v4250_v1 = vld [vmem:[#allocation8 + $0xb4] sm:$0xf]  ;;  %v3840_v46 = vld [vmem:[#allocation8 + $0xb8] sm:$0xf0] }
 0x61d   :  { %2705 = vmatpush.bf16.msra.mxu1 %v3863_v59  ;;  %v4289_v59 = vld [vmem:[#allocation8 + $0x1e4] sm:$0xf0] }
 0x61e   :  { %2718 = vmatpush.bf16.msra.mxu2 %v3927_v33  ;;  %v3991_v61 = vor.u32 %v4289_v59, %v3990_v54  ;;  %v4265_v33 = vld [vmem:[#allocation8 + $0x124] sm:$0xf0] }
 0x61f   :  { %v3895_v34 = vor.u32 %v4265_v33, %v3894_v32 }
 0x620   :  { %2693 = vmatpush.bf16.msra.mxu0 %v3791_v56  ;;  %v3792_v56 = vld [vmem:[#allocation8 + $0x58] sm:$0xf0]  ;;  %2731 = vmatpush.bf16.msra.mxu3 %v3991_v61  ;;  %v4281_v61 = vld [vmem:[#allocation8 + $0x1a4] sm:$0xf0] }
 0x621   :  { %2706 = vmatpush.bf16.msra.mxu1 %v3855_v44  ;;  %v3795_v58 = vor.u32 %v4238_v55, %v3792_v56  ;;  %v3910_v44 = vld [vmem:[#allocation8 + $0x140] sm:$0xf]  ;;  %v3887_v55 = vor.u32 %v4263_v51, %v3886_v50  ;;  %v4230_v56 = vld [vmem:[#allocation8 + $0x14] sm:$0xf] }
 0x622   :  { %2719 = vmatpush.bf16.msra.mxu2 %v3919_v60  ;;  %v3911_v3 = vor.u32 %v4269_v2, %v3910_v44  ;;  %v4248_v44 = vld [vmem:[#allocation8 + $0xa4] sm:$0xf]  ;;  %v4270_v51 = vld [vmem:[#allocation8 + $0x154] sm:$0xf] }
 0x624   :  { %2694 = vmatpush.bf16.msra.mxu0 %v3783_v62  ;;  %v4256_v62 = vld [vmem:[#allocation8 + $0xe4] sm:$0xf] }
 0x625   :  { %2707 = vmatpush.bf16.msra.mxu1 %v3847_v5  ;;  %v3867_v38 = vor.u32 %v4256_v62, %v3864_v63  ;;  %v3982_v5 = vld [vmem:[#allocation8 + $0x1d0] sm:$0xf] }
 0x626   :  { %v3983_v10 = vor.u32 %v4287_v6, %v3982_v5  ;;  %2720 = vmatpush.bf16.msra.mxu2 %v3911_v3  ;;  %v3832_v3 = vld [vmem:[#allocation8 + $0xa8] sm:$0xf0]  ;;  %v4228_v5 = vld [vmem:[#allocation8 + $0x4] sm:$0xf] }
 0x627   :  { %v3752_v6 = vld [vmem:[#allocation8 + $0x8] sm:$0xf0] }
 0x628   :  { %2695 = vmatpush.bf16.msra.mxu0 %v3775_v8  ;;  %v4236_v8 = vld [vmem:[#allocation8 + $0x44] sm:$0xf]  ;;  %2732 = vmatpush.bf16.msra.mxu3 %v3983_v10  ;;  %v3936_v10 = vld [vmem:[#allocation8 + $0x178] sm:$0xf0] }
 0x629   :  { %2708 = vmatpush.bf16.msra.mxu1 %v3839_v12  ;;  %v3787_v45 = vor.u32 %v4236_v8, %v3784_v4  ;;  %v3856_v12 = vld [vmem:[#allocation8 + $0xd8] sm:$0xf0]  ;;  %v3878_v8 = vld [vmem:[#allocation8 + $0x100] sm:$0xf]  ;;  %v4261_v4 = vld [vmem:[#allocation8 + $0x104] sm:$0xf0] }
 0x62a   :  { %v3859_v17 = vor.u32 %v4254_v11, %v3856_v12 }
 0x62c   :  { %2696 = vmatpush.bf16.msra.mxu0 %v3767_v9 }
 0x62d   :  { %2709 = vmatpush.bf16.msra.mxu1 %v3831_v19  ;;  %v4267_v19 = vld [vmem:[#allocation8 + $0x134] sm:$0xf0] }
 0x62e   :  { %v3903_v20 = vor.u32 %v4267_v19, %v3902_v18  ;;  %v3950_v19 = vld [vmem:[#allocation8 + $0x190] sm:$0xf] }
 0x630   :  { %2697 = vmatpush.bf16.msra.mxu0 %v3759_v15  ;;  %2721 = vmatpush.bf16.msra.mxu2 %v3903_v20  ;;  %v4279_v20 = vld [vmem:[#allocation8 + $0x194] sm:$0xf0] }
 0x631   :  { %2710 = vmatpush.bf16.msra.mxu1 %v3823_v30 }
 0x634   :  { %2698 = vmatpush.bf16.msra.mxu0 %v3751_v23  ;;  %2722 = vmatpush.bf16.msra.mxu2 %v3895_v34  ;;  %v3942_v34 = vld [vmem:[#allocation8 + $0x180] sm:$0xf] }
 0x635   :  { %2711 = vmatpush.bf16.msra.mxu1 %v3815_v42 }
 0x638   :  { %2743 = vmatpush.bf16.msrb.mxu0 %v3811_v27  ;;  %v3975_v27 = vor.u32 %v4285_v25, %v3974_v24  ;;  %2723 = vmatpush.bf16.msra.mxu2 %v3887_v55  ;;  %v4246_v24 = vld [vmem:[#allocation8 + $0x94] sm:$0xf]  ;;  %v3824_v25 = vld [vmem:[#allocation8 + $0x98] sm:$0xf0] }
 0x639   :  { %2756 = vmatpush.bf16.msrb.mxu1 %v3875_v52  ;;  %v3843_v52 = vor.u32 %v4250_v1, %v3840_v46  ;;  %v3827_v28 = vor.u32 %v4246_v24, %v3824_v25  ;;  %v3920_v55 = vld [vmem:[#allocation8 + $0x158] sm:$0xf0] }
 0x63a   :  { %2733 = vmatpush.bf16.msra.mxu3 %v3975_v27 }
 0x63c   :  { %2744 = vmatpush.bf16.msrb.mxu0 %v3803_v36  ;;  %v3768_v36 = vld [vmem:[#allocation8 + $0x28] sm:$0xf0] }
 0x63d   :  { %2757 = vmatpush.bf16.msrb.mxu1 %v3867_v38  ;;  %v3771_v42 = vor.u32 %v4232_v35, %v3768_v36  ;;  %v4277_v35 = vld [vmem:[#allocation8 + $0x184] sm:$0xf0] }
 0x63e   :  { %2734 = vmatpush.bf16.msra.mxu3 %v3967_v49  ;;  %v4000_v49 = vld [vmem:[#allocation8 + $0x1f8] sm:$0xf0] }
 0x63f   :  { %v4003_v50 = vor.u32 %v4290_v0, %v4000_v49  ;;  %v4262_v49 = vld [vmem:[#allocation8 + $0x114] sm:$0xf] }
 0x640   :  { %2745 = vmatpush.bf16.msrb.mxu0 %v3795_v58  ;;  %v3760_v58 = vld [vmem:[#allocation8 + $0x18] sm:$0xf0] }
 0x641   :  { %2758 = vmatpush.bf16.msrb.mxu1 %v3859_v17  ;;  %v3763_v59 = vor.u32 %v4230_v56, %v3760_v58  ;;  %v3755_v17 = vor.u32 %v4228_v5, %v3752_v6 }
 0x644   :  { %2746 = vmatpush.bf16.msrb.mxu0 %v3787_v45 }
 0x645   :  { %2759 = vmatpush.bf16.msrb.mxu1 %v3851_v31  ;;  %v3928_v31 = vld [vmem:[#allocation8 + $0x168] sm:$0xf0] }
 0x646   :  { %v3931_v33 = vor.u32 %v4272_v29, %v3928_v31  ;;  %v3976_v29 = vld [vmem:[#allocation8 + $0x1c8] sm:$0xf0] }
 0x648   :  { %2747 = vmatpush.bf16.msrb.mxu0 %v3779_v39  ;;  %v3951_v39 = vor.u32 %v4279_v20, %v3950_v19 }
 0x649   :  { %2760 = vmatpush.bf16.msrb.mxu1 %v3843_v52 }
 0x64c   :  { %2748 = vmatpush.bf16.msrb.mxu0 %v3771_v42  ;;  %v3816_v42 = vld [vmem:[#allocation8 + $0x88] sm:$0xf0] }
 0x650   :  { %2749 = vmatpush.bf16.msrb.mxu0 %v3763_v59 }
 0x653   :  { %v2020_v48 = vpop.f32.mrf.mxu0  ;;  %v2033_v47 = vpop.f32.mrf.mxu1 }
 0x654   :  { %v4790_v53 = vadd.f32 %v2033_v47, %v2020_v48  ;;  %2750 = vmatpush.bf16.msrb.mxu0 %v3755_v17  ;;  %v3984_v17 = vld [vmem:[#allocation8 + $0x1d8] sm:$0xf0] }
 0x656   :  { %v3744_v43 = vmul.f32 -1.442695, %v4790_v53 }
 0x658   :  { %4334 = vpow2.f32 %v3744_v43  ;;  %v3958_v43 = vld [vmem:[#allocation8 + $0x1a0] sm:$0xf] }
 0x659   :  { %v3959_v38 = vor.u32 %v4281_v61, %v3958_v43  ;;  %v4288_v61 = vld [vmem:[#allocation8 + $0x1e4] sm:$0xf] }
 0x65a   :  { %v2046_v7 = vpop.f32.mrf.mxu2  ;;  %v2059_v9 = vpop.f32.mrf.mxu3 }
 0x65b   :  { %v4793_v13 = vadd.f32 %v2059_v9, %v2046_v7  ;;  %v2022_v14 = vpop.f32.mrf.mxu0  ;;  %v2035_v15 = vpop.f32.mrf.mxu1  ;;  %v4274_v7 = vld [vmem:[#allocation8 + $0x174] sm:$0xf]  ;;  %2735 = vmatpush.bf16.msra.mxu3 %v3959_v38  ;;  %v3835_v9 = vor.u32 %v4248_v44, %v3832_v3 }
 0x65c   :  { %v3879_v15 = vor.u32 %v4261_v4, %v3878_v8  ;;  %v3939_v18 = vor.u32 %v4274_v7, %v3936_v10  ;;  %v3912_v4 = vld [vmem:[#allocation8 + $0x148] sm:$0xf0] }
 0x65d   :  { %v3745_v23 = vmul.f32 -1.442695, %v4793_v13  ;;  %2761 = vmatpush.bf16.msrb.mxu1 %v3835_v9 }
 0x65e   :  { %v4335_v26 = vpop.eup %4334  ;;  %2724 = vmatpush.bf16.msra.mxu2 %v3879_v15  ;;  %v4286_v15 = vld [vmem:[#allocation8 + $0x1d4] sm:$0xf] }
 0x65f   :  { %v4796_v30 = vadd.f32 1.0, %v4335_v26  ;;  %4336 = vpow2.f32 %v3745_v23  ;;  %2736 = vmatpush.bf16.msra.mxu3 %v3951_v39  ;;  %v3904_v39 = vld [vmem:[#allocation8 + $0x138] sm:$0xf0] }
 0x661   :  { %4338 = vrcp.f32 %v4796_v30  ;;  %v2244_v27 = vand.u32 2147483647, %v4796_v30  ;;  %v2246_v46 = vand.u32 2147483648, %v4796_v30  ;;  %2762 = vmatpush.bf16.msrb.mxu1 %v3827_v28  ;;  %vm2240_vm12 = vweird.f32 %v4796_v30  ;;  %v4284_v28 = vld [vmem:[#allocation8 + $0x1c4] sm:$0xf] }
 0x662   :  { %v2048_v40 = vpop.f32.mrf.mxu2  ;;  %v2061_v41 = vpop.f32.mrf.mxu3  ;;  %2769 = vmatpush.bf16.msrb.mxu2 %v3939_v18  ;;  %v3979_v31 = vor.u32 %v4284_v28, %v3976_v29 }
 0x663   :  { %v2072_v48 = vpop.f32.mrf.mxu0  ;;  %v2085_v47 = vpop.f32.mrf.mxu1  ;;  %v3943_v40 = vor.u32 %v4277_v35, %v3942_v34  ;;  %v4244_v41 = vld [vmem:[#allocation8 + $0x84] sm:$0xf]  ;;  %v2247_v38 = vor.u32 1.1754944e-38, %v2246_v46  ;;  %vm2245_vm15 = vcmp.eq.f32.partialorder %v2244_v27, 8.507059e+37  ;;  %v3896_v35 = vld [vmem:[#allocation8 + $0x128] sm:$0xf0] }
 0x664   :  { %v4799_v60 = vadd.f32 %v2085_v47, %v2072_v48  ;;  %v3819_v47 = vor.u32 %v4244_v41, %v3816_v42  ;;  %v3968_v46 = vld [vmem:[#allocation8 + $0x1b8] sm:$0xf0] }
 0x665   :  { %v4337_v54 = vpop.eup %4336  ;;  %2737 = vmatpush.bf16.msra.mxu3 %v3943_v40 }
 0x666   :  { %v4801_v62 = vadd.f32 1.0, %v4337_v54  ;;  %v3746_v63 = vmul.f32 -1.442695, %v4799_v60  ;;  %2770 = vmatpush.bf16.msrb.mxu2 %v3931_v33  ;;  %v3923_v54 = vor.u32 %v4270_v51, %v3920_v55  ;;  %2763 = vmatpush.bf16.msrb.mxu1 %v3819_v47 }
 0x667   :  { %v4804_v2 = vpop.eup %4338 }
 0x668   :  { %v2236_v45 = vmul.f32 %v4804_v2, %v4796_v30  ;;  %4340 = vrcp.f32 %v4801_v62  ;;  %vm2241_vm11 = vweird.f32 %v4804_v2  ;;  %vm2255_vm0 = vweird.f32 %v4801_v62 }
 0x669   :  { %4342 = vpow2.f32 %v3746_v63  ;;  %vm4826_vm13 = vmor %vm2240_vm12, %vm2241_vm11  ;;  %2782 = vmatpush.bf16.msrb.mxu3 %v4003_v50  ;;  %v3992_v63 = vld [vmem:[#allocation8 + $0x1e8] sm:$0xf0]  ;;  %v2261_v8 = vand.u32 2147483648, %v4801_v62  ;;  %v2259_v7 = vand.u32 2147483647, %v4801_v62 }
 0x66a   :  { %v2237_v11 = vsub.f32 1.0, %v2236_v45  ;;  %v2098_v12 = vpop.f32.mrf.mxu2  ;;  %v2111_v14 = vpop.f32.mrf.mxu3  ;;  %v3995_v3 = vor.u32 %v4288_v61, %v3992_v63  ;;  %2771 = vmatpush.bf16.msrb.mxu2 %v3923_v54  ;;  %v3888_v50 = vld [vmem:[#allocation8 + $0x118] sm:$0xf0]  ;;  %v3960_v54 = vld [vmem:[#allocation8 + $0x1a8] sm:$0xf0] }
 0x66b   :  { %v4809_v21 = vadd.f32 %v2111_v14, %v2098_v12  ;;  %v2074_v22 = vpop.f32.mrf.mxu0  ;;  %v2087_v23 = vpop.f32.mrf.mxu1  ;;  %vm2260_vm2 = vcmp.eq.f32.partialorder %v2259_v7, 8.507059e+37  ;;  %v4278_v61 = vld [vmem:[#allocation8 + $0x194] sm:$0xf]  ;;  %v3952_v63 = vld [vmem:[#allocation8 + $0x198] sm:$0xf0] }
 0x66c   :  { %v2238_v26 = vmul.f32 %v4804_v2, %v2237_v11  ;;  %v2262_v22 = vor.u32 1.1754944e-38, %v2261_v8  ;;  %v4266_v23 = vld [vmem:[#allocation8 + $0x134] sm:$0xf]  ;;  %v3944_v7 = vld [vmem:[#allocation8 + $0x188] sm:$0xf0] }
 0x66d   :  { %v3747_v32 = vmul.f32 -1.442695, %v4809_v21  ;;  %2783 = vmatpush.bf16.msrb.mxu3 %v3995_v3  ;;  %v3907_v27 = vor.u32 %v4266_v23, %v3904_v39 }
 0x66e   :  { %v4814_v36 = vpop.eup %4340  ;;  %v2239_v37 = vadd.f32 %v4804_v2, %v2238_v26 }
 0x66f   :  { %v4343_v1 = vpop.eup %4342  ;;  %v2251_v48 = vmul.f32 %v4814_v36, %v4801_v62  ;;  %4344 = vpow2.f32 %v3747_v32  ;;  %vm2256_vm14 = vweird.f32 %v4814_v36  ;;  %v3987_v62 = vor.u32 %v4286_v15, %v3984_v17 }
 0x670   :  { %v4822_v52 = vadd.f32 1.0, %v4343_v1  ;;  %v2243_v59 = vsel %vm4826_vm13, %v4804_v2, %v2239_v37  ;;  %v4268_v2 = vld [vmem:[#allocation8 + $0x144] sm:$0xf]  ;;  %vm4842_vm1 = vmor %vm2255_vm0, %vm2256_vm14  ;;  %v4282_v1 = vld [vmem:[#allocation8 + $0x1b4] sm:$0xf] }
 0x671   :  { %v2252_v58 = vsub.f32 1.0, %v2251_v48  ;;  %v2248_v5 = vsel %vm2245_vm15, %v2247_v38, %v2243_v59  ;;  %v3915_v11 = vor.u32 %v4268_v2, %v3912_v4  ;;  %2784 = vmatpush.bf16.msrb.mxu3 %v3987_v62  ;;  %v3971_v47 = vor.u32 %v4282_v1, %v3968_v46 }
 0x672   :  { %v2100_v30 = vpop.f32.mrf.mxu2  ;;  %v2113_v43 = vpop.f32.mrf.mxu3  ;;  %4346 = vrcp.f32 %v4822_v52  ;;  %v2295_v20 = vmul.f32 %v2248_v5, %v4790_v53  ;;  %v4264_v53 = vld [vmem:[#allocation8 + $0x124] sm:$0xf]  ;;  %v3955_v4 = vor.u32 %v4278_v61, %v3952_v63  ;;  %vm2270_vm4 = vweird.f32 %v4822_v52 }
 0x673   :  { %v2253_v44 = vmul.f32 %v4814_v36, %v2252_v58  ;;  %2772 = vmatpush.bf16.msrb.mxu2 %v3915_v11  ;;  %v3899_v0 = vor.u32 %v4264_v53, %v3896_v35  ;;  %v4280_v58 = vld [vmem:[#allocation8 + $0x1a4] sm:$0xf]  ;;  %v3880_v43 = vld [vmem:[#allocation8 + $0x108] sm:$0xf0]  ;;  %v2274_v11 = vand.u32 2147483647, %v4822_v52 }
 0x674   :  { %v2124_v9 = vpop.f32.mrf.mxu0  ;;  %v2137_v10 = vpop.f32.mrf.mxu1  ;;  %v3963_v59 = vor.u32 %v4280_v58, %v3960_v54  ;;  %v4260_v30 = vld [vmem:[#allocation8 + $0x104] sm:$0xf] }
 0x675   :  { %v4345_v45 = vpop.eup %4344  ;;  %v2254_v6 = vadd.f32 %v4814_v36, %v2253_v44  ;;  %v2138_v14 = vadd.f32 %v2137_v10, %v2124_v9  ;;  %2785 = vmatpush.bf16.msrb.mxu3 %v3979_v31  ;;  %v3883_v2 = vor.u32 %v4260_v30, %v3880_v43  ;;  %v2276_v9 = vand.u32 2147483648, %v4822_v52 }
 0x676   :  { %v4849_v19 = vadd.f32 1.0, %v4345_v45  ;;  %vm2275_vm6 = vcmp.eq.f32.partialorder %v2274_v11, 8.507059e+37 }
 0x677   :  { %v2258_v18 = vsel %vm4842_vm1, %v4814_v36, %v2254_v6  ;;  %v2299_v26 = vmul.f32 %v2295_v20, %v2138_v14  ;;  %2773 = vmatpush.bf16.msrb.mxu2 %v3907_v27  ;;  %v4276_v6 = vld [vmem:[#allocation8 + $0x184] sm:$0xf]  ;;  %v2277_v15 = vor.u32 1.1754944e-38, %v2276_v9 }
 0x678   :  { %v4852_v24 = vpop.eup %4346  ;;  %v2263_v25 = vsel %vm2260_vm2, %v2262_v22, %v2258_v18  ;;  %4348 = vrcp.f32 %v4849_v19  ;;  %v3947_v10 = vor.u32 %v4276_v6, %v3944_v7  ;;  %v2291_v62 = vand.u32 2147483648, %v4849_v19 }
 0x679   :  { %v2303_v32 = vpack.c.bf16 %v2299_v26, %v2299_v26  ;;  %v2296_v36 = vmul.f32 %v2263_v25, %v4793_v13  ;;  %v2266_v37 = vmul.f32 %v4852_v24, %v4822_v52  ;;  %v3891_v13 = vor.u32 %v4262_v49, %v3888_v50  ;;  %2786 = vmatpush.bf16.msrb.mxu3 %v3971_v47 }
 0x67a   :  { %vm2271_vm3 = vweird.f32 %v4852_v24  ;;  %vm2285_vm8 = vweird.f32 %v4849_v19  ;;  %v2289_v20 = vand.u32 2147483647, %v4849_v19  ;;  %v2292_v25 = vor.u32 1.1754944e-38, %v2291_v62 }
 0x67b   :  { %2699 = vmatmul.bf16.vlgmr.msra.gmra.mxu0 %v2303_v32  ;;  %v2267_v55 = vsub.f32 1.0, %v2266_v37  ;;  %2774 = vmatpush.bf16.msrb.mxu2 %v3899_v0  ;;  %vm2272_vm5 = vmor %vm2270_vm4, %vm2271_vm3 }
 0x67c   :  { %v2126_v41 = vpop.f32.mrf.mxu0  ;;  %v2139_v42 = vpop.f32.mrf.mxu1  ;;  %vm2290_vm10 = vcmp.eq.f32.partialorder %v2289_v20, 8.507059e+37 }
 0x67d   :  { %v2150_v33 = vpop.f32.mrf.mxu2  ;;  %v2163_v34 = vpop.f32.mrf.mxu3  ;;  %v2268_v8 = vmul.f32 %v4852_v24, %v2267_v55  ;;  %2787 = vmatpush.bf16.msrb.mxu3 %v3963_v59 }
 0x67e   :  { %v2164_v40 = vadd.f32 %v2163_v34, %v2150_v33  ;;  %v4349_v51 = vpop.eup %4348 }
 0x67f   :  { %v2281_v38 = vmul.f32 %v4349_v51, %v4849_v19  ;;  %2775 = vmatpush.bf16.msrb.mxu2 %v3891_v13  ;;  %v2269_v5 = vadd.f32 %v4852_v24, %v2268_v8  ;;  %vm2286_vm7 = vweird.f32 %v4349_v51 }
 0x680   :  { %v2300_v48 = vmul.f32 %v2296_v36, %v2164_v40  ;;  %vm2287_vm9 = vmor %vm2285_vm8, %vm2286_vm7 }
 0x681   :  { %v2282_v45 = vsub.f32 1.0, %v2281_v38  ;;  %2788 = vmatpush.bf16.msrb.mxu3 %v3955_v4  ;;  %v2273_v14 = vsel %vm2272_vm5, %v4852_v24, %v2269_v5 }
 0x682   :  { %v2304_v56 = vpack.c.bf16 %v2300_v48, %v2300_v48  ;;  %v2278_v17 = vsel %vm2275_vm6, %v2277_v15, %v2273_v14 }
 0x683   :  { %2776 = vmatpush.bf16.msrb.mxu2 %v3883_v2  ;;  %v2283_v12 = vmul.f32 %v4349_v51, %v2282_v45  ;;  %v2297_v52 = vmul.f32 %v2278_v17, %v4799_v60 }
 0x684   :  { %2712 = vmatmul.bf16.vlgmr.msra.gmra.mxu1 %v2304_v56 }
 0x685   :  { %v2152_v44 = vpop.f32.mrf.mxu2  ;;  %v2165_v3 = vpop.f32.mrf.mxu3  ;;  %2789 = vmatpush.bf16.msrb.mxu3 %v3947_v10  ;;  %v2284_v18 = vadd.f32 %v4349_v51, %v2283_v12 }
 0x687   :  { %v2288_v24 = vsel %vm2287_vm9, %v4349_v51, %v2284_v18 }
 0x688   :  { %v2293_v27 = vsel %vm2290_vm10, %v2292_v25, %v2288_v24 }
 0x68b   :  { %2751 = vmatmul.bf16.vlgmr.msrb.gmra.mxu0 %v2303_v32  ;;  %v2298_v32 = vmul.f32 %v2293_v27, %v4809_v21 }
 0x694   :  { %v2176_v22 = vpop.f32.mrf.mxu0  ;;  %v2189_v23 = vpop.f32.mrf.mxu1  ;;  %2764 = vmatmul.bf16.vlgmr.msrb.gmra.mxu1 %v2304_v56 }
 0x695   :  { %v2190_v39 = vadd.f32 %v2189_v23, %v2176_v22 }
 0x697   :  { %v2301_v26 = vmul.f32 %v2297_v52, %v2190_v39 }
 0x699   :  { %v2305_v28 = vpack.c.bf16 %v2301_v26, %v2301_v26 }
 0x69b   :  { %v2202_v29 = vpop.f32.mrf.mxu2  ;;  %2725 = vmatmul.bf16.vlgmr.msra.gmra.mxu2 %v2305_v28 }
 0x69c   :  { %v2215_v31 = vpop.f32.mrf.mxu3  ;;  %v2178_v19 = vpop.f32.mrf.mxu0 }
 0x69d   :  { %v2216_v33 = vadd.f32 %v2215_v31, %v2202_v29  ;;  %v2191_v34 = vpop.f32.mrf.mxu1 }
 0x69f   :  { %v2302_v53 = vmul.f32 %v2298_v32, %v2216_v33 }
 0x6a1   :  { %v2306_v35 = vpack.c.bf16 %v2302_v53, %v2302_v53 }
 0x6a3   :  { %2738 = vmatmul.bf16.vlgmr.msra.gmra.mxu3 %v2306_v35  ;;  %v2204_v60 = vpop.f32.mrf.mxu2 }
 0x6a4   :  { %v2217_v36 = vpop.f32.mrf.mxu3 }
 0x6ab   :  { %2777 = vmatmul.bf16.vlgmr.msrb.gmra.mxu2 %v2305_v28 }
 0x6b3   :  { %2790 = vmatmul.bf16.vlgmr.msrb.gmra.mxu3 %v2306_v35 }
 0x6f8   :  { %v2700_v21 = vpop.f32.mrf.mxu0 }
 0x700   :  { %v2702_v40 = vpop.f32.mrf.mxu0 }
 0x701   :  { %v2713_v37 = vpop.f32.mrf.mxu1 }
 0x702   :  { %v2714_v47 = vadd.f32 %v2713_v37, %v2700_v21 }
 0x708   :  { %v2752_v42 = vpop.f32.mrf.mxu0 }
 0x709   :  { %v2715_v41 = vpop.f32.mrf.mxu1 }
 0x710   :  { %v2754_v1 = vpop.f32.mrf.mxu0 }
 0x711   :  { %v2765_v0 = vpop.f32.mrf.mxu1 }
 0x712   :  { %v2766_v54 = vadd.f32 %v2765_v0, %v2752_v42 }
 0x719   :  { %v2767_v46 = vpop.f32.mrf.mxu1 }
 0x71e   :  { %v2726_v48 = vpop.f32.mrf.mxu2 }
 0x71f   :  { %v2727_v49 = vadd.f32 %v2726_v48, %v2714_v47 }
 0x726   :  { %v2739_v50 = vpop.f32.mrf.mxu3  ;;  %v2728_v55 = vpop.f32.mrf.mxu2 }
 0x727   :  { %v2740_v51 = vadd.f32 %v2739_v50, %v2727_v49 }
 0x729   :  { %v2795_v56 = vadd.f32 %v2740_v51, %v4749_v16 }
 0x72b   :  { %2797 = vst [vmem:[%s4894_s9] sm:$0xff] %v2795_v56 }
 0x72e   :  { %v2741_v13 = vpop.f32.mrf.mxu3  ;;  %v2778_v58 = vpop.f32.mrf.mxu2 }
 0x72f   :  { %v2779_v59 = vadd.f32 %v2778_v58, %v2766_v54 }
 0x736   :  { %v2791_v30 = vpop.f32.mrf.mxu3  ;;  %v2780_v61 = vpop.f32.mrf.mxu2 }
 0x737   :  { %v2792_v43 = vadd.f32 %v2791_v30, %v2779_v59 }
 0x739   :  { %v2796_v63 = vadd.f32 %v2792_v43, %v4754_v57 }
 0x73b   :  { %2798 = vst [vmem:[%s4894_s9 + $0x8] sm:$0xff] %v2796_v63 }
 0x73e   :  { %v2793_v38 = vpop.f32.mrf.mxu3 }
 0x73f   :  { %4502 = dma.done.wait [#allocation4], 64  }
 0x740   :  { %4503 = vsyncadd [#allocation4], 4294967232 }
 0x741   :  { %4504 = dma.done.wait [#allocation12], 64  }
 0x742   :  { %4505 = vsyncadd [#allocation12], 4294967232 }
 0x743   :  { %2833 = vsyncpa [#allocation3], 1 }
 0x744   :  { %2834 = vsyncpa [#allocation6], 1 }
 0x745   :  { %2835 = vsyncpa [#allocation9], 1 }
 0x746   :  { %2836 = vsyncpa [#allocation4], 1 }
 0x747   :  { %2837 = vsyncpa [#allocation12], 1 }

</bundles_post_ra>
